<compile_context>
chip_gen: v7x
topology: tpu7x:2x2x1
jax: 0.10.0
libtpu: 0.0.40
codegen_flags: <defaults>
</compile_context>

<pallas_src>
import functools

import jax
import jax.numpy as jnp
from jax import lax
from jax.experimental import pallas as pl
from jax.experimental.pallas import tpu as pltpu

NEG_SLOPE = 0.01  # nn.LeakyReLU default


def _round_up(n, m):
    return ((n + m - 1) // m) * m


# ----------------------- Pallas kernel: matmul + bias ----------------------- #

def _matmul_bias_kernel(x_ref, w_ref, b_ref, o_ref, *, activation):
    acc = jnp.dot(x_ref[...], w_ref[...], preferred_element_type=jnp.float32)
    acc = acc + b_ref[...]                         # (1, N) broadcast, f32
    if activation == "leaky_relu":
        acc = jnp.where(acc > 0, acc, NEG_SLOPE * acc)
    o_ref[...] = acc.astype(o_ref.dtype)


def matmul_bias(x, w, b, activation=None, tm_max=512):
    """y = act(x @ w + b); x:(M,K) w:(K,N) bf16 operands, f32 accumulate.

    The M axis is tiled (grid) so the cols buffer never has to fit VMEM whole
    and the pipeline can double-buffer; weights/bias stay resident.
    """
    M, K = x.shape
    K2, N = w.shape
    assert K == K2
    tm = min(tm_max, _round_up(M, 8))              # multiple of 8 (and 16 if >512 cap)
    Mp = _round_up(M, tm)
    if Mp != M:
        x = jnp.pad(x, ((0, Mp - M), (0, 0)))
    x = x.astype(jnp.bfloat16)
    w = w.astype(jnp.bfloat16)
    b = b.reshape(1, N).astype(jnp.float32)

    out = pl.pallas_call(
        functools.partial(_matmul_bias_kernel, activation=activation),
        out_shape=jax.ShapeDtypeStruct((Mp, N), jnp.float32),
        grid=(Mp // tm,),
        in_specs=[
            pl.BlockSpec((tm, K), lambda i: (i, 0)),   # M-tiled activations
            pl.BlockSpec((K, N), lambda i: (0, 0)),    # resident weight
            pl.BlockSpec((1, N), lambda i: (0, 0)),    # resident bias
        ],
        out_specs=pl.BlockSpec((tm, N), lambda i: (i, 0)),
        compiler_params=pltpu.CompilerParams(
            dimension_semantics=("parallel",),          # megacore-shardable M axis
            vmem_limit_bytes=32 * 1024 * 1024,
        ),
    )(x, w, b)
    return out[:M] if Mp != M else out


# --------------- Pallas kernel: fused FC / latent / decoder-FC -------------- #

def _fused_mlp_kernel(h_ref, eps_ref,
                      w1, b1, w2, b2, wmu, bmu, wlv, blv,
                      wd1, bd1, wd2, bd2, wd3, bd3,
                      d_ref, mu_ref, lv_ref):
    def fc(x, w, b, act=False):
        y = jnp.dot(x.astype(jnp.bfloat16), w[...],
                    preferred_element_type=jnp.float32) + b[...]
        if act:
            y = jnp.where(y > 0, y, NEG_SLOPE * y)
        return y

    h = fc(h_ref[...], w1, b1, act=True)           # enc_fc1 + LeakyReLU
    h = fc(h, w2, b2)                              # enc_fc2
    mu = fc(h, wmu, bmu)                           # mu head
    lv = fc(h, wlv, blv)                           # logvar head
    z = mu + eps_ref[...] * jnp.exp(0.5 * lv)      # reparameterize (f32, EUP exp)
    d = fc(z, wd1, bd1, act=True)                  # dec_fc1 + LeakyReLU
    d = fc(d, wd2, bd2, act=True)                  # dec_fc2 + LeakyReLU
    d = fc(d, wd3, bd3)                            # dec_fc3
    d_ref[...] = d
    mu_ref[...] = mu
    lv_ref[...] = lv


def fused_mlp(h, eps, q):
    """One pallas_call for the whole MLP/latent stack; weights VMEM-resident."""
    Bp, flat = h.shape
    L = eps.shape[1]
    ins = (h, eps,
           q["fc1_w"], q["fc1_b"], q["fc2_w"], q["fc2_b"],
           q["mu_w"], q["mu_b"], q["lv_w"], q["lv_b"],
           q["dfc1_w"], q["dfc1_b"], q["dfc2_w"], q["dfc2_b"],
           q["dfc3_w"], q["dfc3_b"])
    return pl.pallas_call(
        _fused_mlp_kernel,
        out_shape=(jax.ShapeDtypeStruct((Bp, flat), jnp.float32),
                   jax.ShapeDtypeStruct((Bp, L), jnp.float32),
                   jax.ShapeDtypeStruct((Bp, L), jnp.float32)),
        grid=(1,),
        in_specs=[pl.BlockSpec(a.shape, lambda i: (0, 0)) for a in ins],
        out_specs=(pl.BlockSpec((Bp, flat), lambda i: (0, 0)),
                   pl.BlockSpec((Bp, L), lambda i: (0, 0)),
                   pl.BlockSpec((Bp, L), lambda i: (0, 0))),
        compiler_params=pltpu.CompilerParams(
            dimension_semantics=("arbitrary",),
            vmem_limit_bytes=32 * 1024 * 1024,
        ),
    )(*ins)


# -------------------------- conv lowering (NHWC) ---------------------------- #

def _im2col_nhwc(x, k, stride, pad):
    """x: (B,H,W,C) -> (B*Ho*Wo, k*k*C); contraction order (kh, kw, c)."""
    B, H, W, C = x.shape
    xp = jnp.pad(x, ((0, 0), (pad, pad), (pad, pad), (0, 0))) if pad else x
    Ho = (H + 2 * pad - k) // stride + 1
    Wo = (W + 2 * pad - k) // stride + 1
    patches = [xp[:, i:i + stride * Ho:stride, j:j + stride * Wo:stride, :]
               for i in range(k) for j in range(k)]
    cols = jnp.concatenate(patches, axis=-1)       # channels stay lane-contiguous
    return cols.reshape(B * Ho * Wo, k * k * C), Ho, Wo


def conv2d_nhwc(x, w_mat, b, *, k, stride, pad, activation=None):
    """PyTorch Conv2d in NHWC: im2col + fused Pallas matmul."""
    B = x.shape[0]
    cols, Ho, Wo = _im2col_nhwc(x, k, stride, pad)
    out = matmul_bias(cols, w_mat, b, activation)  # (B*Ho*Wo, C_out)
    return out.reshape(B, Ho, Wo, -1)


def conv_transpose2d_nhwc(x, w_mat, b, *, c_out, activation=None):
    """PyTorch ConvTranspose2d(k=4, s=2, p=1) via sub-pixel decomposition.

    The 4 output parity phases are 2x2 stride-1 convs of the 1-padded input;
    they are packed into a single (9*C_in, 4*C_out) matmul over a 3x3 im2col,
    then interleaved back with depth-to-space.
    """
    B, H, W, _ = x.shape
    xp = jnp.pad(x, ((0, 0), (1, 1), (1, 1), (0, 0)))
    cols, Ho, Wo = _im2col_nhwc(xp, 3, 1, 0)                 # Ho=H, Wo=W
    out = matmul_bias(cols, w_mat, b, activation)            # (B*H*W, 4*c_out)
    out = out.reshape(B, H, W, 2, 2, c_out).transpose(0, 1, 3, 2, 4, 5)
    return out.reshape(B, 2 * H, 2 * W, c_out)


# ------------------------------ parameters ---------------------------------- #

def init_params(key, feature_dims, latent_dims):
    """Parameters in PyTorch layout (Conv2d OIHW, ConvTranspose2d IOHW, etc.)."""
    f4 = feature_dims // 4
    flat = 64 * f4 * f4
    keys = iter(jax.random.split(key, 24))

    def u(shape, fan_in):
        bound = 1.0 / float(fan_in) ** 0.5
        return jax.random.uniform(next(keys), shape, jnp.float32, -bound, bound)

    p = {}
    p["enc_conv1_w"] = u((32, 1, 4, 4), 1 * 16)
    p["enc_conv1_b"] = u((32,), 1 * 16)
    p["enc_conv2_w"] = u((64, 32, 4, 4), 32 * 16)
    p["enc_conv2_b"] = u((64,), 32 * 16)
    p["enc_fc1_w"] = u((flat, 512), flat)
    p["enc_fc1_b"] = u((512,), flat)
    p["enc_fc2_w"] = u((512, 256), 512)
    p["enc_fc2_b"] = u((256,), 512)
    p["mu_w"] = u((256, latent_dims), 256)
    p["mu_b"] = u((latent_dims,), 256)
    p["logvar_w"] = u((256, latent_dims), 256)
    p["logvar_b"] = u((latent_dims,), 256)
    p["dec_fc1_w"] = u((latent_dims, 256), latent_dims)
    p["dec_fc1_b"] = u((256,), latent_dims)
    p["dec_fc2_w"] = u((256, 512), 256)
    p["dec_fc2_b"] = u((512,), 256)
    p["dec_fc3_w"] = u((512, flat), 512)
    p["dec_fc3_b"] = u((flat,), 512)
    p["dec_deconv1_w"] = u((64, 32, 4, 4), 32 * 16)   # (C_in, C_out, k, k)
    p["dec_deconv1_b"] = u((32,), 32 * 16)
    p["dec_deconv2_w"] = u((32, 1, 4, 4), 1 * 16)
    p["dec_deconv2_b"] = u((1,), 1 * 16)
    return p


def _conv_w_to_mat(w):
    """(C_out, C_in, kh, kw) -> (kh*kw*C_in, C_out) matching im2col order."""
    C_out, C_in, kh, kw = w.shape
    return w.transpose(2, 3, 1, 0).reshape(kh * kw * C_in, C_out).astype(jnp.bfloat16)


def _deconv_w_to_mat(w_pt):
    """ConvTranspose2d (C_in, C_out, 4, 4) -> (9*C_in, 4*C_out) phase-packed matrix.

    For each output parity (ph, pw) the flipped kernel taps a in {ph, ph+2},
    b in {pw, pw+2} land at 3x3-window positions ((a+ph)//2, (b+pw)//2).
    """
    C_in, C_out, k, _ = w_pt.shape
    assert k == 4
    w_eq = jnp.flip(w_pt, axis=(2, 3)).transpose(1, 0, 2, 3)  # (C_out, C_in, a, b)
    W = jnp.zeros((3, 3, C_in, 4 * C_out), jnp.float32)
    for ph in range(2):
        for pw in range(2):
            pidx = ph * 2 + pw
            for a in range(ph, 4, 2):
                for b in range(pw, 4, 2):
                    ra, rb = (a + ph) // 2, (b + pw) // 2
                    W = W.at[ra, rb, :, pidx * C_out:(pidx + 1) * C_out].set(
                        jnp.transpose(w_eq[:, :, a, b]))      # (C_in, C_out)
    return W.reshape(9 * C_in, 4 * C_out).astype(jnp.bfloat16)


def prepare_params(p, feature_dims, latent_dims):
    """One-time PyTorch -> TPU layout conversion (NHWC, bf16 weights, f32 bias)."""
    f4 = feature_dims // 4
    flat = 64 * f4 * f4
    bf, f32 = jnp.bfloat16, jnp.float32
    q = {}
    # encoder convs
    q["c1_w"] = _conv_w_to_mat(p["enc_conv1_w"])
    q["c1_b"] = p["enc_conv1_b"].astype(f32)
    q["c2_w"] = _conv_w_to_mat(p["enc_conv2_w"])
    q["c2_b"] = p["enc_conv2_b"].astype(f32)
    # encoder FC (permute flat axis from PyTorch (C,H,W) to NHWC (H,W,C))
    q["fc1_w"] = (p["enc_fc1_w"].reshape(64, f4, f4, 512)
                  .transpose(1, 2, 0, 3).reshape(flat, 512).astype(bf))
    q["fc1_b"] = p["enc_fc1_b"].reshape(1, 512).astype(f32)
    q["fc2_w"] = p["enc_fc2_w"].astype(bf)
    q["fc2_b"] = p["enc_fc2_b"].reshape(1, 256).astype(f32)
    q["mu_w"] = p["mu_w"].astype(bf)
    q["mu_b"] = p["mu_b"].reshape(1, latent_dims).astype(f32)
    q["lv_w"] = p["logvar_w"].astype(bf)
    q["lv_b"] = p["logvar_b"].reshape(1, latent_dims).astype(f32)
    # decoder FC
    q["dfc1_w"] = p["dec_fc1_w"].astype(bf)
    q["dfc1_b"] = p["dec_fc1_b"].reshape(1, 256).astype(f32)
    q["dfc2_w"] = p["dec_fc2_w"].astype(bf)
    q["dfc2_b"] = p["dec_fc2_b"].reshape(1, 512).astype(f32)
    q["dfc3_w"] = (p["dec_fc3_w"].reshape(512, 64, f4, f4)
                   .transpose(0, 2, 3, 1).reshape(512, flat).astype(bf))
    q["dfc3_b"] = (p["dec_fc3_b"].reshape(64, f4, f4)
                   .transpose(1, 2, 0).reshape(1, flat).astype(f32))
    # decoder transposed convs (phase-packed sub-pixel matrices)
    q["d1_w"] = _deconv_w_to_mat(p["dec_deconv1_w"])
    q["d1_b"] = jnp.tile(p["dec_deconv1_b"], 4).astype(f32)
    q["d2_w"] = _deconv_w_to_mat(p["dec_deconv2_w"])
    q["d2_b"] = jnp.tile(p["dec_deconv2_b"], 4).astype(f32)
    return q


# -------------------------------- forward ----------------------------------- #

def conv_vae_forward(params, x, eps, feature_dims):
    assert x.shape[-1] % 4 == 0, "Invalid max_len. Must be divisible by 4."
    B = x.shape[0]
    f4 = feature_dims // 4

    # NCHW -> NHWC once at the model boundary (C_in = 1).
    xh = x[:, :, :, None]

    # encoder convs
    h = conv2d_nhwc(xh, params["c1_w"], params["c1_b"],
                    k=4, stride=2, pad=1, activation="leaky_relu")
    h = conv2d_nhwc(h, params["c2_w"], params["c2_b"],
                    k=4, stride=2, pad=1, activation=None)

    # fused FC / latent / reparameterize / decoder-FC stack (one pallas_call)
    Bp = _round_up(B, 8)                           # full sublane of rows
    hf = jnp.pad(h.reshape(B, f4 * f4 * 64), ((0, Bp - B), (0, 0))).astype(jnp.bfloat16)
    ep = jnp.pad(eps, ((0, Bp - B), (0, 0))).astype(jnp.float32)
    d, mu, logvar = fused_mlp(hf, ep, params)
    d, mu, logvar = d[:B], mu[:B], logvar[:B]

    # decoder transposed convs (sub-pixel decomposition)
    d = d.reshape(B, f4, f4, 64)
    d = conv_transpose2d_nhwc(d, params["d1_w"], params["d1_b"],
                              c_out=32, activation="leaky_relu")
    d = conv_transpose2d_nhwc(d, params["d2_w"], params["d2_b"],
                              c_out=1, activation=None)
    reconstruction = d[:, :, :, 0]                 # squeeze channel, NHWC -> (B,H,W)
    return reconstruction, mu, logvar


# -------------------------- pure-JAX f32 reference -------------------------- #

def _reference_forward(p, x, eps, feature_dims):
    """NCHW f32 reference mirroring the PyTorch module (for cross-checking)."""
    f4 = feature_dims // 4
    B = x.shape[0]
    leaky = lambda t: jnp.where(t > 0, t, NEG_SLOPE * t)
    dn = ("NCHW", "OIHW", "NCHW")

    xi = x[:, None, :, :]
    h = lax.conv_general_dilated(xi, p["enc_conv1_w"], (2, 2), [(1, 1), (1, 1)],
                                 dimension_numbers=dn)
    h = leaky(h + p["enc_conv1_b"][None, :, None, None])
    h = lax.conv_general_dilated(h, p["enc_conv2_w"], (2, 2), [(1, 1), (1, 1)],
                                 dimension_numbers=dn)
    h = h + p["enc_conv2_b"][None, :, None, None]
    h = h.reshape(B, -1)
    h = leaky(h @ p["enc_fc1_w"] + p["enc_fc1_b"])
    h = h @ p["enc_fc2_w"] + p["enc_fc2_b"]
    mu = h @ p["mu_w"] + p["mu_b"]
    logvar = h @ p["logvar_w"] + p["logvar_b"]
    z = mu + eps * jnp.exp(0.5 * logvar)
    d = leaky(z @ p["dec_fc1_w"] + p["dec_fc1_b"])
    d = leaky(d @ p["dec_fc2_w"] + p["dec_fc2_b"])
    d = d @ p["dec_fc3_w"] + p["dec_fc3_b"]
    d = d.reshape(B, 64, f4, f4)

    def deconv(t, w, b):   # ConvTranspose2d(k=4,s=2,p=1) via input-dilated conv
        w_eq = jnp.flip(w, (2, 3)).transpose(1, 0, 2, 3)
        o = lax.conv_general_dilated(t, w_eq, (1, 1), [(2, 2), (2, 2)],
                                     lhs_dilation=(2, 2), dimension_numbers=dn)
        return o + b[None, :, None, None]

    d = leaky(deconv(d, p["dec_deconv1_w"], p["dec_deconv1_b"]))
    d = deconv(d, p["dec_deconv2_w"], p["dec_deconv2_b"])
    return d[:, 0], mu, logvar


# ---------------------------------- main ------------------------------------ #

if __name__ == "__main__":
    feature_dims = 16
    latent_dims = 8
    batch = 2

    key = jax.random.PRNGKey(0)
    k_param, k_x, k_eps = jax.random.split(key, 3)

    torch_layout_params = init_params(k_param, feature_dims, latent_dims)
    params = prepare_params(torch_layout_params, feature_dims, latent_dims)

    x = jax.random.normal(k_x, (batch, feature_dims, feature_dims), jnp.float32)
    eps = jax.random.normal(k_eps, (batch, latent_dims), jnp.float32)

    fwd = jax.jit(functools.partial(conv_vae_forward, feature_dims=feature_dims))
    recon, mu, logvar = fwd(params, x, eps)
    jax.block_until_ready((recon, mu, logvar))

    assert recon.shape == (batch, feature_dims, feature_dims)
    assert mu.shape == (batch, latent_dims)
    assert logvar.shape == (batch, latent_dims)

    # Cross-check against an f32 NCHW reference (loose tol: bf16 MXU operands).
    r_ref, mu_ref, lv_ref = _reference_forward(torch_layout_params, x, eps,
                                               feature_dims)
    assert jnp.allclose(mu, mu_ref, atol=1e-1, rtol=1e-1)
    assert jnp.allclose(logvar, lv_ref, atol=1e-1, rtol=1e-1)
    assert jnp.allclose(recon, r_ref, atol=1e-1, rtol=1e-1)

    print("KERNEL_OK")
</pallas_src>

<mosaic_0001>
module attributes {stable_mosaic.version = 11 : i64} {
  func.func @_matmul_bias_kernel(%arg0: i32, %arg1: memref<128x16xbf16, #tpu.memory_space<vmem>>, %arg2: memref<16x32xbf16, #tpu.memory_space<vmem>>, %arg3: memref<1x32xf32, #tpu.memory_space<vmem>>, %arg4: memref<128x32xf32, #tpu.memory_space<vmem>>) attributes {dimension_semantics = [#tpu.dimension_semantics<parallel>], iteration_bounds = array<i64: 1>, scalar_prefetch = 0 : i64, scratch_operands = 0 : i64, tpu.core_type = #tpu.core_type<tc>, window_params = [{transform_indices = @transform_0, window_bounds = array<i64: 128, 16>}, {pipeline_mode = #tpu.pipeline_mode<synchronous>, transform_indices = @transform_1, window_bounds = array<i64: 16, 32>}, {pipeline_mode = #tpu.pipeline_mode<synchronous>, transform_indices = @transform_2, window_bounds = array<i64: 1, 32>}, {transform_indices = @transform_3, window_bounds = array<i64: 128, 32>}]} {
    %c0 = arith.constant 0 : index
    %c0_0 = arith.constant 0 : index
    %0 = vector.load %arg1[%c0, %c0_0] : memref<128x16xbf16, #tpu.memory_space<vmem>>, vector<128x16xbf16>
    %c0_1 = arith.constant 0 : index
    %c0_2 = arith.constant 0 : index
    %1 = vector.load %arg2[%c0_1, %c0_2] : memref<16x32xbf16, #tpu.memory_space<vmem>>, vector<16x32xbf16>
    %cst = arith.constant dense<0.000000e+00> : vector<128x32xf32>
    %2 = tpu.matmul %0, %1, %cst {dimension_numbers = #tpu.dot_dimension_numbers<[1], [0], [0], [1], [0, 0, 1, 1], [], []>} : vector<128x16xbf16>, vector<16x32xbf16>, vector<128x32xf32> -> vector<128x32xf32>
    %c0_3 = arith.constant 0 : index
    %c0_4 = arith.constant 0 : index
    %3 = vector.load %arg3[%c0_3, %c0_4] : memref<1x32xf32, #tpu.memory_space<vmem>>, vector<1x32xf32>
    %4 = vector.broadcast %3 : vector<1x32xf32> to vector<128x32xf32>
    %5 = arith.addf %2, %4 : vector<128x32xf32>
    %cst_5 = arith.constant 0.000000e+00 : f32
    %6 = vector.broadcast %cst_5 : f32 to vector<128x32xf32>
    %7 = arith.cmpf ogt, %5, %6 : vector<128x32xf32>
    %cst_6 = arith.constant 0.00999999977 : f32
    %8 = vector.broadcast %cst_6 : f32 to vector<128x32xf32>
    %9 = arith.mulf %8, %5 : vector<128x32xf32>
    %10 = arith.select %7, %5, %9 : vector<128x32xi1>, vector<128x32xf32>
    %c0_7 = arith.constant 0 : index
    %c0_8 = arith.constant 0 : index
    %11 = vector.load %arg4[%c0_7, %c0_8] : memref<128x32xf32, #tpu.memory_space<vmem>>, vector<128x32xf32>
    tpu.vector_store %arg4[%c0_7, %c0_8], %10 {strides = array<i32>} : memref<128x32xf32, #tpu.memory_space<vmem>>, vector<128x32xf32>,
    return
  }
  func.func @transform_0(%arg0: i32) -> (i32, i32) {
    %c0_i32 = arith.constant 0 : i32
    %c0_i32_0 = arith.constant 0 : i32
    return %arg0, %c0_i32 : i32, i32
  }
  func.func @transform_1(%arg0: i32) -> (i32, i32) {
    %c0_i32 = arith.constant 0 : i32
    %c0_i32_0 = arith.constant 0 : i32
    %c0_i32_1 = arith.constant 0 : i32
    return %c0_i32, %c0_i32_0 : i32, i32
  }
  func.func @transform_2(%arg0: i32) -> (i32, i32) {
    %c0_i32 = arith.constant 0 : i32
    %c0_i32_0 = arith.constant 0 : i32
    %c0_i32_1 = arith.constant 0 : i32
    return %c0_i32, %c0_i32_0 : i32, i32
  }
  func.func @transform_3(%arg0: i32) -> (i32, i32) {
    %c0_i32 = arith.constant 0 : i32
    %c0_i32_0 = arith.constant 0 : i32
    return %arg0, %c0_i32 : i32, i32
  }
}

module attributes {stable_mosaic.version = 11 : i64} {
  func.func @_matmul_bias_kernel(%arg0: i32, %arg1: memref<32x512xbf16, #tpu.memory_space<vmem>>, %arg2: memref<512x64xbf16, #tpu.memory_space<vmem>>, %arg3: memref<1x64xf32, #tpu.memory_space<vmem>>, %arg4: memref<32x64xf32, #tpu.memory_space<vmem>>) attributes {dimension_semantics = [#tpu.dimension_semantics<parallel>], iteration_bounds = array<i64: 1>, scalar_prefetch = 0 : i64, scratch_operands = 0 : i64, tpu.core_type = #tpu.core_type<tc>, window_params = [{transform_indices = @transform_0, window_bounds = array<i64: 32, 512>}, {pipeline_mode = #tpu.pipeline_mode<synchronous>, transform_indices = @transform_1, window_bounds = array<i64: 512, 64>}, {pipeline_mode = #tpu.pipeline_mode<synchronous>, transform_indices = @transform_2, window_bounds = array<i64: 1, 64>}, {transform_indices = @transform_3, window_bounds = array<i64: 32, 64>}]} {
    %c0 = arith.constant 0 : index
    %c0_0 = arith.constant 0 : index
    %0 = vector.load %arg1[%c0, %c0_0] : memref<32x512xbf16, #tpu.memory_space<vmem>>, vector<32x512xbf16>
    %c0_1 = arith.constant 0 : index
    %c0_2 = arith.constant 0 : index
    %1 = vector.load %arg2[%c0_1, %c0_2] : memref<512x64xbf16, #tpu.memory_space<vmem>>, vector<512x64xbf16>
    %cst = arith.constant dense<0.000000e+00> : vector<32x64xf32>
    %2 = tpu.matmul %0, %1, %cst {dimension_numbers = #tpu.dot_dimension_numbers<[1], [0], [0], [1], [0, 0, 1, 1], [], []>} : vector<32x512xbf16>, vector<512x64xbf16>, vector<32x64xf32> -> vector<32x64xf32>
    %c0_3 = arith.constant 0 : index
    %c0_4 = arith.constant 0 : index
    %3 = vector.load %arg3[%c0_3, %c0_4] : memref<1x64xf32, #tpu.memory_space<vmem>>, vector<1x64xf32>
    %4 = vector.broadcast %3 : vector<1x64xf32> to vector<32x64xf32>
    %5 = arith.addf %2, %4 : vector<32x64xf32>
    %c0_5 = arith.constant 0 : index
    %c0_6 = arith.constant 0 : index
    %6 = vector.load %arg4[%c0_5, %c0_6] : memref<32x64xf32, #tpu.memory_space<vmem>>, vector<32x64xf32>
    tpu.vector_store %arg4[%c0_5, %c0_6], %5 {strides = array<i32>} : memref<32x64xf32, #tpu.memory_space<vmem>>, vector<32x64xf32>,
    return
  }
  func.func @transform_0(%arg0: i32) -> (i32, i32) {
    %c0_i32 = arith.constant 0 : i32
    %c0_i32_0 = arith.constant 0 : i32
    return %arg0, %c0_i32 : i32, i32
  }
  func.func @transform_1(%arg0: i32) -> (i32, i32) {
    %c0_i32 = arith.constant 0 : i32
    %c0_i32_0 = arith.constant 0 : i32
    %c0_i32_1 = arith.constant 0 : i32
    return %c0_i32, %c0_i32_0 : i32, i32
  }
  func.func @transform_2(%arg0: i32) -> (i32, i32) {
    %c0_i32 = arith.constant 0 : i32
    %c0_i32_0 = arith.constant 0 : i32
    %c0_i32_1 = arith.constant 0 : i32
    return %c0_i32, %c0_i32_0 : i32, i32
  }
  func.func @transform_3(%arg0: i32) -> (i32, i32) {
    %c0_i32 = arith.constant 0 : i32
    %c0_i32_0 = arith.constant 0 : i32
    return %arg0, %c0_i32 : i32, i32
  }
}

module attributes {stable_mosaic.version = 11 : i64} {
  func.func @_fused_mlp_kernel(%arg0: i32, %arg1: memref<8x1024xbf16, #tpu.memory_space<vmem>>, %arg2: memref<8x8xf32, #tpu.memory_space<vmem>>, %arg3: memref<1024x512xbf16, #tpu.memory_space<vmem>>, %arg4: memref<1x512xf32, #tpu.memory_space<vmem>>, %arg5: memref<512x256xbf16, #tpu.memory_space<vmem>>, %arg6: memref<1x256xf32, #tpu.memory_space<vmem>>, %arg7: memref<256x8xbf16, #tpu.memory_space<vmem>>, %arg8: memref<1x8xf32, #tpu.memory_space<vmem>>, %arg9: memref<256x8xbf16, #tpu.memory_space<vmem>>, %arg10: memref<1x8xf32, #tpu.memory_space<vmem>>, %arg11: memref<8x256xbf16, #tpu.memory_space<vmem>>, %arg12: memref<1x256xf32, #tpu.memory_space<vmem>>, %arg13: memref<256x512xbf16, #tpu.memory_space<vmem>>, %arg14: memref<1x512xf32, #tpu.memory_space<vmem>>, %arg15: memref<512x1024xbf16, #tpu.memory_space<vmem>>, %arg16: memref<1x1024xf32, #tpu.memory_space<vmem>>, %arg17: memref<8x1024xf32, #tpu.memory_space<vmem>>, %arg18: memref<8x8xf32, #tpu.memory_space<vmem>>, %arg19: memref<8x8xf32, #tpu.memory_space<vmem>>) attributes {dimension_semantics = [#tpu.dimension_semantics<arbitrary>], iteration_bounds = array<i64: 1>, scalar_prefetch = 0 : i64, scratch_operands = 0 : i64, tpu.core_type = #tpu.core_type<tc>, window_params = [{pipeline_mode = #tpu.pipeline_mode<synchronous>, transform_indices = @transform_0, window_bounds = array<i64: 8, 1024>}, {pipeline_mode = #tpu.pipeline_mode<synchronous>, transform_indices = @transform_1, window_bounds = array<i64: 8, 8>}, {pipeline_mode = #tpu.pipeline_mode<synchronous>, transform_indices = @transform_2, window_bounds = array<i64: 1024, 512>}, {pipeline_mode = #tpu.pipeline_mode<synchronous>, transform_indices = @transform_3, window_bounds = array<i64: 1, 512>}, {pipeline_mode = #tpu.pipeline_mode<synchronous>, transform_indices = @transform_4, window_bounds = array<i64: 512, 256>}, {pipeline_mode = #tpu.pipeline_mode<synchronous>, transform_indices = @transform_5, window_bounds = array<i64: 1, 256>}, {pipeline_mode = #tpu.pipeline_mode<synchronous>, transform_indices = @transform_6, window_bounds = array<i64: 256, 8>}, {pipeline_mode = #tpu.pipeline_mode<synchronous>, transform_indices = @transform_7, window_bounds = array<i64: 1, 8>}, {pipeline_mode = #tpu.pipeline_mode<synchronous>, transform_indices = @transform_8, window_bounds = array<i64: 256, 8>}, {pipeline_mode = #tpu.pipeline_mode<synchronous>, transform_indices = @transform_9, window_bounds = array<i64: 1, 8>}, {pipeline_mode = #tpu.pipeline_mode<synchronous>, transform_indices = @transform_10, window_bounds = array<i64: 8, 256>}, {pipeline_mode = #tpu.pipeline_mode<synchronous>, transform_indices = @transform_11, window_bounds = array<i64: 1, 256>}, {pipeline_mode = #tpu.pipeline_mode<synchronous>, transform_indices = @transform_12, window_bounds = array<i64: 256, 512>}, {pipeline_mode = #tpu.pipeline_mode<synchronous>, transform_indices = @transform_13, window_bounds = array<i64: 1, 512>}, {pipeline_mode = #tpu.pipeline_mode<synchronous>, transform_indices = @transform_14, window_bounds = array<i64: 512, 1024>}, {pipeline_mode = #tpu.pipeline_mode<synchronous>, transform_indices = @transform_15, window_bounds = array<i64: 1, 1024>}, {pipeline_mode = #tpu.pipeline_mode<synchronous>, transform_indices = @transform_16, window_bounds = array<i64: 8, 1024>}, {pipeline_mode = #tpu.pipeline_mode<synchronous>, transform_indices = @transform_17, window_bounds = array<i64: 8, 8>}, {pipeline_mode = #tpu.pipeline_mode<synchronous>, transform_indices = @transform_18, window_bounds = array<i64: 8, 8>}]} {
    %c0 = arith.constant 0 : index
    %c0_0 = arith.constant 0 : index
    %0 = vector.load %arg1[%c0, %c0_0] : memref<8x1024xbf16, #tpu.memory_space<vmem>>, vector<8x1024xbf16>
    %c0_1 = arith.constant 0 : index
    %c0_2 = arith.constant 0 : index
    %1 = vector.load %arg3[%c0_1, %c0_2] : memref<1024x512xbf16, #tpu.memory_space<vmem>>, vector<1024x512xbf16>
    %cst = arith.constant dense<0.000000e+00> : vector<8x512xf32>
    %2 = tpu.matmul %0, %1, %cst {dimension_numbers = #tpu.dot_dimension_numbers<[1], [0], [0], [1], [0, 0, 1, 1], [], []>} : vector<8x1024xbf16>, vector<1024x512xbf16>, vector<8x512xf32> -> vector<8x512xf32>
    %c0_3 = arith.constant 0 : index
    %c0_4 = arith.constant 0 : index
    %3 = vector.load %arg4[%c0_3, %c0_4] : memref<1x512xf32, #tpu.memory_space<vmem>>, vector<1x512xf32>
    %4 = vector.broadcast %3 : vector<1x512xf32> to vector<8x512xf32>
    %5 = arith.addf %2, %4 : vector<8x512xf32>
    %cst_5 = arith.constant 0.000000e+00 : f32
    %6 = vector.broadcast %cst_5 : f32 to vector<8x512xf32>
    %7 = arith.cmpf ogt, %5, %6 : vector<8x512xf32>
    %cst_6 = arith.constant 0.00999999977 : f32
    %8 = vector.broadcast %cst_6 : f32 to vector<8x512xf32>
    %9 = arith.mulf %8, %5 : vector<8x512xf32>
    %10 = arith.select %7, %5, %9 : vector<8x512xi1>, vector<8x512xf32>
    %11 = arith.truncf %10 : vector<8x512xf32> to vector<8x512xbf16>
    %c0_7 = arith.constant 0 : index
    %c0_8 = arith.constant 0 : index
    %12 = vector.load %arg5[%c0_7, %c0_8] : memref<512x256xbf16, #tpu.memory_space<vmem>>, vector<512x256xbf16>
    %cst_9 = arith.constant dense<0.000000e+00> : vector<8x256xf32>
    %13 = tpu.matmul %11, %12, %cst_9 {dimension_numbers = #tpu.dot_dimension_numbers<[1], [0], [0], [1], [0, 0, 1, 1], [], []>} : vector<8x512xbf16>, vector<512x256xbf16>, vector<8x256xf32> -> vector<8x256xf32>
    %c0_10 = arith.constant 0 : index
    %c0_11 = arith.constant 0 : index
    %14 = vector.load %arg6[%c0_10, %c0_11] : memref<1x256xf32, #tpu.memory_space<vmem>>, vector<1x256xf32>
    %15 = vector.broadcast %14 : vector<1x256xf32> to vector<8x256xf32>
    %16 = arith.addf %13, %15 : vector<8x256xf32>
    %17 = arith.truncf %16 : vector<8x256xf32> to vector<8x256xbf16>
    %c0_12 = arith.constant 0 : index
    %c0_13 = arith.constant 0 : index
    %18 = vector.load %arg7[%c0_12, %c0_13] : memref<256x8xbf16, #tpu.memory_space<vmem>>, vector<256x8xbf16>
    %cst_14 = arith.constant dense<0.000000e+00> : vector<8x8xf32>
    %19 = tpu.matmul %17, %18, %cst_14 {dimension_numbers = #tpu.dot_dimension_numbers<[1], [0], [0], [1], [0, 0, 1, 1], [], []>} : vector<8x256xbf16>, vector<256x8xbf16>, vector<8x8xf32> -> vector<8x8xf32>
    %c0_15 = arith.constant 0 : index
    %c0_16 = arith.constant 0 : index
    %20 = vector.load %arg8[%c0_15, %c0_16] : memref<1x8xf32, #tpu.memory_space<vmem>>, vector<1x8xf32>
    %21 = vector.broadcast %20 : vector<1x8xf32> to vector<8x8xf32>
    %22 = arith.addf %19, %21 : vector<8x8xf32>
    %23 = arith.truncf %16 : vector<8x256xf32> to vector<8x256xbf16>
    %c0_17 = arith.constant 0 : index
    %c0_18 = arith.constant 0 : index
    %24 = vector.load %arg9[%c0_17, %c0_18] : memref<256x8xbf16, #tpu.memory_space<vmem>>, vector<256x8xbf16>
    %cst_19 = arith.constant dense<0.000000e+00> : vector<8x8xf32>
    %25 = tpu.matmul %23, %24, %cst_19 {dimension_numbers = #tpu.dot_dimension_numbers<[1], [0], [0], [1], [0, 0, 1, 1], [], []>} : vector<8x256xbf16>, vector<256x8xbf16>, vector<8x8xf32> -> vector<8x8xf32>
    %c0_20 = arith.constant 0 : index
    %c0_21 = arith.constant 0 : index
    %26 = vector.load %arg10[%c0_20, %c0_21] : memref<1x8xf32, #tpu.memory_space<vmem>>, vector<1x8xf32>
    %27 = vector.broadcast %26 : vector<1x8xf32> to vector<8x8xf32>
    %28 = arith.addf %25, %27 : vector<8x8xf32>
    %c0_22 = arith.constant 0 : index
    %c0_23 = arith.constant 0 : index
    %29 = vector.load %arg2[%c0_22, %c0_23] : memref<8x8xf32, #tpu.memory_space<vmem>>, vector<8x8xf32>
    %cst_24 = arith.constant 5.000000e-01 : f32
    %30 = vector.broadcast %cst_24 : f32 to vector<8x8xf32>
    %31 = arith.mulf %30, %28 : vector<8x8xf32>
    %32 = math.exp %31 : vector<8x8xf32>
    %33 = arith.mulf %29, %32 : vector<8x8xf32>
    %34 = arith.addf %22, %33 : vector<8x8xf32>
    %35 = arith.truncf %34 : vector<8x8xf32> to vector<8x8xbf16>
    %c0_25 = arith.constant 0 : index
    %c0_26 = arith.constant 0 : index
    %36 = vector.load %arg11[%c0_25, %c0_26] : memref<8x256xbf16, #tpu.memory_space<vmem>>, vector<8x256xbf16>
    %cst_27 = arith.constant dense<0.000000e+00> : vector<8x256xf32>
    %37 = tpu.matmul %35, %36, %cst_27 {dimension_numbers = #tpu.dot_dimension_numbers<[1], [0], [0], [1], [0, 0, 1, 1], [], []>} : vector<8x8xbf16>, vector<8x256xbf16>, vector<8x256xf32> -> vector<8x256xf32>
    %c0_28 = arith.constant 0 : index
    %c0_29 = arith.constant 0 : index
    %38 = vector.load %arg12[%c0_28, %c0_29] : memref<1x256xf32, #tpu.memory_space<vmem>>, vector<1x256xf32>
    %39 = vector.broadcast %38 : vector<1x256xf32> to vector<8x256xf32>
    %40 = arith.addf %37, %39 : vector<8x256xf32>
    %cst_30 = arith.constant 0.000000e+00 : f32
    %41 = vector.broadcast %cst_30 : f32 to vector<8x256xf32>
    %42 = arith.cmpf ogt, %40, %41 : vector<8x256xf32>
    %cst_31 = arith.constant 0.00999999977 : f32
    %43 = vector.broadcast %cst_31 : f32 to vector<8x256xf32>
    %44 = arith.mulf %43, %40 : vector<8x256xf32>
    %45 = arith.select %42, %40, %44 : vector<8x256xi1>, vector<8x256xf32>
    %46 = arith.truncf %45 : vector<8x256xf32> to vector<8x256xbf16>
    %c0_32 = arith.constant 0 : index
    %c0_33 = arith.constant 0 : index
    %47 = vector.load %arg13[%c0_32, %c0_33] : memref<256x512xbf16, #tpu.memory_space<vmem>>, vector<256x512xbf16>
    %cst_34 = arith.constant dense<0.000000e+00> : vector<8x512xf32>
    %48 = tpu.matmul %46, %47, %cst_34 {dimension_numbers = #tpu.dot_dimension_numbers<[1], [0], [0], [1], [0, 0, 1, 1], [], []>} : vector<8x256xbf16>, vector<256x512xbf16>, vector<8x512xf32> -> vector<8x512xf32>
    %c0_35 = arith.constant 0 : index
    %c0_36 = arith.constant 0 : index
    %49 = vector.load %arg14[%c0_35, %c0_36] : memref<1x512xf32, #tpu.memory_space<vmem>>, vector<1x512xf32>
    %50 = vector.broadcast %49 : vector<1x512xf32> to vector<8x512xf32>
    %51 = arith.addf %48, %50 : vector<8x512xf32>
    %cst_37 = arith.constant 0.000000e+00 : f32
    %52 = vector.broadcast %cst_37 : f32 to vector<8x512xf32>
    %53 = arith.cmpf ogt, %51, %52 : vector<8x512xf32>
    %cst_38 = arith.constant 0.00999999977 : f32
    %54 = vector.broadcast %cst_38 : f32 to vector<8x512xf32>
    %55 = arith.mulf %54, %51 : vector<8x512xf32>
    %56 = arith.select %53, %51, %55 : vector<8x512xi1>, vector<8x512xf32>
    %57 = arith.truncf %56 : vector<8x512xf32> to vector<8x512xbf16>
    %c0_39 = arith.constant 0 : index
    %c0_40 = arith.constant 0 : index
    %58 = vector.load %arg15[%c0_39, %c0_40] : memref<512x1024xbf16, #tpu.memory_space<vmem>>, vector<512x1024xbf16>
    %cst_41 = arith.constant dense<0.000000e+00> : vector<8x1024xf32>
    %59 = tpu.matmul %57, %58, %cst_41 {dimension_numbers = #tpu.dot_dimension_numbers<[1], [0], [0], [1], [0, 0, 1, 1], [], []>} : vector<8x512xbf16>, vector<512x1024xbf16>, vector<8x1024xf32> -> vector<8x1024xf32>
    %c0_42 = arith.constant 0 : index
    %c0_43 = arith.constant 0 : index
    %60 = vector.load %arg16[%c0_42, %c0_43] : memref<1x1024xf32, #tpu.memory_space<vmem>>, vector<1x1024xf32>
    %61 = vector.broadcast %60 : vector<1x1024xf32> to vector<8x1024xf32>
    %62 = arith.addf %59, %61 : vector<8x1024xf32>
    %c0_44 = arith.constant 0 : index
    %c0_45 = arith.constant 0 : index
    %63 = vector.load %arg17[%c0_44, %c0_45] : memref<8x1024xf32, #tpu.memory_space<vmem>>, vector<8x1024xf32>
    tpu.vector_store %arg17[%c0_44, %c0_45], %62 {strides = array<i32>} : memref<8x1024xf32, #tpu.memory_space<vmem>>, vector<8x1024xf32>,
    %c0_46 = arith.constant 0 : index
    %c0_47 = arith.constant 0 : index
    %64 = vector.load %arg18[%c0_46, %c0_47] : memref<8x8xf32, #tpu.memory_space<vmem>>, vector<8x8xf32>
    tpu.vector_store %arg18[%c0_46, %c0_47], %22 {strides = array<i32>} : memref<8x8xf32, #tpu.memory_space<vmem>>, vector<8x8xf32>,
    %c0_48 = arith.constant 0 : index
    %c0_49 = arith.constant 0 : index
    %65 = vector.load %arg19[%c0_48, %c0_49] : memref<8x8xf32, #tpu.memory_space<vmem>>, vector<8x8xf32>
    tpu.vector_store %arg19[%c0_48, %c0_49], %28 {strides = array<i32>} : memref<8x8xf32, #tpu.memory_space<vmem>>, vector<8x8xf32>,
    return
  }
  func.func @transform_0(%arg0: i32) -> (i32, i32) {
    %c0_i32 = arith.constant 0 : i32
    %c0_i32_0 = arith.constant 0 : i32
    %c0_i32_1 = arith.constant 0 : i32
    return %c0_i32, %c0_i32_0 : i32, i32
  }
  func.func @transform_1(%arg0: i32) -> (i32, i32) {
    %c0_i32 = arith.constant 0 : i32
    %c0_i32_0 = arith.constant 0 : i32
    %c0_i32_1 = arith.constant 0 : i32
    return %c0_i32, %c0_i32_0 : i32, i32
  }
  func.func @transform_2(%arg0: i32) -> (i32, i32) {
    %c0_i32 = arith.constant 0 : i32
    %c0_i32_0 = arith.constant 0 : i32
    %c0_i32_1 = arith.constant 0 : i32
    return %c0_i32, %c0_i32_0 : i32, i32
  }
  func.func @transform_3(%arg0: i32) -> (i32, i32) {
    %c0_i32 = arith.constant 0 : i32
    %c0_i32_0 = arith.constant 0 : i32
    %c0_i32_1 = arith.constant 0 : i32
    return %c0_i32, %c0_i32_0 : i32, i32
  }
  func.func @transform_4(%arg0: i32) -> (i32, i32) {
    %c0_i32 = arith.constant 0 : i32
    %c0_i32_0 = arith.constant 0 : i32
    %c0_i32_1 = arith.constant 0 : i32
    return %c0_i32, %c0_i32_0 : i32, i32
  }
  func.func @transform_5(%arg0: i32) -> (i32, i32) {
    %c0_i32 = arith.constant 0 : i32
    %c0_i32_0 = arith.constant 0 : i32
    %c0_i32_1 = arith.constant 0 : i32
    return %c0_i32, %c0_i32_0 : i32, i32
  }
  func.func @transform_6(%arg0: i32) -> (i32, i32) {
    %c0_i32 = arith.constant 0 : i32
    %c0_i32_0 = arith.constant 0 : i32
    %c0_i32_1 = arith.constant 0 : i32
    return %c0_i32, %c0_i32_0 : i32, i32
  }
  func.func @transform_7(%arg0: i32) -> (i32, i32) {
    %c0_i32 = arith.constant 0 : i32
    %c0_i32_0 = arith.constant 0 : i32
    %c0_i32_1 = arith.constant 0 : i32
    return %c0_i32, %c0_i32_0 : i32, i32
  }
  func.func @transform_8(%arg0: i32) -> (i32, i32) {
    %c0_i32 = arith.constant 0 : i32
    %c0_i32_0 = arith.constant 0 : i32
    %c0_i32_1 = arith.constant 0 : i32
    return %c0_i32, %c0_i32_0 : i32, i32
  }
  func.func @transform_9(%arg0: i32) -> (i32, i32) {
    %c0_i32 = arith.constant 0 : i32
    %c0_i32_0 = arith.constant 0 : i32
    %c0_i32_1 = arith.constant 0 : i32
    return %c0_i32, %c0_i32_0 : i32, i32
  }
  func.func @transform_10(%arg0: i32) -> (i32, i32) {
    %c0_i32 = arith.constant 0 : i32
    %c0_i32_0 = arith.constant 0 : i32
    %c0_i32_1 = arith.constant 0 : i32
    return %c0_i32, %c0_i32_0 : i32, i32
  }
  func.func @transform_11(%arg0: i32) -> (i32, i32) {
    %c0_i32 = arith.constant 0 : i32
    %c0_i32_0 = arith.constant 0 : i32
    %c0_i32_1 = arith.constant 0 : i32
    return %c0_i32, %c0_i32_0 : i32, i32
  }
  func.func @transform_12(%arg0: i32) -> (i32, i32) {
    %c0_i32 = arith.constant 0 : i32
    %c0_i32_0 = arith.constant 0 : i32
    %c0_i32_1 = arith.constant 0 : i32
    return %c0_i32, %c0_i32_0 : i32, i32
  }
  func.func @transform_13(%arg0: i32) -> (i32, i32) {
    %c0_i32 = arith.constant 0 : i32
    %c0_i32_0 = arith.constant 0 : i32
    %c0_i32_1 = arith.constant 0 : i32
    return %c0_i32, %c0_i32_0 : i32, i32
  }
  func.func @transform_14(%arg0: i32) -> (i32, i32) {
    %c0_i32 = arith.constant 0 : i32
    %c0_i32_0 = arith.constant 0 : i32
    %c0_i32_1 = arith.constant 0 : i32
    return %c0_i32, %c0_i32_0 : i32, i32
  }
  func.func @transform_15(%arg0: i32) -> (i32, i32) {
    %c0_i32 = arith.constant 0 : i32
    %c0_i32_0 = arith.constant 0 : i32
    %c0_i32_1 = arith.constant 0 : i32
    return %c0_i32, %c0_i32_0 : i32, i32
  }
  func.func @transform_16(%arg0: i32) -> (i32, i32) {
    %c0_i32 = arith.constant 0 : i32
    %c0_i32_0 = arith.constant 0 : i32
    %c0_i32_1 = arith.constant 0 : i32
    return %c0_i32, %c0_i32_0 : i32, i32
  }
  func.func @transform_17(%arg0: i32) -> (i32, i32) {
    %c0_i32 = arith.constant 0 : i32
    %c0_i32_0 = arith.constant 0 : i32
    %c0_i32_1 = arith.constant 0 : i32
    return %c0_i32, %c0_i32_0 : i32, i32
  }
  func.func @transform_18(%arg0: i32) -> (i32, i32) {
    %c0_i32 = arith.constant 0 : i32
    %c0_i32_0 = arith.constant 0 : i32
    %c0_i32_1 = arith.constant 0 : i32
    return %c0_i32, %c0_i32_0 : i32, i32
  }
}

module attributes {stable_mosaic.version = 11 : i64} {
  func.func @_matmul_bias_kernel(%arg0: i32, %arg1: memref<32x576xbf16, #tpu.memory_space<vmem>>, %arg2: memref<576x128xbf16, #tpu.memory_space<vmem>>, %arg3: memref<1x128xf32, #tpu.memory_space<vmem>>, %arg4: memref<32x128xf32, #tpu.memory_space<vmem>>) attributes {dimension_semantics = [#tpu.dimension_semantics<parallel>], iteration_bounds = array<i64: 1>, scalar_prefetch = 0 : i64, scratch_operands = 0 : i64, tpu.core_type = #tpu.core_type<tc>, window_params = [{transform_indices = @transform_0, window_bounds = array<i64: 32, 576>}, {pipeline_mode = #tpu.pipeline_mode<synchronous>, transform_indices = @transform_1, window_bounds = array<i64: 576, 128>}, {pipeline_mode = #tpu.pipeline_mode<synchronous>, transform_indices = @transform_2, window_bounds = array<i64: 1, 128>}, {transform_indices = @transform_3, window_bounds = array<i64: 32, 128>}]} {
    %c0 = arith.constant 0 : index
    %c0_0 = arith.constant 0 : index
    %0 = vector.load %arg1[%c0, %c0_0] : memref<32x576xbf16, #tpu.memory_space<vmem>>, vector<32x576xbf16>
    %c0_1 = arith.constant 0 : index
    %c0_2 = arith.constant 0 : index
    %1 = vector.load %arg2[%c0_1, %c0_2] : memref<576x128xbf16, #tpu.memory_space<vmem>>, vector<576x128xbf16>
    %cst = arith.constant dense<0.000000e+00> : vector<32x128xf32>
    %2 = tpu.matmul %0, %1, %cst {dimension_numbers = #tpu.dot_dimension_numbers<[1], [0], [0], [1], [0, 0, 1, 1], [], []>} : vector<32x576xbf16>, vector<576x128xbf16>, vector<32x128xf32> -> vector<32x128xf32>
    %c0_3 = arith.constant 0 : index
    %c0_4 = arith.constant 0 : index
    %3 = vector.load %arg3[%c0_3, %c0_4] : memref<1x128xf32, #tpu.memory_space<vmem>>, vector<1x128xf32>
    %4 = vector.broadcast %3 : vector<1x128xf32> to vector<32x128xf32>
    %5 = arith.addf %2, %4 : vector<32x128xf32>
    %cst_5 = arith.constant 0.000000e+00 : f32
    %6 = vector.broadcast %cst_5 : f32 to vector<32x128xf32>
    %7 = arith.cmpf ogt, %5, %6 : vector<32x128xf32>
    %cst_6 = arith.constant 0.00999999977 : f32
    %8 = vector.broadcast %cst_6 : f32 to vector<32x128xf32>
    %9 = arith.mulf %8, %5 : vector<32x128xf32>
    %10 = arith.select %7, %5, %9 : vector<32x128xi1>, vector<32x128xf32>
    %c0_7 = arith.constant 0 : index
    %c0_8 = arith.constant 0 : index
    %11 = vector.load %arg4[%c0_7, %c0_8] : memref<32x128xf32, #tpu.memory_space<vmem>>, vector<32x128xf32>
    tpu.vector_store %arg4[%c0_7, %c0_8], %10 {strides = array<i32>} : memref<32x128xf32, #tpu.memory_space<vmem>>, vector<32x128xf32>,
    return
  }
  func.func @transform_0(%arg0: i32) -> (i32, i32) {
    %c0_i32 = arith.constant 0 : i32
    %c0_i32_0 = arith.constant 0 : i32
    return %arg0, %c0_i32 : i32, i32
  }
  func.func @transform_1(%arg0: i32) -> (i32, i32) {
    %c0_i32 = arith.constant 0 : i32
    %c0_i32_0 = arith.constant 0 : i32
    %c0_i32_1 = arith.constant 0 : i32
    return %c0_i32, %c0_i32_0 : i32, i32
  }
  func.func @transform_2(%arg0: i32) -> (i32, i32) {
    %c0_i32 = arith.constant 0 : i32
    %c0_i32_0 = arith.constant 0 : i32
    %c0_i32_1 = arith.constant 0 : i32
    return %c0_i32, %c0_i32_0 : i32, i32
  }
  func.func @transform_3(%arg0: i32) -> (i32, i32) {
    %c0_i32 = arith.constant 0 : i32
    %c0_i32_0 = arith.constant 0 : i32
    return %arg0, %c0_i32 : i32, i32
  }
}

module attributes {stable_mosaic.version = 11 : i64} {
  func.func @_matmul_bias_kernel(%arg0: i32, %arg1: memref<128x288xbf16, #tpu.memory_space<vmem>>, %arg2: memref<288x4xbf16, #tpu.memory_space<vmem>>, %arg3: memref<1x4xf32, #tpu.memory_space<vmem>>, %arg4: memref<128x4xf32, #tpu.memory_space<vmem>>) attributes {dimension_semantics = [#tpu.dimension_semantics<parallel>], iteration_bounds = array<i64: 1>, scalar_prefetch = 0 : i64, scratch_operands = 0 : i64, tpu.core_type = #tpu.core_type<tc>, window_params = [{transform_indices = @transform_0, window_bounds = array<i64: 128, 288>}, {pipeline_mode = #tpu.pipeline_mode<synchronous>, transform_indices = @transform_1, window_bounds = array<i64: 288, 4>}, {pipeline_mode = #tpu.pipeline_mode<synchronous>, transform_indices = @transform_2, window_bounds = array<i64: 1, 4>}, {transform_indices = @transform_3, window_bounds = array<i64: 128, 4>}]} {
    %c0 = arith.constant 0 : index
    %c0_0 = arith.constant 0 : index
    %0 = vector.load %arg1[%c0, %c0_0] : memref<128x288xbf16, #tpu.memory_space<vmem>>, vector<128x288xbf16>
    %c0_1 = arith.constant 0 : index
    %c0_2 = arith.constant 0 : index
    %1 = vector.load %arg2[%c0_1, %c0_2] : memref<288x4xbf16, #tpu.memory_space<vmem>>, vector<288x4xbf16>
    %cst = arith.constant dense<0.000000e+00> : vector<128x4xf32>
    %2 = tpu.matmul %0, %1, %cst {dimension_numbers = #tpu.dot_dimension_numbers<[1], [0], [0], [1], [0, 0, 1, 1], [], []>} : vector<128x288xbf16>, vector<288x4xbf16>, vector<128x4xf32> -> vector<128x4xf32>
    %c0_3 = arith.constant 0 : index
    %c0_4 = arith.constant 0 : index
    %3 = vector.load %arg3[%c0_3, %c0_4] : memref<1x4xf32, #tpu.memory_space<vmem>>, vector<1x4xf32>
    %4 = vector.broadcast %3 : vector<1x4xf32> to vector<128x4xf32>
    %5 = arith.addf %2, %4 : vector<128x4xf32>
    %c0_5 = arith.constant 0 : index
    %c0_6 = arith.constant 0 : index
    %6 = vector.load %arg4[%c0_5, %c0_6] : memref<128x4xf32, #tpu.memory_space<vmem>>, vector<128x4xf32>
    tpu.vector_store %arg4[%c0_5, %c0_6], %5 {strides = array<i32>} : memref<128x4xf32, #tpu.memory_space<vmem>>, vector<128x4xf32>,
    return
  }
  func.func @transform_0(%arg0: i32) -> (i32, i32) {
    %c0_i32 = arith.constant 0 : i32
    %c0_i32_0 = arith.constant 0 : i32
    return %arg0, %c0_i32 : i32, i32
  }
  func.func @transform_1(%arg0: i32) -> (i32, i32) {
    %c0_i32 = arith.constant 0 : i32
    %c0_i32_0 = arith.constant 0 : i32
    %c0_i32_1 = arith.constant 0 : i32
    return %c0_i32, %c0_i32_0 : i32, i32
  }
  func.func @transform_2(%arg0: i32) -> (i32, i32) {
    %c0_i32 = arith.constant 0 : i32
    %c0_i32_0 = arith.constant 0 : i32
    %c0_i32_1 = arith.constant 0 : i32
    return %c0_i32, %c0_i32_0 : i32, i32
  }
  func.func @transform_3(%arg0: i32) -> (i32, i32) {
    %c0_i32 = arith.constant 0 : i32
    %c0_i32_0 = arith.constant 0 : i32
    return %arg0, %c0_i32 : i32, i32
  }
}

</mosaic_0001>

<bundles_post_ra>
// kernel: conv_vae_forward.5
= control target key start
LH: loop header
LB: loop body
LE: loop exit
PB: predicated region body
PF: predicated region fallthrough
CT: control target
= control target key end

     0   :  { %vm86_vm0 = vcmask 130048   ;;  %vm256_vm1 = vcmask 261120   ;;  %s473_s1 = inlined_call_operand.vmem [shape: bf16[16,32], index: 1, kind: input, shape index: {}]   ;;  %s474_s0 = inlined_call_operand.vmem [shape: bf16[128,16], index: 0, kind: input, shape index: {}]   ;;  %s475_s2 = inlined_call_operand.vmem [shape: f32[1,32], index: 2, kind: input, shape index: {}]   ;;  %s476_s3 = inlined_call_operand.vmem [shape: f32[128,32], index: 3, kind: output, shape index: {}]  }
   0x1   :  { %v324_v0 = vld [vmem:[%s473_s1] sm:$0xff]   ;;  %v327_v3 = vld [vmem:[%s474_s0 + $0x8] sm:$0xff]   ;;  %v329_v5 = vld [vmem:[%s474_s0 + $0x10] sm:$0xff]  }
   0x2   :  { %v325_v1 = vld [vmem:[%s474_s0] sm:$0xff]   ;;  %304 = vmatprep.subr.bf16.mxu0 %v324_v0  ;;  %322 = vmatprep.subr.bf16.mxu1 %v324_v0  ;;  %v328_v4 = vld [vmem:[%s474_s0 + $0x28] sm:$0xff]   ;;  %v330_v6 = vld [vmem:[%s474_s0 + $0x30] sm:$0xff]  }
   0x3   :  { %v326_v2 = vld [vmem:[%s474_s0 + $0x20] sm:$0xff]   ;;  %305 = vmatpush3.bf16.msra.mxu0 %v324_v0  ;;  %323 = vmatpush3.bf16.msra.mxu1 %v324_v0  ;;  %v331_v7 = vld [vmem:[%s474_s0 + $0x18] sm:$0xff]  }
   0x4   :  { %306 = vmatprep.mubr.msk.bf16.mxu0 %vm86_vm0, %v325_v1  ;;  %314 = vmatprep.mubr.msk.bf16.mxu1 %vm86_vm0, %v326_v2  ;;  %v332_v8 = vld [vmem:[%s474_s0 + $0x38] sm:$0xff]   ;;  %v391_v9 = vld [vmem:[%s475_s2] ss:$0 sm:$0xff] }
   0x6   :  { %307 = vmatmul.mubr.msk.bf16.vlgmr.msra.gmra.mrb[0].mxu0 %vm86_vm0, %v327_v3  ;;  %315 = vmatmul.mubr.msk.bf16.vlgmr.msra.gmra.mrb[0].mxu1 %vm86_vm0, %v328_v4 }
   0x7   :  { %310 = vmatprep.mubr.msk.bf16.mxu0 %vm86_vm0, %v329_v5  ;;  %318 = vmatprep.mubr.msk.bf16.mxu1 %vm86_vm0, %v330_v6 }
   0xe   :  { %311 = vmatmul.mubr.msk.bf16.gmra.mrb[4].mxu0 %vm86_vm0, %v331_v7  ;;  %319 = vmatmul.mubr.msk.bf16.gmra.mrb[4].mxu1 %vm86_vm0, %v332_v8 }
  0xd9   :  { %v308_v10 = vpop.f32.mrb[0].mxu0  ;;  %v316_v11 = vpop.f32.mrb[0].mxu1 }
  0xda   :  { %v154_v12 = vadd.f32 %v308_v10, %v391_v9  ;;  %v186_v13 = vadd.f32 %v316_v11, %v391_v9  ;;  %v145_v14 = vpop.f32.mrb[1].mxu0  ;;  %v177_v15 = vpop.f32.mrb[1].mxu1 }
  0xdb   :  { %v146_v16 = vadd.f32 %v391_v9, %v145_v14  ;;  %v178_v17 = vadd.f32 %v391_v9, %v177_v15  ;;  %v309_v18 = vpop.f32.mrb[2].mxu0  ;;  %v317_v19 = vpop.f32.mrb[2].mxu1 }
  0xdc   :  { %vm210_vm2 = vcmp.gt.f32.partialorder %v154_v12, 0.0  ;;  %v226_v20 = vmul.f32 0.01, %v154_v12  ;;  %vm218_vm3 = vcmp.gt.f32.partialorder %v186_v13, 0.0  ;;  %v234_v21 = vmul.f32 0.01, %v186_v13 }
  0xdd   :  { %vm208_vm4 = vcmp.gt.f32.partialorder %v146_v16, 0.0  ;;  %v224_v22 = vmul.f32 0.01, %v146_v16  ;;  %vm216_vm5 = vcmp.gt.f32.partialorder %v178_v17, 0.0  ;;  %v232_v23 = vmul.f32 0.01, %v178_v17 }
  0xde   :  { %v242_v24 = vsel %vm210_vm2, %v154_v12, %v226_v20  ;;  %v250_v25 = vsel %vm218_vm3, %v186_v13, %v234_v21  ;;  %v157_v26 = vadd.f32 %v309_v18, %v391_v9  ;;  %v189_v27 = vadd.f32 %v317_v19, %v391_v9  ;;  %v148_v28 = vpop.f32.mrb[3].mxu0  ;;  %v180_v29 = vpop.f32.mrb[3].mxu1 }
  0xdf   :  { %259 = vst.msk [vmem:[%s476_s3 + $0x10] sm:$0xff] %vm256_vm1, %v242_v24  ;;  %267 = vst.msk [vmem:[%s476_s3 + $0x50] sm:$0xff] %vm256_vm1, %v250_v25  ;;  %v240_v30 = vsel %vm208_vm4, %v146_v16, %v224_v22  ;;  %v248_v31 = vsel %vm216_vm5, %v178_v17, %v232_v23  ;;  %v149_v32 = vadd.f32 %v391_v9, %v148_v28 }
  0xe0   :  { %v181_v33 = vadd.f32 %v391_v9, %v180_v29  ;;  %257 = vst.msk [vmem:[%s476_s3] sm:$0xff] %vm256_vm1, %v240_v30  ;;  %265 = vst.msk [vmem:[%s476_s3 + $0x40] sm:$0xff] %vm256_vm1, %v248_v31  ;;  %vm211_vm6 = vcmp.gt.f32.partialorder %v157_v26, 0.0  ;;  %v227_v34 = vmul.f32 0.01, %v157_v26  ;;  %vm219_vm7 = vcmp.gt.f32.partialorder %v189_v27, 0.0 }
  0xe1   :  { %v235_v35 = vmul.f32 0.01, %v189_v27  ;;  %vm209_vm8 = vcmp.gt.f32.partialorder %v149_v32, 0.0  ;;  %v225_v36 = vmul.f32 0.01, %v149_v32  ;;  %v312_v40 = vpop.f32.mrb[4].mxu0 }
  0xe2   :  { %vm217_vm9 = vcmp.gt.f32.partialorder %v181_v33, 0.0  ;;  %v233_v37 = vmul.f32 0.01, %v181_v33  ;;  %v243_v38 = vsel %vm211_vm6, %v157_v26, %v227_v34  ;;  %v320_v41 = vpop.f32.mrb[4].mxu1  ;;  %v170_v44 = vadd.f32 %v312_v40, %v391_v9  ;;  %v161_v46 = vpop.f32.mrb[5].mxu0 }
  0xe3   :  { %v251_v39 = vsel %vm219_vm7, %v189_v27, %v235_v35  ;;  %260 = vst.msk [vmem:[%s476_s3 + $0x18] sm:$0xff] %vm256_vm1, %v243_v38  ;;  %v241_v42 = vsel %vm209_vm8, %v149_v32, %v225_v36  ;;  %v202_v45 = vadd.f32 %v320_v41, %v391_v9  ;;  %v193_v47 = vpop.f32.mrb[5].mxu1  ;;  %v162_v48 = vadd.f32 %v391_v9, %v161_v46  ;;  %v313_v50 = vpop.f32.mrb[6].mxu0 }
  0xe4   :  { %268 = vst.msk [vmem:[%s476_s3 + $0x58] sm:$0xff] %vm256_vm1, %v251_v39  ;;  %v249_v43 = vsel %vm217_vm9, %v181_v33, %v233_v37  ;;  %258 = vst.msk [vmem:[%s476_s3 + $0x8] sm:$0xff] %vm256_vm1, %v241_v42  ;;  %v194_v49 = vadd.f32 %v391_v9, %v193_v47  ;;  %v321_v51 = vpop.f32.mrb[6].mxu1  ;;  %vm214_vm10 = vcmp.gt.f32.partialorder %v170_v44, 0.0  ;;  %v230_v52 = vmul.f32 0.01, %v170_v44 }
  0xe5   :  { %266 = vst.msk [vmem:[%s476_s3 + $0x48] sm:$0xff] %vm256_vm1, %v249_v43  ;;  %vm222_vm11 = vcmp.gt.f32.partialorder %v202_v45, 0.0  ;;  %v238_v53 = vmul.f32 0.01, %v202_v45  ;;  %vm212_vm12 = vcmp.gt.f32.partialorder %v162_v48, 0.0  ;;  %v173_v58 = vadd.f32 %v313_v50, %v391_v9  ;;  %v164_v60 = vpop.f32.mrb[7].mxu0 }
  0xe6   :  { %v228_v54 = vmul.f32 0.01, %v162_v48  ;;  %vm220_vm13 = vcmp.gt.f32.partialorder %v194_v49, 0.0  ;;  %v236_v55 = vmul.f32 0.01, %v194_v49  ;;  %v246_v56 = vsel %vm214_vm10, %v170_v44, %v230_v52  ;;  %v196_v61 = vpop.f32.mrb[7].mxu1 }
  0xe7   :  { %v254_v57 = vsel %vm222_vm11, %v202_v45, %v238_v53  ;;  %v205_v59 = vadd.f32 %v321_v51, %v391_v9  ;;  %263 = vst.msk [vmem:[%s476_s3 + $0x30] sm:$0xff] %vm256_vm1, %v246_v56  ;;  %v165_v0 = vadd.f32 %v391_v9, %v164_v60  ;;  %v197_v1 = vadd.f32 %v391_v9, %v196_v61 }
  0xe8   :  { %271 = vst.msk [vmem:[%s476_s3 + $0x70] sm:$0xff] %vm256_vm1, %v254_v57  ;;  %v244_v62 = vsel %vm212_vm12, %v162_v48, %v228_v54  ;;  %v252_v63 = vsel %vm220_vm13, %v194_v49, %v236_v55  ;;  %vm215_vm14 = vcmp.gt.f32.partialorder %v173_v58, 0.0  ;;  %v231_v2 = vmul.f32 0.01, %v173_v58 }
  0xe9   :  { %261 = vst.msk [vmem:[%s476_s3 + $0x20] sm:$0xff] %vm256_vm1, %v244_v62  ;;  %269 = vst.msk [vmem:[%s476_s3 + $0x60] sm:$0xff] %vm256_vm1, %v252_v63  ;;  %vm223_vm15 = vcmp.gt.f32.partialorder %v205_v59, 0.0  ;;  %v239_v3 = vmul.f32 0.01, %v205_v59  ;;  %vm213_vm0 = vcmp.gt.f32.partialorder %v165_v0, 0.0 }
  0xea   :  { %v229_v4 = vmul.f32 0.01, %v165_v0  ;;  %vm221_vm2 = vcmp.gt.f32.partialorder %v197_v1, 0.0  ;;  %v237_v5 = vmul.f32 0.01, %v197_v1  ;;  %v247_v6 = vsel %vm215_vm14, %v173_v58, %v231_v2 }
  0xeb   :  { %v255_v7 = vsel %vm223_vm15, %v205_v59, %v239_v3  ;;  %264 = vst.msk [vmem:[%s476_s3 + $0x38] sm:$0xff] %vm256_vm1, %v247_v6 }
  0xec   :  { %272 = vst.msk [vmem:[%s476_s3 + $0x78] sm:$0xff] %vm256_vm1, %v255_v7  ;;  %v245_v8 = vsel %vm213_vm0, %v165_v0, %v229_v4  ;;  %v253_v9 = vsel %vm221_vm2, %v197_v1, %v237_v5 }
  0xed   :  { %262 = vst.msk [vmem:[%s476_s3 + $0x28] sm:$0xff] %vm256_vm1, %v245_v8  ;;  %270 = vst.msk [vmem:[%s476_s3 + $0x68] sm:$0xff] %vm256_vm1, %v253_v9 }

// kernel: conv_vae_forward.6
= control target key start
LH: loop header
LB: loop body
LE: loop exit
PB: predicated region body
PF: predicated region fallthrough
CT: control target
= control target key end

     0   :  { %vm424_vm0 = vcmask 523264   ;;  %s733_s1 = inlined_call_operand.vmem [shape: bf16[512,64], index: 1, kind: input, shape index: {}]   ;;  %s734_s0 = inlined_call_operand.vmem [shape: bf16[32,512], index: 0, kind: input, shape index: {}]   ;;  %s735_s2 = inlined_call_operand.vmem [shape: f32[1,64], index: 2, kind: input, shape index: {}]   ;;  %s736_s3 = inlined_call_operand.vmem [shape: f32[32,64], index: 3, kind: output, shape index: {}]  }
   0x1   :  { %v530_v0 = vld [vmem:[%s733_s1 + $0x40] sm:$0xff]   ;;  %v534_v4 = vld [vmem:[%s733_s1 + $0x48] sm:$0xff]   ;;  %v538_v8 = vld [vmem:[%s733_s1 + $0x50] sm:$0xff]  }
   0x2   :  { %v531_v1 = vld [vmem:[%s733_s1 + $0xc0] sm:$0xff]   ;;  %474 = vmatprep.subr.bf16.mxu0 %v530_v0  ;;  %v535_v5 = vld [vmem:[%s733_s1 + $0xc8] sm:$0xff]   ;;  %v539_v9 = vld [vmem:[%s733_s1 + $0xd0] sm:$0xff]  }
   0x3   :  { %v532_v2 = vld [vmem:[%s733_s1] sm:$0xff]   ;;  %502 = vmatprep.subr.bf16.mxu1 %v531_v1  ;;  %v536_v6 = vld [vmem:[%s733_s1 + $0x8] sm:$0xff]   ;;  %v540_v10 = vld [vmem:[%s733_s1 + $0x10] sm:$0xff]  }
   0x4   :  { %v533_v3 = vld [vmem:[%s733_s1 + $0x80] sm:$0xff]   ;;  %475 = vmatpush3.bf16.msra.mxu0 %v532_v2  ;;  %v537_v7 = vld [vmem:[%s733_s1 + $0x88] sm:$0xff]   ;;  %v541_v11 = vld [vmem:[%s733_s1 + $0x90] sm:$0xff]  }
   0x5   :  { %503 = vmatpush3.bf16.msra.mxu1 %v533_v3  ;;  %476 = vmatprep.subr.bf16.mxu0 %v534_v4  ;;  %v542_v12 = vld [vmem:[%s733_s1 + $0x58] sm:$0xff]   ;;  %v546_v16 = vld [vmem:[%s733_s1 + $0x60] sm:$0xff]   ;;  %v550_v20 = vld [vmem:[%s733_s1 + $0x68] sm:$0xff]  }
   0x6   :  { %504 = vmatprep.subr.bf16.mxu1 %v535_v5  ;;  %v543_v13 = vld [vmem:[%s733_s1 + $0xd8] sm:$0xff]   ;;  %v547_v17 = vld [vmem:[%s733_s1 + $0xe0] sm:$0xff]   ;;  %v551_v21 = vld [vmem:[%s733_s1 + $0xe8] sm:$0xff]  }
   0x7   :  { %v544_v14 = vld [vmem:[%s733_s1 + $0x18] sm:$0xff]   ;;  %v548_v18 = vld [vmem:[%s733_s1 + $0x20] sm:$0xff]   ;;  %v552_v22 = vld [vmem:[%s733_s1 + $0x28] sm:$0xff]  }
   0x8   :  { %477 = vmatpush3.bf16.msra.mxu0 %v536_v6  ;;  %v545_v15 = vld [vmem:[%s733_s1 + $0x98] sm:$0xff]   ;;  %v549_v19 = vld [vmem:[%s733_s1 + $0xa0] sm:$0xff]   ;;  %v553_v23 = vld [vmem:[%s733_s1 + $0xa8] sm:$0xff]  }
   0x9   :  { %505 = vmatpush3.bf16.msra.mxu1 %v537_v7  ;;  %478 = vmatprep.subr.bf16.mxu0 %v538_v8  ;;  %v554_v24 = vld [vmem:[%s733_s1 + $0x70] sm:$0xff]   ;;  %v558_v28 = vld [vmem:[%s733_s1 + $0x78] sm:$0xff]   ;;  %v433_v42 = vld [vmem:[%s735_s2] ss:$0 sm:$0xff] }
   0xa   :  { %506 = vmatprep.subr.bf16.mxu1 %v539_v9  ;;  %v555_v25 = vld [vmem:[%s733_s1 + $0xf0] sm:$0xff]   ;;  %v559_v29 = vld [vmem:[%s733_s1 + $0xf8] sm:$0xff]  }
   0xb   :  { %v556_v26 = vld [vmem:[%s733_s1 + $0x30] sm:$0xff]   ;;  %v560_v30 = vld [vmem:[%s733_s1 + $0x38] sm:$0xff]  }
   0xc   :  { %479 = vmatpush3.bf16.msra.mxu0 %v540_v10  ;;  %v557_v27 = vld [vmem:[%s733_s1 + $0xb0] sm:$0xff]   ;;  %v561_v31 = vld [vmem:[%s733_s1 + $0xb8] sm:$0xff]  }
   0xd   :  { %507 = vmatpush3.bf16.msra.mxu1 %v541_v11  ;;  %480 = vmatprep.subr.bf16.mxu0 %v542_v12  ;;  %v562_v32 = vld [vmem:[%s734_s0] ss:$16 sps:$4 sm:$0xff]   ;;  %v564_v33 = vld [vmem:[%s734_s0 + $0x4] ss:$16 sps:$4 sm:$0xff]   ;;  %v565_v34 = vld [vmem:[%s734_s0 + $0x8] ss:$16 sps:$4 sm:$0xff]  }
   0xe   :  { %508 = vmatprep.subr.bf16.mxu1 %v543_v13  ;;  %v567_v35 = vld [vmem:[%s734_s0 + $0xc] ss:$16 sps:$4 sm:$0xff]   ;;  %358 = vmatprep.mubr.bf16.mxu0 %v564_v33  ;;  %v568_v36 = vld [vmem:[%s734_s0 + $0x24] ss:$16 sps:$4 sm:$0xff]   ;;  %v572_v38 = vld [vmem:[%s734_s0 + $0x20] ss:$16 sps:$4 sm:$0xff]  }
   0xf   :  { %407 = vmatprep.mubr.bf16.mxu1 %v567_v35  ;;  %v570_v37 = vld [vmem:[%s734_s0 + $0x2c] ss:$16 sps:$4 sm:$0xff]   ;;  %v573_v39 = vld [vmem:[%s734_s0 + $0x28] ss:$16 sps:$4 sm:$0xff]  }
  0x10   :  { %481 = vmatpush3.bf16.msra.mxu0 %v544_v14 }
  0x11   :  { %509 = vmatpush3.bf16.msra.mxu1 %v545_v15  ;;  %482 = vmatprep.subr.bf16.mxu0 %v546_v16 }
  0x12   :  { %510 = vmatprep.subr.bf16.mxu1 %v547_v17 }
  0x14   :  { %483 = vmatpush3.bf16.msra.mxu0 %v548_v18 }
  0x15   :  { %511 = vmatpush3.bf16.msra.mxu1 %v549_v19  ;;  %484 = vmatprep.subr.bf16.mxu0 %v550_v20 }
  0x16   :  { %512 = vmatprep.subr.bf16.mxu1 %v551_v21 }
  0x18   :  { %485 = vmatpush3.bf16.msra.mxu0 %v552_v22 }
  0x19   :  { %513 = vmatpush3.bf16.msra.mxu1 %v553_v23  ;;  %486 = vmatprep.subr.bf16.mxu0 %v554_v24 }
  0x1a   :  { %514 = vmatprep.subr.bf16.mxu1 %v555_v25 }
  0x1c   :  { %487 = vmatpush3.bf16.msra.mxu0 %v556_v26 }
  0x1d   :  { %515 = vmatpush3.bf16.msra.mxu1 %v557_v27  ;;  %488 = vmatprep.subr.bf16.mxu0 %v558_v28 }
  0x1e   :  { %516 = vmatprep.subr.bf16.mxu1 %v559_v29 }
  0x20   :  { %489 = vmatpush3.bf16.msra.mxu0 %v560_v30 }
  0x21   :  { %517 = vmatpush3.bf16.msra.mxu1 %v561_v31 }
  0x23   :  { %359 = vmatmul.mubr.bf16.vlgmr.msra.gmra.mrb[0].mxu0 %v562_v32 }
  0x24   :  { %408 = vmatmul.mubr.bf16.vlgmr.msra.gmra.mrb[0].mxu1 %v565_v34  ;;  %366 = vmatprep.mubr.bf16.mxu0 %v568_v36 }
  0x25   :  { %415 = vmatprep.mubr.bf16.mxu1 %v570_v37 }
  0x2b   :  { %367 = vmatmul.mubr.bf16.gmra.mrb[4].mxu0 %v572_v38 }
  0x2c   :  { %416 = vmatmul.mubr.bf16.gmra.mrb[4].mxu1 %v573_v39 }
  0xf6   :  { %v490_v40 = vpop.f32.mrb[0].mxu0 }
  0xf7   :  { %v518_v41 = vpop.f32.mrb[0].mxu1  ;;  %v491_v43 = vpop.f32.mrb[1].mxu0 }
  0xf8   :  { %v492_v44 = vadd.f32 %v491_v43, %v490_v40  ;;  %v519_v45 = vpop.f32.mrb[1].mxu1  ;;  %v493_v46 = vpop.f32.mrb[2].mxu0 }
  0xf9   :  { %v520_v47 = vadd.f32 %v519_v45, %v518_v41  ;;  %v521_v48 = vpop.f32.mrb[2].mxu1  ;;  %v494_v49 = vpop.f32.mrb[3].mxu0 }
  0xfa   :  { %v361_v50 = vadd.f32 %v492_v44, %v433_v42  ;;  %v495_v51 = vadd.f32 %v494_v49, %v493_v46  ;;  %v522_v52 = vpop.f32.mrb[3].mxu1 }
  0xfb   :  { %v523_v53 = vadd.f32 %v522_v52, %v521_v48 }
  0xfc   :  { %v410_v54 = vadd.f32 %v520_v47, %v361_v50  ;;  %v364_v55 = vadd.f32 %v495_v51, %v433_v42 }
  0xfe   :  { %425 = vst.msk [vmem:[%s736_s3] sm:$0xff] %vm424_vm0, %v410_v54  ;;  %v413_v56 = vadd.f32 %v523_v53, %v364_v55  ;;  %v496_v57 = vpop.f32.mrb[4].mxu0 }
  0xff   :  { %v524_v58 = vpop.f32.mrb[4].mxu1  ;;  %v497_v59 = vpop.f32.mrb[5].mxu0 }
 0x100   :  { %426 = vst.msk [vmem:[%s736_s3 + $0x8] sm:$0xff] %vm424_vm0, %v413_v56  ;;  %v498_v60 = vadd.f32 %v497_v59, %v496_v57  ;;  %v525_v61 = vpop.f32.mrb[5].mxu1  ;;  %v499_v62 = vpop.f32.mrb[6].mxu0 }
 0x101   :  { %v526_v63 = vadd.f32 %v525_v61, %v524_v58  ;;  %v527_v0 = vpop.f32.mrb[6].mxu1  ;;  %v500_v1 = vpop.f32.mrb[7].mxu0 }
 0x102   :  { %v369_v2 = vadd.f32 %v498_v60, %v433_v42  ;;  %v501_v3 = vadd.f32 %v500_v1, %v499_v62  ;;  %v528_v4 = vpop.f32.mrb[7].mxu1 }
 0x103   :  { %v529_v5 = vadd.f32 %v528_v4, %v527_v0 }
 0x104   :  { %v418_v6 = vadd.f32 %v526_v63, %v369_v2  ;;  %v372_v7 = vadd.f32 %v501_v3, %v433_v42 }
 0x106   :  { %427 = vst.msk [vmem:[%s736_s3 + $0x10] sm:$0xff] %vm424_vm0, %v418_v6  ;;  %v421_v8 = vadd.f32 %v529_v5, %v372_v7 }
 0x108   :  { %428 = vst.msk [vmem:[%s736_s3 + $0x18] sm:$0xff] %vm424_vm0, %v421_v8 }

// kernel: conv_vae_forward.8
= control target key start
LH: loop header
LB: loop body
LE: loop exit
PB: predicated region body
PF: predicated region fallthrough
CT: control target
= control target key end

     0   :  { %vm372_vm0 = vcmask 523264   ;;  %s892_s1 = inlined_call_operand.vmem [shape: bf16[576,128], index: 1, kind: input, shape index: {}]   ;;  %s893_s0 = inlined_call_operand.vmem [shape: bf16[32,576], index: 0, kind: input, shape index: {}]   ;;  %s894_s2 = inlined_call_operand.vmem [shape: f32[1,128], index: 2, kind: input, shape index: {}]   ;;  %s895_s3 = inlined_call_operand.vmem [shape: f32[32,128], index: 3, kind: output, shape index: {}]  }
   0x1   :  { %v669_v0 = vld [vmem:[%s892_s1 + $0x40] sm:$0xff]   ;;  %v673_v4 = vld [vmem:[%s892_s1 + $0x48] sm:$0xff]   ;;  %v677_v8 = vld [vmem:[%s892_s1 + $0x50] sm:$0xff]  }
   0x2   :  { %v670_v1 = vld [vmem:[%s892_s1] sm:$0xff]   ;;  %595 = vmatprep.subr.bf16.mxu0 %v669_v0  ;;  %v674_v5 = vld [vmem:[%s892_s1 + $0x8] sm:$0xff]   ;;  %v678_v9 = vld [vmem:[%s892_s1 + $0x10] sm:$0xff]  }
   0x3   :  { %v671_v2 = vld [vmem:[%s892_s1 + $0xc0] sm:$0xff]   ;;  %596 = vmatpush3.bf16.msra.mxu0 %v670_v1  ;;  %v675_v6 = vld [vmem:[%s892_s1 + $0xc8] sm:$0xff]   ;;  %v679_v10 = vld [vmem:[%s892_s1 + $0xd0] sm:$0xff]  }
   0x4   :  { %v672_v3 = vld [vmem:[%s892_s1 + $0x80] sm:$0xff]   ;;  %623 = vmatprep.subr.bf16.mxu1 %v671_v2  ;;  %597 = vmatprep.subr.bf16.mxu0 %v673_v4  ;;  %v676_v7 = vld [vmem:[%s892_s1 + $0x88] sm:$0xff]   ;;  %v680_v11 = vld [vmem:[%s892_s1 + $0x90] sm:$0xff]  }
   0x5   :  { %624 = vmatpush3.bf16.msra.mxu1 %v672_v3  ;;  %v681_v12 = vld [vmem:[%s892_s1 + $0x58] sm:$0xff]   ;;  %v685_v16 = vld [vmem:[%s892_s1 + $0x60] sm:$0xff]   ;;  %v689_v20 = vld [vmem:[%s892_s1 + $0x68] sm:$0xff]  }
   0x6   :  { %625 = vmatprep.subr.bf16.mxu1 %v675_v6  ;;  %v682_v13 = vld [vmem:[%s892_s1 + $0x18] sm:$0xff]   ;;  %v686_v17 = vld [vmem:[%s892_s1 + $0x20] sm:$0xff]   ;;  %v690_v21 = vld [vmem:[%s892_s1 + $0x28] sm:$0xff]  }
   0x7   :  { %598 = vmatpush3.bf16.msra.mxu0 %v674_v5  ;;  %v683_v14 = vld [vmem:[%s892_s1 + $0xd8] sm:$0xff]   ;;  %v687_v18 = vld [vmem:[%s892_s1 + $0xe0] sm:$0xff]   ;;  %v691_v22 = vld [vmem:[%s892_s1 + $0xe8] sm:$0xff]  }
   0x8   :  { %599 = vmatprep.subr.bf16.mxu0 %v677_v8  ;;  %v684_v15 = vld [vmem:[%s892_s1 + $0x98] sm:$0xff]   ;;  %v688_v19 = vld [vmem:[%s892_s1 + $0xa0] sm:$0xff]   ;;  %v692_v23 = vld [vmem:[%s892_s1 + $0xa8] sm:$0xff]  }
   0x9   :  { %626 = vmatpush3.bf16.msra.mxu1 %v676_v7  ;;  %v693_v24 = vld [vmem:[%s892_s1 + $0x70] sm:$0xff]   ;;  %v697_v28 = vld [vmem:[%s892_s1 + $0x78] sm:$0xff]   ;;  %v704_v34 = vld [vmem:[%s892_s1 + $0x100] sm:$0xff]  }
   0xa   :  { %627 = vmatprep.subr.bf16.mxu1 %v679_v10  ;;  %v694_v25 = vld [vmem:[%s892_s1 + $0x30] sm:$0xff]   ;;  %v698_v29 = vld [vmem:[%s892_s1 + $0x38] sm:$0xff]   ;;  %v707_v36 = vld [vmem:[%s893_s0 + $0xc] ss:$20 sps:$4 sm:$0xff]  }
   0xb   :  { %600 = vmatpush3.bf16.msra.mxu0 %v678_v9  ;;  %v695_v26 = vld [vmem:[%s892_s1 + $0xf0] sm:$0xff]   ;;  %v699_v30 = vld [vmem:[%s892_s1 + $0xf8] sm:$0xff]   ;;  %v708_v37 = vld [vmem:[%s892_s1 + $0x108] sm:$0xff]   ;;  %460 = vmatprep.mubr.bf16.mxu1 %v707_v36 }
   0xc   :  { %601 = vmatprep.subr.bf16.mxu0 %v681_v12  ;;  %v696_v27 = vld [vmem:[%s892_s1 + $0xb0] sm:$0xff]   ;;  %v702_v32 = vld [vmem:[%s893_s0 + $0x4] ss:$20 sps:$4 sm:$0xff]   ;;  %v705_v35 = vld [vmem:[%s893_s0 + $0x8] ss:$20 sps:$4 sm:$0xff]  }
   0xd   :  { %628 = vmatpush3.bf16.msra.mxu1 %v680_v11  ;;  %v700_v31 = vld [vmem:[%s893_s0] ss:$20 sps:$4 sm:$0xff]   ;;  %v703_v33 = vld [vmem:[%s892_s1 + $0xb8] sm:$0xff]   ;;  %411 = vmatprep.mubr.bf16.mxu0 %v702_v32  ;;  %v715_v42 = vld [vmem:[%s893_s0 + $0x30] ss:$20 sps:$4 sm:$0xff]  }
   0xe   :  { %629 = vmatprep.subr.bf16.mxu1 %v683_v14  ;;  %v709_v38 = vld [vmem:[%s893_s0 + $0x2c] ss:$20 sps:$4 sm:$0xff]   ;;  %v711_v39 = vld [vmem:[%s893_s0 + $0x28] ss:$20 sps:$4 sm:$0xff]   ;;  %v712_v40 = vld [vmem:[%s892_s1 + $0x110] sm:$0xff]  }
   0xf   :  { %602 = vmatpush3.bf16.msra.mxu0 %v682_v13  ;;  %v713_v41 = vld [vmem:[%s893_s0 + $0x34] ss:$20 sps:$4 sm:$0xff]   ;;  %v716_v43 = vld [vmem:[%s892_s1 + $0x118] sm:$0xff]   ;;  %v717_v44 = vld [vmem:[%s893_s0 + $0x10] ss:$20 sps:$4 sm:$0xff]  }
  0x10   :  { %603 = vmatprep.subr.bf16.mxu0 %v685_v16  ;;  %v718_v45 = vld [vmem:[%s893_s0 + $0x38] ss:$20 sps:$4 sm:$0xff]   ;;  %v546_v47 = vld [vmem:[%s894_s2] ss:$0 sm:$0xff] }
  0x11   :  { %630 = vmatpush3.bf16.msra.mxu1 %v684_v15 }
  0x12   :  { %631 = vmatprep.subr.bf16.mxu1 %v687_v18 }
  0x13   :  { %604 = vmatpush3.bf16.msra.mxu0 %v686_v17 }
  0x14   :  { %605 = vmatprep.subr.bf16.mxu0 %v689_v20 }
  0x15   :  { %632 = vmatpush3.bf16.msra.mxu1 %v688_v19 }
  0x16   :  { %633 = vmatprep.subr.bf16.mxu1 %v691_v22 }
  0x17   :  { %606 = vmatpush3.bf16.msra.mxu0 %v690_v21 }
  0x18   :  { %607 = vmatprep.subr.bf16.mxu0 %v693_v24 }
  0x19   :  { %634 = vmatpush3.bf16.msra.mxu1 %v692_v23 }
  0x1a   :  { %635 = vmatprep.subr.bf16.mxu1 %v695_v26 }
  0x1b   :  { %608 = vmatpush3.bf16.msra.mxu0 %v694_v25 }
  0x1c   :  { %609 = vmatprep.subr.bf16.mxu0 %v697_v28 }
  0x1d   :  { %636 = vmatpush3.bf16.msra.mxu1 %v696_v27 }
  0x1e   :  { %637 = vmatprep.subr.bf16.mxu1 %v699_v30 }
  0x1f   :  { %610 = vmatpush3.bf16.msra.mxu0 %v698_v29 }
  0x20   :  { %657 = vmatprep.subr.bf16.mxu0 %v704_v34 }
  0x21   :  { %638 = vmatpush3.bf16.msra.mxu1 %v703_v33 }
  0x22   :  { %412 = vmatmul.mubr.bf16.vlgmr.msra.gmra.mrb[0].mxu0 %v700_v31 }
  0x23   :  { %658 = vmatpush3.bf16.msra.mxu0 %v704_v34  ;;  %419 = vmatprep.mubr.bf16.mxu0 %v709_v38 }
  0x24   :  { %461 = vmatmul.mubr.bf16.vlgmr.msra.gmra.mrb[0].mxu1 %v705_v35  ;;  %659 = vmatprep.subr.bf16.mxu0 %v708_v37 }
  0x25   :  { %468 = vmatprep.mubr.bf16.mxu1 %v713_v41 }
  0x27   :  { %660 = vmatpush3.bf16.msra.mxu0 %v708_v37 }
  0x28   :  { %661 = vmatprep.subr.bf16.mxu0 %v712_v40 }
  0x2a   :  { %420 = vmatmul.mubr.bf16.gmra.mrb[4].mxu0 %v711_v39 }
  0x2b   :  { %665 = vmatprep.mubr.msk.bf16.mxu0 %vm372_vm0, %v717_v44  ;;  %662 = vmatpush3.bf16.msra.mxu0 %v712_v40 }
  0x2c   :  { %469 = vmatmul.mubr.bf16.gmra.mrb[4].mxu1 %v715_v42  ;;  %663 = vmatprep.subr.bf16.mxu0 %v716_v43 }
  0x2f   :  { %664 = vmatpush3.bf16.msra.mxu0 %v716_v43 }
  0x32   :  { %666 = vmatmul.mubr.msk.bf16.vlgmr.msra.gmra.mrb[8].mxu0 %vm372_vm0, %v718_v45 }
  0xf5   :  { %v611_v46 = vpop.f32.mrb[0].mxu0 }
  0xf6   :  { %v612_v48 = vpop.f32.mrb[1].mxu0 }
  0xf7   :  { %v613_v49 = vadd.f32 %v612_v48, %v611_v46  ;;  %v614_v50 = vpop.f32.mrb[2].mxu0  ;;  %v639_v51 = vpop.f32.mrb[0].mxu1 }
  0xf8   :  { %v615_v52 = vpop.f32.mrb[3].mxu0  ;;  %v640_v55 = vpop.f32.mrb[1].mxu1 }
  0xf9   :  { %v414_v53 = vadd.f32 %v613_v49, %v546_v47  ;;  %v616_v54 = vadd.f32 %v615_v52, %v614_v50  ;;  %v641_v56 = vadd.f32 %v640_v55, %v639_v51  ;;  %v642_v57 = vpop.f32.mrb[2].mxu1 }
  0xfa   :  { %v643_v59 = vpop.f32.mrb[3].mxu1 }
  0xfb   :  { %v417_v58 = vadd.f32 %v616_v54, %v546_v47  ;;  %v644_v60 = vadd.f32 %v643_v59, %v642_v57  ;;  %v463_v61 = vadd.f32 %v641_v56, %v414_v53 }
  0xfd   :  { %v617_v62 = vpop.f32.mrb[4].mxu0  ;;  %v466_v0 = vadd.f32 %v644_v60, %v417_v58 }
  0xfe   :  { %v618_v63 = vpop.f32.mrb[5].mxu0 }
  0xff   :  { %v619_v1 = vadd.f32 %v618_v63, %v617_v62  ;;  %v620_v2 = vpop.f32.mrb[6].mxu0  ;;  %v645_v3 = vpop.f32.mrb[4].mxu1 }
 0x100   :  { %v621_v4 = vpop.f32.mrb[7].mxu0  ;;  %v646_v7 = vpop.f32.mrb[5].mxu1 }
 0x101   :  { %v422_v5 = vadd.f32 %v619_v1, %v546_v47  ;;  %v622_v6 = vadd.f32 %v621_v4, %v620_v2  ;;  %v647_v8 = vadd.f32 %v646_v7, %v645_v3  ;;  %v648_v9 = vpop.f32.mrb[6].mxu1 }
 0x102   :  { %v649_v11 = vpop.f32.mrb[7].mxu1 }
 0x103   :  { %v425_v10 = vadd.f32 %v622_v6, %v546_v47  ;;  %v650_v12 = vadd.f32 %v649_v11, %v648_v9  ;;  %v471_v13 = vadd.f32 %v647_v8, %v422_v5 }
 0x105   :  { %v667_v14 = vpop.f32.mrb[8].mxu0  ;;  %v474_v15 = vadd.f32 %v650_v12, %v425_v10 }
 0x106   :  { %v520_v16 = vadd.f32 %v667_v14, %v471_v13  ;;  %v511_v17 = vpop.f32.mrb[9].mxu0 }
 0x107   :  { %v512_v18 = vadd.f32 %v511_v17, %v463_v61  ;;  %v668_v19 = vpop.f32.mrb[10].mxu0 }
 0x108   :  { %vm528_vm1 = vcmp.gt.f32.partialorder %v520_v16, 0.0  ;;  %v532_v20 = vmul.f32 0.01, %v520_v16  ;;  %v523_v21 = vadd.f32 %v668_v19, %v474_v15  ;;  %v514_v22 = vpop.f32.mrb[11].mxu0 }
 0x109   :  { %vm526_vm2 = vcmp.gt.f32.partialorder %v512_v18, 0.0  ;;  %v530_v23 = vmul.f32 0.01, %v512_v18  ;;  %v515_v24 = vadd.f32 %v514_v22, %v466_v0 }
 0x10a   :  { %v536_v25 = vsel %vm528_vm1, %v520_v16, %v532_v20  ;;  %vm529_vm3 = vcmp.gt.f32.partialorder %v523_v21, 0.0  ;;  %v533_v26 = vmul.f32 0.01, %v523_v21 }
 0x10b   :  { %540 = vst [vmem:[%s895_s3 + $0x10] sm:$0xff] %v536_v25  ;;  %v534_v27 = vsel %vm526_vm2, %v512_v18, %v530_v23  ;;  %vm527_vm4 = vcmp.gt.f32.partialorder %v515_v24, 0.0  ;;  %v531_v28 = vmul.f32 0.01, %v515_v24 }
 0x10c   :  { %538 = vst [vmem:[%s895_s3] sm:$0xff] %v534_v27  ;;  %v537_v29 = vsel %vm529_vm3, %v523_v21, %v533_v26 }
 0x10d   :  { %541 = vst [vmem:[%s895_s3 + $0x18] sm:$0xff] %v537_v29  ;;  %v535_v30 = vsel %vm527_vm4, %v515_v24, %v531_v28 }
 0x10e   :  { %539 = vst [vmem:[%s895_s3 + $0x8] sm:$0xff] %v535_v30 }

// kernel: conv_vae_forward.9
= control target key start
LH: loop header
LB: loop body
LE: loop exit
PB: predicated region body
PF: predicated region fallthrough
CT: control target
= control target key end

     0   :  { %vm318_vm0 = vcmask 261120   ;;  %vm537_vm1 = vcmask 31744   ;;  %s1020_s1 = inlined_call_operand.vmem [shape: bf16[288,4], index: 1, kind: input, shape index: {}]   ;;  %s1021_s0 = inlined_call_operand.vmem [shape: bf16[128,288], index: 0, kind: input, shape index: {}]   ;;  %s1022_s2 = inlined_call_operand.vmem [shape: f32[1,4], index: 2, kind: input, shape index: {}]   ;;  %s1023_s3 = inlined_call_operand.vmem [shape: f32[128,4], index: 3, kind: output, shape index: {}]  }
   0x1   :  { %v719_v0 = vld [vmem:[%s1020_s1 + $0x40] sm:$0xff]   ;;  %v721_v2 = vld [vmem:[%s1020_s1 + $0x48] sm:$0xff]   ;;  %v723_v4 = vld [vmem:[%s1020_s1 + $0x50] sm:$0xff]  }
   0x2   :  { %v720_v1 = vld [vmem:[%s1020_s1] sm:$0xff]   ;;  %609 = vmatprep.subr.bf16.mxu0 %v719_v0  ;;  %703 = vmatprep.subr.bf16.mxu1 %v719_v0  ;;  %v722_v3 = vld [vmem:[%s1020_s1 + $0x8] sm:$0xff]   ;;  %v724_v5 = vld [vmem:[%s1020_s1 + $0x10] sm:$0xff]  }
   0x3   :  { %610 = vmatpush3.bf16.msra.mxu0 %v720_v1  ;;  %711 = vmatpush3.bf16.msra.mxu1 %v720_v1  ;;  %v725_v6 = vld [vmem:[%s1020_s1 + $0x58] sm:$0xff]   ;;  %v727_v8 = vld [vmem:[%s1020_s1 + $0x60] sm:$0xff]   ;;  %v729_v10 = vld [vmem:[%s1020_s1 + $0x68] sm:$0xff]  }
   0x4   :  { %611 = vmatprep.subr.bf16.mxu0 %v721_v2  ;;  %704 = vmatprep.subr.bf16.mxu1 %v721_v2  ;;  %v726_v7 = vld [vmem:[%s1020_s1 + $0x18] sm:$0xff]   ;;  %v728_v9 = vld [vmem:[%s1020_s1 + $0x20] sm:$0xff]   ;;  %v730_v13 = vld [vmem:[%s1020_s1 + $0x28] sm:$0xff]  }
   0x5   :  { %v737_v11 = vld [vmem:[%s1021_s0 + $0x4] ss:$12 sps:$4 sm:$0xff]   ;;  %v740_v12 = vld [vmem:[%s1021_s0 + $0x94] ss:$12 sps:$4 sm:$0xff]   ;;  %v733_v16 = vld [vmem:[%s1020_s1 + $0x78] sm:$0xff]  }
   0x6   :  { %v731_v14 = vld [vmem:[%s1020_s1 + $0x70] sm:$0xff]   ;;  %375 = vmatprep.mubr.bf16.mxu0 %v737_v11  ;;  %423 = vmatprep.mubr.bf16.mxu1 %v740_v12  ;;  %v734_v17 = vld [vmem:[%s1020_s1 + $0x38] sm:$0xff]   ;;  %v735_v18 = vld [vmem:[%s1021_s0] ss:$12 sps:$4 sm:$0xff]  }
   0x7   :  { %612 = vmatpush3.bf16.msra.mxu0 %v722_v3  ;;  %712 = vmatpush3.bf16.msra.mxu1 %v722_v3  ;;  %v732_v15 = vld [vmem:[%s1020_s1 + $0x30] sm:$0xff]   ;;  %v741_v19 = vld [vmem:[%s1020_s1 + $0x80] sm:$0xff]   ;;  %v742_v21 = vld [vmem:[%s1021_s0 + $0x1c] ss:$12 sps:$4 sm:$0xff]  }
   0x8   :  { %613 = vmatprep.subr.bf16.mxu0 %v723_v4  ;;  %705 = vmatprep.subr.bf16.mxu1 %v723_v4  ;;  %v738_v20 = vld [vmem:[%s1021_s0 + $0x90] ss:$12 sps:$4 sm:$0xff]   ;;  %v744_v22 = vld [vmem:[%s1021_s0 + $0xac] ss:$12 sps:$4 sm:$0xff]   ;;  %v747_v25 = vld [vmem:[%s1021_s0 + $0xa8] ss:$12 sps:$4 sm:$0xff]  }
   0x9   :  { %v748_v23 = vld [vmem:[%s1020_s1 + $0x88] sm:$0xff]   ;;  %v746_v24 = vld [vmem:[%s1021_s0 + $0x18] ss:$12 sps:$4 sm:$0xff]   ;;  %v749_v26 = vld [vmem:[%s1021_s0 + $0x34] ss:$12 sps:$4 sm:$0xff]  }
   0xa   :  { %v751_v27 = vld [vmem:[%s1021_s0 + $0x8] ss:$12 sps:$4 sm:$0xff]   ;;  %v752_v28 = vld [vmem:[%s1021_s0 + $0x30] ss:$12 sps:$4 sm:$0xff]   ;;  %v753_v29 = vld [vmem:[%s1021_s0 + $0x20] ss:$12 sps:$4 sm:$0xff]  }
   0xb   :  { %614 = vmatpush3.bf16.msra.mxu0 %v724_v5  ;;  %713 = vmatpush3.bf16.msra.mxu1 %v724_v5  ;;  %v754_v30 = vld [vmem:[%s1021_s0 + $0x4c] ss:$12 sps:$4 sm:$0xff]   ;;  %v757_v32 = vld [vmem:[%s1021_s0 + $0x48] ss:$12 sps:$4 sm:$0xff]   ;;  %v758_v33 = vld [vmem:[%s1021_s0 + $0x50] ss:$12 sps:$4 sm:$0xff]  }
   0xc   :  { %615 = vmatprep.subr.bf16.mxu0 %v725_v6  ;;  %706 = vmatprep.subr.bf16.mxu1 %v725_v6  ;;  %v756_v31 = vld [vmem:[%s1021_s0 + $0x38] ss:$12 sps:$4 sm:$0xff]   ;;  %v761_v35 = vld [vmem:[%s1021_s0 + $0x68] ss:$12 sps:$4 sm:$0xff]   ;;  %v762_v36 = vld [vmem:[%s1021_s0 + $0x60] ss:$12 sps:$4 sm:$0xff]  }
   0xd   :  { %v759_v34 = vld [vmem:[%s1021_s0 + $0x64] ss:$12 sps:$4 sm:$0xff]   ;;  %v763_v37 = vld [vmem:[%s1021_s0 + $0x80] ss:$12 sps:$4 sm:$0xff]   ;;  %v764_v38 = vld [vmem:[%s1021_s0 + $0x7c] ss:$12 sps:$4 sm:$0xff]  }
   0xe   :  { %v766_v39 = vld [vmem:[%s1021_s0 + $0x98] ss:$12 sps:$4 sm:$0xff]   ;;  %v768_v41 = vld [vmem:[%s1021_s0 + $0xb0] ss:$12 sps:$4 sm:$0xff]   ;;  %v934_v2 = vld [vmem:[%s1022_s2] ss:$0 sm:$0xff] }
   0xf   :  { %616 = vmatpush3.bf16.msra.mxu0 %v726_v7  ;;  %714 = vmatpush3.bf16.msra.mxu1 %v726_v7  ;;  %v767_v40 = vld [vmem:[%s1021_s0 + $0x78] ss:$12 sps:$4 sm:$0xff]  }
  0x10   :  { %617 = vmatprep.subr.bf16.mxu0 %v727_v8  ;;  %707 = vmatprep.subr.bf16.mxu1 %v727_v8 }
  0x13   :  { %618 = vmatpush3.bf16.msra.mxu0 %v728_v9  ;;  %715 = vmatpush3.bf16.msra.mxu1 %v728_v9 }
  0x14   :  { %619 = vmatprep.subr.bf16.mxu0 %v729_v10  ;;  %708 = vmatprep.subr.bf16.mxu1 %v729_v10 }
  0x17   :  { %620 = vmatpush3.bf16.msra.mxu0 %v730_v13  ;;  %716 = vmatpush3.bf16.msra.mxu1 %v730_v13 }
  0x18   :  { %621 = vmatprep.subr.bf16.mxu0 %v731_v14  ;;  %709 = vmatprep.subr.bf16.mxu1 %v731_v14 }
  0x1b   :  { %622 = vmatpush3.bf16.msra.mxu0 %v732_v15  ;;  %717 = vmatpush3.bf16.msra.mxu1 %v732_v15 }
  0x1c   :  { %623 = vmatprep.subr.bf16.mxu0 %v733_v16  ;;  %710 = vmatprep.subr.bf16.mxu1 %v733_v16 }
  0x1f   :  { %624 = vmatpush3.bf16.msra.mxu0 %v734_v17  ;;  %718 = vmatpush3.bf16.msra.mxu1 %v734_v17 }
  0x20   :  { %683 = vmatprep.subr.bf16.mxu1 %v741_v19 }
  0x22   :  { %376 = vmatmul.mubr.bf16.vlgmr.msra.gmra.mrb[0].mxu0 %v735_v18  ;;  %424 = vmatmul.mubr.bf16.vlgmr.msra.gmra.mrb[0].mxu1 %v738_v20 }
  0x23   :  { %684 = vmatpush3.bf16.msra.mxu1 %v741_v19  ;;  %383 = vmatprep.mubr.bf16.mxu0 %v742_v21 }
  0x24   :  { %431 = vmatprep.mubr.bf16.mxu1 %v744_v22  ;;  %685 = vmatprep.subr.bf16.mxu1 %v748_v23 }
  0x27   :  { %686 = vmatpush3.bf16.msra.mxu1 %v748_v23 }
  0x2a   :  { %384 = vmatmul.mubr.bf16.gmra.mrb[4].mxu0 %v746_v24  ;;  %432 = vmatmul.mubr.bf16.gmra.mrb[4].mxu1 %v747_v25 }
  0x2b   :  { %391 = vmatprep.mubr.bf16.mxu0 %v749_v26  ;;  %687 = vmatprep.mubr.msk.bf16.mxu1 %vm318_vm0, %v751_v27 }
  0x32   :  { %392 = vmatmul.mubr.bf16.gmra.mrb[8].mxu0 %v752_v28  ;;  %688 = vmatmul.mubr.msk.bf16.vlgmr.msra.gmra.mrb[8].mxu1 %vm318_vm0, %v753_v29 }
  0x33   :  { %399 = vmatprep.mubr.bf16.mxu0 %v754_v30  ;;  %691 = vmatprep.mubr.msk.bf16.mxu1 %vm318_vm0, %v756_v31 }
  0x3a   :  { %400 = vmatmul.mubr.bf16.gmra.mrb[12].mxu0 %v757_v32  ;;  %692 = vmatmul.mubr.msk.bf16.gmra.mrb[12].mxu1 %vm318_vm0, %v758_v33 }
  0x3b   :  { %407 = vmatprep.mubr.bf16.mxu0 %v759_v34  ;;  %695 = vmatprep.mubr.msk.bf16.mxu1 %vm318_vm0, %v761_v35 }
  0x42   :  { %408 = vmatmul.mubr.bf16.gmra.mrb[16].mxu0 %v762_v36  ;;  %696 = vmatmul.mubr.msk.bf16.gmra.mrb[16].mxu1 %vm318_vm0, %v763_v37 }
  0x43   :  { %415 = vmatprep.mubr.bf16.mxu0 %v764_v38  ;;  %699 = vmatprep.mubr.msk.bf16.mxu1 %vm318_vm0, %v766_v39 }
  0x4a   :  { %416 = vmatmul.mubr.bf16.gmra.mrb[20].mxu0 %v767_v40  ;;  %700 = vmatmul.mubr.msk.bf16.gmra.mrb[20].mxu1 %vm318_vm0, %v768_v41 }
  0xf5   :  { %v625_v42 = vpop.f32.mrb[0].mxu0  ;;  %v661_v43 = vpop.f32.mrb[0].mxu1 }
  0xf6   :  { %v626_v44 = vpop.f32.mrb[1].mxu0  ;;  %v662_v45 = vpop.f32.mrb[1].mxu1 }
  0xf7   :  { %v627_v46 = vadd.f32 %v626_v44, %v625_v42  ;;  %v628_v47 = vpop.f32.mrb[2].mxu0  ;;  %v923_v48 = vadd.f32 %v662_v45, %v661_v43  ;;  %v664_v49 = vpop.f32.mrb[2].mxu1 }
  0xf8   :  { %v629_v50 = vpop.f32.mrb[3].mxu0  ;;  %v665_v51 = vpop.f32.mrb[3].mxu1 }
  0xf9   :  { %v630_v52 = vadd.f32 %v629_v50, %v628_v47  ;;  %v925_v53 = vadd.f32 %v665_v51, %v664_v49  ;;  %v378_v6 = vadd.f32 %v627_v46, %v934_v2 }
  0xfb   :  { %v381_v15 = vadd.f32 %v630_v52, %v934_v2 }
  0xfd   :  { %v631_v54 = vpop.f32.mrb[4].mxu0  ;;  %v667_v55 = vpop.f32.mrb[4].mxu1 }
  0xfe   :  { %v632_v56 = vpop.f32.mrb[5].mxu0  ;;  %v668_v57 = vpop.f32.mrb[5].mxu1 }
  0xff   :  { %v633_v58 = vadd.f32 %v632_v56, %v631_v54  ;;  %v634_v59 = vpop.f32.mrb[6].mxu0  ;;  %v927_v60 = vadd.f32 %v668_v57, %v667_v55  ;;  %v670_v61 = vpop.f32.mrb[6].mxu1 }
 0x100   :  { %v635_v62 = vpop.f32.mrb[7].mxu0  ;;  %v671_v63 = vpop.f32.mrb[7].mxu1 }
 0x101   :  { %v636_v0 = vadd.f32 %v635_v62, %v634_v59  ;;  %v929_v1 = vadd.f32 %v671_v63, %v670_v61  ;;  %v386_v3 = vadd.f32 %v633_v58, %v934_v2  ;;  %v434_v54 = vadd.f32 %v927_v60, %v934_v2 }
 0x102   :  { %v426_v58 = vadd.f32 %v923_v48, %v934_v2 }
 0x103   :  { %v389_v10 = vadd.f32 %v636_v0, %v934_v2  ;;  %v437_v63 = vadd.f32 %v929_v1, %v934_v2 }
 0x105   :  { %v637_v4 = vpop.f32.mrb[8].mxu0  ;;  %v689_v5 = vpop.f32.mrb[8].mxu1 }
 0x106   :  { %v483_v7 = vadd.f32 %v689_v5, %v386_v3  ;;  %v638_v8 = vpop.f32.mrb[9].mxu0  ;;  %v474_v9 = vpop.f32.mrb[9].mxu1  ;;  %v429_v5 = vadd.f32 %v925_v53, %v934_v2 }
 0x107   :  { %v639_v11 = vadd.f32 %v638_v8, %v637_v4  ;;  %v475_v12 = vadd.f32 %v474_v9, %v378_v6  ;;  %v640_v13 = vpop.f32.mrb[10].mxu0  ;;  %v690_v14 = vpop.f32.mrb[10].mxu1 }
 0x108   :  { %540 = vst.msk [vmem:[%s1023_s3 + $0x10] sm:$0xff] %vm537_vm1, %v483_v7  ;;  %v486_v16 = vadd.f32 %v690_v14, %v389_v10  ;;  %v641_v17 = vpop.f32.mrb[11].mxu0  ;;  %v477_v18 = vpop.f32.mrb[11].mxu1 }
 0x109   :  { %538 = vst.msk [vmem:[%s1023_s3] sm:$0xff] %vm537_vm1, %v475_v12  ;;  %v642_v19 = vadd.f32 %v641_v17, %v640_v13  ;;  %v478_v20 = vadd.f32 %v477_v18, %v381_v15  ;;  %v394_v23 = vadd.f32 %v639_v11, %v934_v2 }
 0x10a   :  { %541 = vst.msk [vmem:[%s1023_s3 + $0x18] sm:$0xff] %vm537_vm1, %v486_v16 }
 0x10b   :  { %539 = vst.msk [vmem:[%s1023_s3 + $0x8] sm:$0xff] %vm537_vm1, %v478_v20  ;;  %v397_v30 = vadd.f32 %v642_v19, %v934_v2 }
 0x10d   :  { %v643_v21 = vpop.f32.mrb[12].mxu0  ;;  %v693_v22 = vpop.f32.mrb[12].mxu1 }
 0x10e   :  { %v644_v24 = vpop.f32.mrb[13].mxu0  ;;  %v490_v25 = vpop.f32.mrb[13].mxu1 }
 0x10f   :  { %v645_v26 = vadd.f32 %v644_v24, %v643_v21  ;;  %v491_v27 = vadd.f32 %v490_v25, %v394_v23  ;;  %v646_v28 = vpop.f32.mrb[14].mxu0  ;;  %v694_v29 = vpop.f32.mrb[14].mxu1 }
 0x110   :  { %v647_v31 = vpop.f32.mrb[15].mxu0  ;;  %v493_v32 = vpop.f32.mrb[15].mxu1 }
 0x111   :  { %v402_v33 = vadd.f32 %v645_v26, %v934_v2  ;;  %542 = vst.msk [vmem:[%s1023_s3 + $0x20] sm:$0xff] %vm537_vm1, %v491_v27  ;;  %v648_v34 = vadd.f32 %v647_v31, %v646_v28  ;;  %v494_v35 = vadd.f32 %v493_v32, %v397_v30 }
 0x113   :  { %v499_v36 = vadd.f32 %v693_v22, %v402_v33  ;;  %v405_v37 = vadd.f32 %v648_v34, %v934_v2  ;;  %543 = vst.msk [vmem:[%s1023_s3 + $0x28] sm:$0xff] %vm537_vm1, %v494_v35 }
 0x115   :  { %544 = vst.msk [vmem:[%s1023_s3 + $0x30] sm:$0xff] %vm537_vm1, %v499_v36  ;;  %v502_v38 = vadd.f32 %v694_v29, %v405_v37  ;;  %v649_v39 = vpop.f32.mrb[16].mxu0  ;;  %v697_v40 = vpop.f32.mrb[16].mxu1 }
 0x116   :  { %v650_v41 = vpop.f32.mrb[17].mxu0  ;;  %v506_v42 = vpop.f32.mrb[17].mxu1 }
 0x117   :  { %545 = vst.msk [vmem:[%s1023_s3 + $0x38] sm:$0xff] %vm537_vm1, %v502_v38  ;;  %v651_v43 = vadd.f32 %v650_v41, %v649_v39  ;;  %v652_v44 = vpop.f32.mrb[18].mxu0  ;;  %v698_v45 = vpop.f32.mrb[18].mxu1 }
 0x118   :  { %v653_v46 = vpop.f32.mrb[19].mxu0  ;;  %v509_v47 = vpop.f32.mrb[19].mxu1 }
 0x119   :  { %v410_v49 = vadd.f32 %v651_v43, %v934_v2  ;;  %v654_v50 = vadd.f32 %v653_v46, %v652_v44 }
 0x11b   :  { %v507_v51 = vadd.f32 %v506_v42, %v410_v49  ;;  %v413_v52 = vadd.f32 %v654_v50, %v934_v2 }
 0x11d   :  { %546 = vst.msk [vmem:[%s1023_s3 + $0x40] sm:$0xff] %vm537_vm1, %v507_v51  ;;  %v510_v55 = vadd.f32 %v509_v47, %v413_v52  ;;  %v655_v56 = vpop.f32.mrb[20].mxu0  ;;  %v701_v57 = vpop.f32.mrb[20].mxu1 }
 0x11e   :  { %v531_v59 = vadd.f32 %v701_v57, %v434_v54  ;;  %v656_v61 = vpop.f32.mrb[21].mxu0  ;;  %v522_v62 = vpop.f32.mrb[21].mxu1 }
 0x11f   :  { %547 = vst.msk [vmem:[%s1023_s3 + $0x48] sm:$0xff] %vm537_vm1, %v510_v55  ;;  %v657_v60 = vadd.f32 %v656_v61, %v655_v56  ;;  %v523_v0 = vadd.f32 %v522_v62, %v426_v58  ;;  %v658_v3 = vpop.f32.mrb[22].mxu0  ;;  %v702_v4 = vpop.f32.mrb[22].mxu1 }
 0x120   :  { %552 = vst.msk [vmem:[%s1023_s3 + $0x70] sm:$0xff] %vm537_vm1, %v531_v59  ;;  %v534_v48 = vadd.f32 %v702_v4, %v437_v63  ;;  %v659_v6 = vpop.f32.mrb[23].mxu0  ;;  %v525_v1 = vpop.f32.mrb[23].mxu1 }
 0x121   :  { %v418_v7 = vadd.f32 %v657_v60, %v934_v2  ;;  %550 = vst.msk [vmem:[%s1023_s3 + $0x60] sm:$0xff] %vm537_vm1, %v523_v0  ;;  %v660_v8 = vadd.f32 %v659_v6, %v658_v3  ;;  %v526_v9 = vadd.f32 %v525_v1, %v429_v5 }
 0x122   :  { %553 = vst.msk [vmem:[%s1023_s3 + $0x78] sm:$0xff] %vm537_vm1, %v534_v48 }
 0x123   :  { %v515_v53 = vadd.f32 %v697_v40, %v418_v7  ;;  %v421_v10 = vadd.f32 %v660_v8, %v934_v2  ;;  %551 = vst.msk [vmem:[%s1023_s3 + $0x68] sm:$0xff] %vm537_vm1, %v526_v9 }
 0x125   :  { %548 = vst.msk [vmem:[%s1023_s3 + $0x50] sm:$0xff] %vm537_vm1, %v515_v53  ;;  %v518_v11 = vadd.f32 %v698_v45, %v421_v10 }
 0x127   :  { %549 = vst.msk [vmem:[%s1023_s3 + $0x58] sm:$0xff] %vm537_vm1, %v518_v11 }

// kernel: conv_vae_forward.7
= control target key start
LH: loop header
LB: loop body
LE: loop exit
PB: predicated region body
PF: predicated region fallthrough
CT: control target
= control target key end

     0   :  { %s8314_s0 = inlined_call_operand.vmem [shape: bf16[8,1024], index: 0, kind: input, shape index: {}]   ;;  %s8315_s1 = inlined_call_operand.vmem [shape: f32[8,8], index: 1, kind: input, shape index: {}]   ;;  %s8316_s2 = inlined_call_operand.vmem [shape: bf16[1024,512], index: 2, kind: input, shape index: {}]   ;;  %s8317_s3 = inlined_call_operand.vmem [shape: f32[1,512], index: 3, kind: input, shape index: {}]   ;;  %s8318_s4 = inlined_call_operand.vmem [shape: bf16[512,256], index: 4, kind: input, shape index: {}]   ;;  %s8319_s5 = inlined_call_operand.vmem [shape: f32[1,256], index: 5, kind: input, shape index: {}]   ;;  %s8320_s6 = inlined_call_operand.vmem [shape: bf16[256,8], index: 6, kind: input, shape index: {}]   ;;  %s8321_s7 = inlined_call_operand.vmem [shape: f32[1,8], index: 7, kind: input, shape index: {}]   ;;  %s8322_s8 = inlined_call_operand.vmem [shape: bf16[256,8], index: 8, kind: input, shape index: {}]   ;;  %s8323_s9 = inlined_call_operand.vmem [shape: f32[1,8], index: 9, kind: input, shape index: {}]   ;;  %s8324_s10 = inlined_call_operand.vmem [shape: bf16[8,256], index: 10, kind: input, shape index: {}]   ;;  %s8325_s11 = inlined_call_operand.vmem [shape: f32[1,256], index: 11, kind: input, shape index: {}]   ;;  %s8326_s12 = inlined_call_operand.vmem [shape: bf16[256,512], index: 12, kind: input, shape index: {}]   ;;  %s8327_s13 = inlined_call_operand.vmem [shape: f32[1,512], index: 13, kind: input, shape index: {}]   ;;  %s8328_s14 = inlined_call_operand.hbm [shape: bf16[512,1024], index: 14, kind: input, shape index: {}]   ;;  %s8329_s15 = inlined_call_operand.vmem [shape: f32[1,1024], index: 15, kind: input, shape index: {}]   ;;  %s8330_s16 = inlined_call_operand.vmem [shape: f32[8,1024], index: 16, kind: output, shape index: {0}]   ;;  %s8331_s17 = inlined_call_operand.vmem [shape: f32[8,8], index: 17, kind: output, shape index: {1}]   ;;  %s8332_s18 = inlined_call_operand.vmem [shape: f32[8,8], index: 18, kind: output, shape index: {2}]  }
   0x1   :  { %8335 = sst [smem:[#allocation5_spill]] %s8314_s0 }
   0x2   :  { %8336 = sst [smem:[#allocation6_spill]] %s8315_s1 }
   0x3   :  { %8337 = sst [smem:[#allocation7_spill]] %s8316_s2 }
   0x4   :  { %24 = vsyncpa [#allocation3], 0  ;;  %s6789_s27 = smov [#allocation2]   ;;  %s6765_s0 = scalar_lea.hbm %s8328_s14, 32768 }
   0x5   :  { %s58_s28 = sshll.u32 %s6789_s27, 4  ;;  %p6766_p0 = scmp.ne.s32.totalorder %s8328_s14, %s6765_s0  ;;  %s59_s28 = int_to_ptr.vmem [resolvable:$true] %s58_s28 }
   0x6   :  { %p6769_p1 = scmp.lt.u32.totalorder %s6765_s0, %s8328_s14 }
   0x8   :  { %p6771_p2 = pnand %p6769_p1, %p6766_p0 }
   0xa   :  { %6774 = shalt.err (!%p6771_p2)
}
   0xb   :  { %s6775_s22 = scalar_lea.vmem %s59_s28, 32768  ;;  %p6780_p4 = scmp.lt.s32.totalorder %s59_s28, %s59_s28 }
   0xc   :  { %p6776_p3 = scmp.ne.s32.totalorder %s59_s28, %s6775_s22  ;;  %p6781_p5 = scmp.lt.s32.totalorder %s6775_s22, %s6775_s22 }
   0xe   :  { %p6782_p6 = por %p6781_p5, %p6780_p4 }
  0x10   :  { %p6783_p7 = pnand %p6782_p6, %p6776_p3 }
  0x12   :  { %6786 = shalt.err (!%p6783_p7)
}
  0x13   :  { %s6790_s2 = smov 512   ;;  %s6791_s23 = smov 32  }
  0x14   :  { %64 = dma.hbm_to_vmem [thread:$0]  %s8328_s14, 32768, %s59_s28, [#allocation3], %s6790_s2, %s6790_s2, %s6791_s23  }
  0x15   :  { %6787 = dma.done.wait [#allocation3], 32768  }
  0x16   :  { %6788 = vsyncadd [#allocation3], 4294934528  ;;  %s8338_s29 = sld [smem:[#allocation7_spill]]  ;;  %s8339_s19 = sld [smem:[#allocation5_spill]]  ;;  %vm2864_vm4 = vcmask 1043456   ;;  %vm2860_vm5 = vcmask 64512  }
  0x17   :  { %s8340_s2 = sld [smem:[#allocation6_spill]] }
  0x1c   :  { %v6145_v0 = vld [vmem:[%s8338_s29 + $0x4] ss:$16 sps:$4 sm:$0xff]   ;;  %v6147_v1 = vld [vmem:[%s8338_s29 + $0xc] ss:$16 sps:$4 sm:$0xff]   ;;  %v6149_v2 = vld [vmem:[%s8338_s29] ss:$16 sps:$4 sm:$0xff]  }
  0x1d   :  { %1661 = vmatprep.subr.bf16.mxu0 %v6145_v0  ;;  %v6150_v3 = vld [vmem:[%s8338_s29 + $0x8] ss:$16 sps:$4 sm:$0xff]   ;;  %1825 = vmatprep.subr.bf16.mxu1 %v6147_v1  ;;  %v6151_v4 = vld [vmem:[%s8338_s29 + $0x24] ss:$16 sps:$4 sm:$0xff]   ;;  %v6153_v5 = vld [vmem:[%s8338_s29 + $0x2c] ss:$16 sps:$4 sm:$0xff]  }
  0x1e   :  { %1662 = vmatpush1.bf16.msra.mxu0 %v6149_v2  ;;  %1826 = vmatpush1.bf16.msra.mxu1 %v6150_v3  ;;  %v6155_v6 = vld [vmem:[%s8338_s29 + $0x20] ss:$16 sps:$4 sm:$0xff]   ;;  %v6156_v7 = vld [vmem:[%s8338_s29 + $0x28] ss:$16 sps:$4 sm:$0xff]   ;;  %v6157_v8 = vld [vmem:[%s8338_s29 + $0x44] ss:$16 sps:$4 sm:$0xff]  }
  0x1f   :  { %1663 = vmatprep.subr.bf16.mxu0 %v6151_v4  ;;  %1827 = vmatprep.subr.bf16.mxu1 %v6153_v5  ;;  %v6159_v9 = vld [vmem:[%s8338_s29 + $0x4c] ss:$16 sps:$4 sm:$0xff]   ;;  %v6161_v10 = vld [vmem:[%s8338_s29 + $0x40] ss:$16 sps:$4 sm:$0xff]   ;;  %v6162_v11 = vld [vmem:[%s8338_s29 + $0x48] ss:$16 sps:$4 sm:$0xff]  }
  0x20   :  { %v6163_v12 = vld [vmem:[%s8338_s29 + $0x64] ss:$16 sps:$4 sm:$0xff]   ;;  %v6165_v13 = vld [vmem:[%s8338_s29 + $0x6c] ss:$16 sps:$4 sm:$0xff]   ;;  %v6167_v14 = vld [vmem:[%s8338_s29 + $0x60] ss:$16 sps:$4 sm:$0xff]  }
  0x21   :  { %v6168_v15 = vld [vmem:[%s8338_s29 + $0x68] ss:$16 sps:$4 sm:$0xff]   ;;  %v6169_v16 = vld [vmem:[%s8338_s29 + $0x84] ss:$16 sps:$4 sm:$0xff]   ;;  %v6171_v17 = vld [vmem:[%s8338_s29 + $0x8c] ss:$16 sps:$4 sm:$0xff]  }
  0x22   :  { %1664 = vmatpush1.bf16.msra.mxu0 %v6155_v6  ;;  %1828 = vmatpush1.bf16.msra.mxu1 %v6156_v7  ;;  %v6173_v18 = vld [vmem:[%s8338_s29 + $0x80] ss:$16 sps:$4 sm:$0xff]   ;;  %v6174_v19 = vld [vmem:[%s8338_s29 + $0x88] ss:$16 sps:$4 sm:$0xff]   ;;  %v6175_v20 = vld [vmem:[%s8338_s29 + $0xa4] ss:$16 sps:$4 sm:$0xff]  }
  0x23   :  { %1665 = vmatprep.subr.bf16.mxu0 %v6157_v8  ;;  %1829 = vmatprep.subr.bf16.mxu1 %v6159_v9  ;;  %v6177_v21 = vld [vmem:[%s8338_s29 + $0xac] ss:$16 sps:$4 sm:$0xff]   ;;  %v6179_v22 = vld [vmem:[%s8338_s29 + $0xa0] ss:$16 sps:$4 sm:$0xff]   ;;  %v6180_v23 = vld [vmem:[%s8338_s29 + $0xa8] ss:$16 sps:$4 sm:$0xff]  }
  0x24   :  { %v6181_v24 = vld [vmem:[%s8338_s29 + $0xc4] ss:$16 sps:$4 sm:$0xff]   ;;  %v6183_v25 = vld [vmem:[%s8338_s29 + $0xcc] ss:$16 sps:$4 sm:$0xff]   ;;  %v6185_v26 = vld [vmem:[%s8338_s29 + $0xc0] ss:$16 sps:$4 sm:$0xff]  }
  0x25   :  { %v6186_v27 = vld [vmem:[%s8338_s29 + $0xc8] ss:$16 sps:$4 sm:$0xff]   ;;  %v6187_v28 = vld [vmem:[%s8338_s29 + $0xe4] ss:$16 sps:$4 sm:$0xff]   ;;  %v6189_v29 = vld [vmem:[%s8338_s29 + $0xec] ss:$16 sps:$4 sm:$0xff]  }
  0x26   :  { %1666 = vmatpush1.bf16.msra.mxu0 %v6161_v10  ;;  %1830 = vmatpush1.bf16.msra.mxu1 %v6162_v11  ;;  %v6191_v30 = vld [vmem:[%s8338_s29 + $0xe0] ss:$16 sps:$4 sm:$0xff]   ;;  %v6192_v31 = vld [vmem:[%s8338_s29 + $0xe8] ss:$16 sps:$4 sm:$0xff]   ;;  %v6193_v32 = vld [vmem:[%s8338_s29 + $0x104] ss:$16 sps:$4 sm:$0xff]  }
  0x27   :  { %1667 = vmatprep.subr.bf16.mxu0 %v6163_v12  ;;  %1831 = vmatprep.subr.bf16.mxu1 %v6165_v13  ;;  %v6195_v33 = vld [vmem:[%s8338_s29 + $0x10c] ss:$16 sps:$4 sm:$0xff]   ;;  %v6197_v34 = vld [vmem:[%s8338_s29 + $0x100] ss:$16 sps:$4 sm:$0xff]   ;;  %v6198_v35 = vld [vmem:[%s8338_s29 + $0x108] ss:$16 sps:$4 sm:$0xff]  }
  0x28   :  { %v6199_v36 = vld [vmem:[%s8338_s29 + $0x124] ss:$16 sps:$4 sm:$0xff]   ;;  %v6201_v37 = vld [vmem:[%s8338_s29 + $0x12c] ss:$16 sps:$4 sm:$0xff]   ;;  %v6203_v38 = vld [vmem:[%s8338_s29 + $0x120] ss:$16 sps:$4 sm:$0xff]  }
  0x29   :  { %v6204_v39 = vld [vmem:[%s8338_s29 + $0x128] ss:$16 sps:$4 sm:$0xff]   ;;  %v6205_v40 = vld [vmem:[%s8338_s29 + $0x144] ss:$16 sps:$4 sm:$0xff]   ;;  %v6207_v41 = vld [vmem:[%s8338_s29 + $0x14c] ss:$16 sps:$4 sm:$0xff]  }
  0x2a   :  { %1668 = vmatpush1.bf16.msra.mxu0 %v6167_v14  ;;  %1832 = vmatpush1.bf16.msra.mxu1 %v6168_v15  ;;  %v6209_v42 = vld [vmem:[%s8338_s29 + $0x140] ss:$16 sps:$4 sm:$0xff]   ;;  %v6210_v43 = vld [vmem:[%s8338_s29 + $0x148] ss:$16 sps:$4 sm:$0xff]   ;;  %v6211_v44 = vld [vmem:[%s8338_s29 + $0x164] ss:$16 sps:$4 sm:$0xff]  }
  0x2b   :  { %1669 = vmatprep.subr.bf16.mxu0 %v6169_v16  ;;  %1833 = vmatprep.subr.bf16.mxu1 %v6171_v17  ;;  %v6213_v45 = vld [vmem:[%s8338_s29 + $0x16c] ss:$16 sps:$4 sm:$0xff]   ;;  %v71_v46 = vld [vmem:[%s8339_s19] sm:$0xff]  ;;  %v6216_v49 = vld [vmem:[%s8338_s29 + $0x168] ss:$16 sps:$4 sm:$0xff]  }
  0x2c   :  { %v6215_v47 = vld [vmem:[%s8338_s29 + $0x160] ss:$16 sps:$4 sm:$0xff]   ;;  %v5354_v48 = vcombine.high %v71_v46, %v71_v46  ;;  %v6217_v50 = vld [vmem:[%s8338_s29 + $0x184] ss:$16 sps:$4 sm:$0xff]   ;;  %v6219_v51 = vld [vmem:[%s8338_s29 + $0x18c] ss:$16 sps:$4 sm:$0xff]   ;;  %v5353_v4 = vcombine.low %v71_v46, %v71_v46 }
  0x2d   :  { %v6221_v52 = vld [vmem:[%s8338_s29 + $0x180] ss:$16 sps:$4 sm:$0xff]   ;;  %v6222_v53 = vld [vmem:[%s8338_s29 + $0x188] ss:$16 sps:$4 sm:$0xff]   ;;  %v6223_v54 = vld [vmem:[%s8338_s29 + $0x1a4] ss:$16 sps:$4 sm:$0xff]  }
  0x2e   :  { %1670 = vmatpush1.bf16.msra.mxu0 %v6173_v18  ;;  %1834 = vmatpush1.bf16.msra.mxu1 %v6174_v19  ;;  %v6225_v55 = vld [vmem:[%s8338_s29 + $0x1ac] ss:$16 sps:$4 sm:$0xff]   ;;  %v6227_v56 = vld [vmem:[%s8338_s29 + $0x1a0] ss:$16 sps:$4 sm:$0xff]   ;;  %v6228_v57 = vld [vmem:[%s8338_s29 + $0x1a8] ss:$16 sps:$4 sm:$0xff]  }
  0x2f   :  { %1671 = vmatprep.subr.bf16.mxu0 %v6175_v20  ;;  %1835 = vmatprep.subr.bf16.mxu1 %v6177_v21  ;;  %v6229_v58 = vld [vmem:[%s8338_s29 + $0x1c4] ss:$16 sps:$4 sm:$0xff]   ;;  %v6231_v59 = vld [vmem:[%s8338_s29 + $0x1cc] ss:$16 sps:$4 sm:$0xff]   ;;  %v6233_v60 = vld [vmem:[%s8338_s29 + $0x1c0] ss:$16 sps:$4 sm:$0xff]  }
  0x30   :  { %1693 = vmatprep.mubr.bf16.mxu0 %v5354_v48  ;;  %1857 = vmatprep.mubr.bf16.mxu1 %v5354_v48  ;;  %v6234_v61 = vld [vmem:[%s8338_s29 + $0x1c8] ss:$16 sps:$4 sm:$0xff]   ;;  %v6235_v62 = vld [vmem:[%s8338_s29 + $0x1e4] ss:$16 sps:$4 sm:$0xff]   ;;  %v6237_v63 = vld [vmem:[%s8338_s29 + $0x1ec] ss:$16 sps:$4 sm:$0xff]  }
  0x31   :  { %v6239_v0 = vld [vmem:[%s8338_s29 + $0x1e0] ss:$16 sps:$4 sm:$0xff]   ;;  %v6240_v1 = vld [vmem:[%s8338_s29 + $0x1e8] ss:$16 sps:$4 sm:$0xff]   ;;  %v6245_v2 = vld [vmem:[%s8338_s29 + $0x204] ss:$16 sps:$4 sm:$0xff]  }
  0x32   :  { %1672 = vmatpush1.bf16.msra.mxu0 %v6179_v22  ;;  %1836 = vmatpush1.bf16.msra.mxu1 %v6180_v23  ;;  %v6248_v3 = vld [vmem:[%s8338_s29 + $0x20c] ss:$16 sps:$4 sm:$0xff]   ;;  %v6243_v5 = vld [vmem:[%s8338_s29 + $0x200] ss:$16 sps:$4 sm:$0xff]   ;;  %v6246_v6 = vld [vmem:[%s8338_s29 + $0x208] ss:$16 sps:$4 sm:$0xff]  }
  0x33   :  { %1673 = vmatprep.subr.bf16.mxu0 %v6181_v24  ;;  %1837 = vmatprep.subr.bf16.mxu1 %v6183_v25  ;;  %v6251_v7 = vld [vmem:[%s8338_s29 + $0x224] ss:$16 sps:$4 sm:$0xff]   ;;  %v6254_v8 = vld [vmem:[%s8338_s29 + $0x22c] ss:$16 sps:$4 sm:$0xff]   ;;  %v6249_v9 = vld [vmem:[%s8338_s29 + $0x220] ss:$16 sps:$4 sm:$0xff]  }
  0x34   :  { %v6252_v10 = vld [vmem:[%s8338_s29 + $0x228] ss:$16 sps:$4 sm:$0xff]   ;;  %v6257_v11 = vld [vmem:[%s8338_s29 + $0x244] ss:$16 sps:$4 sm:$0xff]   ;;  %v6260_v12 = vld [vmem:[%s8338_s29 + $0x24c] ss:$16 sps:$4 sm:$0xff]  }
  0x35   :  { %v6255_v13 = vld [vmem:[%s8338_s29 + $0x240] ss:$16 sps:$4 sm:$0xff]   ;;  %v6258_v14 = vld [vmem:[%s8338_s29 + $0x248] ss:$16 sps:$4 sm:$0xff]   ;;  %v6263_v15 = vld [vmem:[%s8338_s29 + $0x264] ss:$16 sps:$4 sm:$0xff]  }
  0x36   :  { %1674 = vmatpush1.bf16.msra.mxu0 %v6185_v26  ;;  %1838 = vmatpush1.bf16.msra.mxu1 %v6186_v27  ;;  %v6266_v16 = vld [vmem:[%s8338_s29 + $0x26c] ss:$16 sps:$4 sm:$0xff]   ;;  %v6261_v17 = vld [vmem:[%s8338_s29 + $0x260] ss:$16 sps:$4 sm:$0xff]   ;;  %v6264_v18 = vld [vmem:[%s8338_s29 + $0x268] ss:$16 sps:$4 sm:$0xff]  }
  0x37   :  { %1675 = vmatprep.subr.bf16.mxu0 %v6187_v28  ;;  %1839 = vmatprep.subr.bf16.mxu1 %v6189_v29  ;;  %v6269_v19 = vld [vmem:[%s8338_s29 + $0x284] ss:$16 sps:$4 sm:$0xff]   ;;  %v6272_v20 = vld [vmem:[%s8338_s29 + $0x28c] ss:$16 sps:$4 sm:$0xff]   ;;  %v6267_v21 = vld [vmem:[%s8338_s29 + $0x280] ss:$16 sps:$4 sm:$0xff]  }
  0x38   :  { %v6270_v22 = vld [vmem:[%s8338_s29 + $0x288] ss:$16 sps:$4 sm:$0xff]   ;;  %v6275_v23 = vld [vmem:[%s8338_s29 + $0x2a4] ss:$16 sps:$4 sm:$0xff]   ;;  %v6278_v24 = vld [vmem:[%s8338_s29 + $0x2ac] ss:$16 sps:$4 sm:$0xff]  }
  0x39   :  { %v6273_v25 = vld [vmem:[%s8338_s29 + $0x2a0] ss:$16 sps:$4 sm:$0xff]   ;;  %v6276_v26 = vld [vmem:[%s8338_s29 + $0x2a8] ss:$16 sps:$4 sm:$0xff]   ;;  %v6281_v27 = vld [vmem:[%s8338_s29 + $0x2c4] ss:$16 sps:$4 sm:$0xff]  }
  0x3a   :  { %1676 = vmatpush1.bf16.msra.mxu0 %v6191_v30  ;;  %1840 = vmatpush1.bf16.msra.mxu1 %v6192_v31  ;;  %v6284_v28 = vld [vmem:[%s8338_s29 + $0x2cc] ss:$16 sps:$4 sm:$0xff]   ;;  %v6279_v31 = vld [vmem:[%s8338_s29 + $0x2c0] ss:$16 sps:$4 sm:$0xff]   ;;  %v6306_v48 = vld [vmem:[%s8338_s29 + $0x348] ss:$16 sps:$4 sm:$0xff]  }
  0x3b   :  { %1677 = vmatprep.subr.bf16.mxu0 %v6193_v32  ;;  %1841 = vmatprep.subr.bf16.mxu1 %v6195_v33  ;;  %v7176_v29 = vld [vmem:[%s8339_s19 + $0x8] sm:$0xff]  ;;  %v6287_v33 = vld [vmem:[%s8338_s29 + $0x2e4] ss:$16 sps:$4 sm:$0xff]  }
  0x3c   :  { %v5356_v30 = vcombine.high %v7176_v29, %v7176_v29  ;;  %v6282_v32 = vld [vmem:[%s8338_s29 + $0x2c8] ss:$16 sps:$4 sm:$0xff]   ;;  %v6308_v46 = vld [vmem:[%s8338_s29 + $0x34c] ss:$16 sps:$4 sm:$0xff]  }
  0x3e   :  { %1678 = vmatpush1.bf16.msra.mxu0 %v6197_v34  ;;  %1842 = vmatpush1.bf16.msra.mxu1 %v6198_v35  ;;  %v6290_v34 = vld [vmem:[%s8338_s29 + $0x2ec] ss:$16 sps:$4 sm:$0xff]   ;;  %v6285_v35 = vld [vmem:[%s8338_s29 + $0x2e0] ss:$16 sps:$4 sm:$0xff]  }
  0x3f   :  { %1679 = vmatprep.subr.bf16.mxu0 %v6199_v36  ;;  %1843 = vmatprep.subr.bf16.mxu1 %v6201_v37  ;;  %v6288_v36 = vld [vmem:[%s8338_s29 + $0x2e8] ss:$16 sps:$4 sm:$0xff]   ;;  %v6293_v37 = vld [vmem:[%s8338_s29 + $0x304] ss:$16 sps:$4 sm:$0xff]  }
  0x42   :  { %1680 = vmatpush1.bf16.msra.mxu0 %v6203_v38  ;;  %1844 = vmatpush1.bf16.msra.mxu1 %v6204_v39  ;;  %v6296_v38 = vld [vmem:[%s8338_s29 + $0x30c] ss:$16 sps:$4 sm:$0xff]   ;;  %v6291_v39 = vld [vmem:[%s8338_s29 + $0x300] ss:$16 sps:$4 sm:$0xff]  }
  0x43   :  { %1681 = vmatprep.subr.bf16.mxu0 %v6205_v40  ;;  %1845 = vmatprep.subr.bf16.mxu1 %v6207_v41  ;;  %v6294_v40 = vld [vmem:[%s8338_s29 + $0x308] ss:$16 sps:$4 sm:$0xff]   ;;  %v6299_v41 = vld [vmem:[%s8338_s29 + $0x324] ss:$16 sps:$4 sm:$0xff]  }
  0x46   :  { %1682 = vmatpush1.bf16.msra.mxu0 %v6209_v42  ;;  %1846 = vmatpush1.bf16.msra.mxu1 %v6210_v43  ;;  %v6302_v42 = vld [vmem:[%s8338_s29 + $0x32c] ss:$16 sps:$4 sm:$0xff]   ;;  %v6297_v43 = vld [vmem:[%s8338_s29 + $0x320] ss:$16 sps:$4 sm:$0xff]  }
  0x47   :  { %1683 = vmatprep.subr.bf16.mxu0 %v6211_v44  ;;  %1847 = vmatprep.subr.bf16.mxu1 %v6213_v45  ;;  %v6300_v44 = vld [vmem:[%s8338_s29 + $0x328] ss:$16 sps:$4 sm:$0xff]   ;;  %v6305_v45 = vld [vmem:[%s8338_s29 + $0x344] ss:$16 sps:$4 sm:$0xff]  }
  0x4a   :  { %1684 = vmatpush1.bf16.msra.mxu0 %v6215_v47  ;;  %1848 = vmatpush1.bf16.msra.mxu1 %v6216_v49  ;;  %v6303_v47 = vld [vmem:[%s8338_s29 + $0x340] ss:$16 sps:$4 sm:$0xff]   ;;  %v6311_v49 = vld [vmem:[%s8338_s29 + $0x364] ss:$16 sps:$4 sm:$0xff]  }
  0x4b   :  { %1685 = vmatprep.subr.bf16.mxu0 %v6217_v50  ;;  %1849 = vmatprep.subr.bf16.mxu1 %v6219_v51  ;;  %v6314_v50 = vld [vmem:[%s8338_s29 + $0x36c] ss:$16 sps:$4 sm:$0xff]   ;;  %v6309_v51 = vld [vmem:[%s8338_s29 + $0x360] ss:$16 sps:$4 sm:$0xff]  }
  0x4e   :  { %1686 = vmatpush1.bf16.msra.mxu0 %v6221_v52  ;;  %1850 = vmatpush1.bf16.msra.mxu1 %v6222_v53  ;;  %v6312_v52 = vld [vmem:[%s8338_s29 + $0x368] ss:$16 sps:$4 sm:$0xff]   ;;  %v6317_v53 = vld [vmem:[%s8338_s29 + $0x384] ss:$16 sps:$4 sm:$0xff]  }
  0x4f   :  { %1687 = vmatprep.subr.bf16.mxu0 %v6223_v54  ;;  %1851 = vmatprep.subr.bf16.mxu1 %v6225_v55  ;;  %v6320_v54 = vld [vmem:[%s8338_s29 + $0x38c] ss:$16 sps:$4 sm:$0xff]   ;;  %v6315_v55 = vld [vmem:[%s8338_s29 + $0x380] ss:$16 sps:$4 sm:$0xff]  }
  0x52   :  { %1688 = vmatpush1.bf16.msra.mxu0 %v6227_v56  ;;  %1852 = vmatpush1.bf16.msra.mxu1 %v6228_v57  ;;  %v6318_v56 = vld [vmem:[%s8338_s29 + $0x388] ss:$16 sps:$4 sm:$0xff]   ;;  %v6323_v57 = vld [vmem:[%s8338_s29 + $0x3a4] ss:$16 sps:$4 sm:$0xff]  }
  0x53   :  { %1689 = vmatprep.subr.bf16.mxu0 %v6229_v58  ;;  %1853 = vmatprep.subr.bf16.mxu1 %v6231_v59  ;;  %v6326_v58 = vld [vmem:[%s8338_s29 + $0x3ac] ss:$16 sps:$4 sm:$0xff]   ;;  %v6321_v59 = vld [vmem:[%s8338_s29 + $0x3a0] ss:$16 sps:$4 sm:$0xff]  }
  0x56   :  { %1690 = vmatpush1.bf16.msra.mxu0 %v6233_v60  ;;  %1854 = vmatpush1.bf16.msra.mxu1 %v6234_v61  ;;  %v6324_v60 = vld [vmem:[%s8338_s29 + $0x3a8] ss:$16 sps:$4 sm:$0xff]   ;;  %v6329_v61 = vld [vmem:[%s8338_s29 + $0x3c4] ss:$16 sps:$4 sm:$0xff]  }
  0x57   :  { %1691 = vmatprep.subr.bf16.mxu0 %v6235_v62  ;;  %1855 = vmatprep.subr.bf16.mxu1 %v6237_v63  ;;  %v6332_v62 = vld [vmem:[%s8338_s29 + $0x3cc] ss:$16 sps:$4 sm:$0xff]   ;;  %v6327_v63 = vld [vmem:[%s8338_s29 + $0x3c0] ss:$16 sps:$4 sm:$0xff]  }
  0x5a   :  { %1692 = vmatpush1.bf16.msra.mxu0 %v6239_v0  ;;  %1856 = vmatpush1.bf16.msra.mxu1 %v6240_v1  ;;  %v6330_v0 = vld [vmem:[%s8338_s29 + $0x3c8] ss:$16 sps:$4 sm:$0xff]   ;;  %v6335_v1 = vld [vmem:[%s8338_s29 + $0x3e4] ss:$16 sps:$4 sm:$0xff]  }
  0x5b   :  { %1702 = vmatprep.subr.bf16.mxu0 %v6245_v2  ;;  %1866 = vmatprep.subr.bf16.mxu1 %v6248_v3  ;;  %v6338_v2 = vld [vmem:[%s8338_s29 + $0x3ec] ss:$16 sps:$4 sm:$0xff]   ;;  %v6333_v3 = vld [vmem:[%s8338_s29 + $0x3e0] ss:$16 sps:$4 sm:$0xff]  }
  0x5d   :  { %1694 = vmatmul.mubr.bf16.vlgmr.msra.gmra.mrb[0].mxu0 %v5353_v4  ;;  %1858 = vmatmul.mubr.bf16.vlgmr.msra.gmra.mrb[0].mxu1 %v5353_v4  ;;  %v6336_v4 = vld [vmem:[%s8338_s29 + $0x3e8] ss:$16 sps:$4 sm:$0xff]  }
  0x5e   :  { %1703 = vmatpush1.bf16.msra.mxu0 %v6243_v5  ;;  %1867 = vmatpush1.bf16.msra.mxu1 %v6246_v6  ;;  %v6343_v5 = vld [vmem:[%s8338_s29 + $0x404] ss:$16 sps:$4 sm:$0xff]   ;;  %v6346_v6 = vld [vmem:[%s8338_s29 + $0x40c] ss:$16 sps:$4 sm:$0xff]  }
  0x5f   :  { %1704 = vmatprep.subr.bf16.mxu0 %v6251_v7  ;;  %1868 = vmatprep.subr.bf16.mxu1 %v6254_v8  ;;  %v5355_v7 = vcombine.low %v7176_v29, %v7176_v29  ;;  %v6341_v8 = vld [vmem:[%s8338_s29 + $0x400] ss:$16 sps:$4 sm:$0xff]   ;;  %v6376_v29 = vld [vmem:[%s8338_s29 + $0x4ac] ss:$16 sps:$4 sm:$0xff]  }
  0x60   :  { %1734 = vmatprep.mubr.bf16.mxu0 %v5356_v30  ;;  %1898 = vmatprep.mubr.bf16.mxu1 %v5356_v30  ;;  %v6371_v30 = vld [vmem:[%s8338_s29 + $0x4a0] ss:$16 sps:$4 sm:$0xff]  }
  0x62   :  { %1705 = vmatpush1.bf16.msra.mxu0 %v6249_v9  ;;  %1869 = vmatpush1.bf16.msra.mxu1 %v6252_v10  ;;  %v6344_v9 = vld [vmem:[%s8338_s29 + $0x408] ss:$16 sps:$4 sm:$0xff]   ;;  %v6349_v10 = vld [vmem:[%s8338_s29 + $0x424] ss:$16 sps:$4 sm:$0xff]  }
  0x63   :  { %1706 = vmatprep.subr.bf16.mxu0 %v6257_v11  ;;  %1870 = vmatprep.subr.bf16.mxu1 %v6260_v12  ;;  %v7314_v11 = vld [vmem:[%s8339_s19 + $0x10] sm:$0xff]  ;;  %v6352_v12 = vld [vmem:[%s8338_s29 + $0x42c] ss:$16 sps:$4 sm:$0xff]  }
  0x66   :  { %1707 = vmatpush1.bf16.msra.mxu0 %v6255_v13  ;;  %1871 = vmatpush1.bf16.msra.mxu1 %v6258_v14  ;;  %v5358_v13 = vcombine.high %v7314_v11, %v7314_v11  ;;  %v6347_v14 = vld [vmem:[%s8338_s29 + $0x420] ss:$16 sps:$4 sm:$0xff]  }
  0x67   :  { %1708 = vmatprep.subr.bf16.mxu0 %v6263_v15  ;;  %1872 = vmatprep.subr.bf16.mxu1 %v6266_v16  ;;  %v6350_v15 = vld [vmem:[%s8338_s29 + $0x428] ss:$16 sps:$4 sm:$0xff]   ;;  %v6355_v16 = vld [vmem:[%s8338_s29 + $0x444] ss:$16 sps:$4 sm:$0xff]  }
  0x6a   :  { %1709 = vmatpush1.bf16.msra.mxu0 %v6261_v17  ;;  %1873 = vmatpush1.bf16.msra.mxu1 %v6264_v18  ;;  %v6358_v17 = vld [vmem:[%s8338_s29 + $0x44c] ss:$16 sps:$4 sm:$0xff]   ;;  %v6353_v18 = vld [vmem:[%s8338_s29 + $0x440] ss:$16 sps:$4 sm:$0xff]  }
  0x6b   :  { %1710 = vmatprep.subr.bf16.mxu0 %v6269_v19  ;;  %1874 = vmatprep.subr.bf16.mxu1 %v6272_v20  ;;  %v6356_v19 = vld [vmem:[%s8338_s29 + $0x448] ss:$16 sps:$4 sm:$0xff]   ;;  %v6361_v20 = vld [vmem:[%s8338_s29 + $0x464] ss:$16 sps:$4 sm:$0xff]  }
  0x6e   :  { %1711 = vmatpush1.bf16.msra.mxu0 %v6267_v21  ;;  %1875 = vmatpush1.bf16.msra.mxu1 %v6270_v22  ;;  %v6364_v21 = vld [vmem:[%s8338_s29 + $0x46c] ss:$16 sps:$4 sm:$0xff]   ;;  %v6359_v22 = vld [vmem:[%s8338_s29 + $0x460] ss:$16 sps:$4 sm:$0xff]  }
  0x6f   :  { %1712 = vmatprep.subr.bf16.mxu0 %v6275_v23  ;;  %1876 = vmatprep.subr.bf16.mxu1 %v6278_v24  ;;  %v6362_v23 = vld [vmem:[%s8338_s29 + $0x468] ss:$16 sps:$4 sm:$0xff]   ;;  %v6367_v24 = vld [vmem:[%s8338_s29 + $0x484] ss:$16 sps:$4 sm:$0xff]  }
  0x72   :  { %1713 = vmatpush1.bf16.msra.mxu0 %v6273_v25  ;;  %1877 = vmatpush1.bf16.msra.mxu1 %v6276_v26  ;;  %v6370_v25 = vld [vmem:[%s8338_s29 + $0x48c] ss:$16 sps:$4 sm:$0xff]   ;;  %v6365_v26 = vld [vmem:[%s8338_s29 + $0x480] ss:$16 sps:$4 sm:$0xff]  }
  0x73   :  { %1714 = vmatprep.subr.bf16.mxu0 %v6281_v27  ;;  %1878 = vmatprep.subr.bf16.mxu1 %v6284_v28  ;;  %v6368_v27 = vld [vmem:[%s8338_s29 + $0x488] ss:$16 sps:$4 sm:$0xff]   ;;  %v6373_v28 = vld [vmem:[%s8338_s29 + $0x4a4] ss:$16 sps:$4 sm:$0xff]  }
  0x76   :  { %1715 = vmatpush1.bf16.msra.mxu0 %v6279_v31  ;;  %1879 = vmatpush1.bf16.msra.mxu1 %v6282_v32  ;;  %v6374_v31 = vld [vmem:[%s8338_s29 + $0x4a8] ss:$16 sps:$4 sm:$0xff]   ;;  %v6379_v32 = vld [vmem:[%s8338_s29 + $0x4c4] ss:$16 sps:$4 sm:$0xff]  }
  0x77   :  { %1716 = vmatprep.subr.bf16.mxu0 %v6287_v33  ;;  %1880 = vmatprep.subr.bf16.mxu1 %v6290_v34  ;;  %v6382_v33 = vld [vmem:[%s8338_s29 + $0x4cc] ss:$16 sps:$4 sm:$0xff]   ;;  %v6377_v34 = vld [vmem:[%s8338_s29 + $0x4c0] ss:$16 sps:$4 sm:$0xff]  }
  0x7a   :  { %1717 = vmatpush1.bf16.msra.mxu0 %v6285_v35  ;;  %1881 = vmatpush1.bf16.msra.mxu1 %v6288_v36  ;;  %v6380_v35 = vld [vmem:[%s8338_s29 + $0x4c8] ss:$16 sps:$4 sm:$0xff]   ;;  %v6385_v36 = vld [vmem:[%s8338_s29 + $0x4e4] ss:$16 sps:$4 sm:$0xff]  }
  0x7b   :  { %1718 = vmatprep.subr.bf16.mxu0 %v6293_v37  ;;  %1882 = vmatprep.subr.bf16.mxu1 %v6296_v38  ;;  %v6388_v37 = vld [vmem:[%s8338_s29 + $0x4ec] ss:$16 sps:$4 sm:$0xff]   ;;  %v6383_v38 = vld [vmem:[%s8338_s29 + $0x4e0] ss:$16 sps:$4 sm:$0xff]  }
  0x7e   :  { %1719 = vmatpush1.bf16.msra.mxu0 %v6291_v39  ;;  %1883 = vmatpush1.bf16.msra.mxu1 %v6294_v40  ;;  %v6386_v39 = vld [vmem:[%s8338_s29 + $0x4e8] ss:$16 sps:$4 sm:$0xff]   ;;  %v6391_v40 = vld [vmem:[%s8338_s29 + $0x504] ss:$16 sps:$4 sm:$0xff]  }
  0x7f   :  { %1720 = vmatprep.subr.bf16.mxu0 %v6299_v41  ;;  %1884 = vmatprep.subr.bf16.mxu1 %v6302_v42  ;;  %v6394_v41 = vld [vmem:[%s8338_s29 + $0x50c] ss:$16 sps:$4 sm:$0xff]   ;;  %v6389_v42 = vld [vmem:[%s8338_s29 + $0x500] ss:$16 sps:$4 sm:$0xff]  }
  0x82   :  { %1721 = vmatpush1.bf16.msra.mxu0 %v6297_v43  ;;  %1885 = vmatpush1.bf16.msra.mxu1 %v6300_v44  ;;  %v6392_v43 = vld [vmem:[%s8338_s29 + $0x508] ss:$16 sps:$4 sm:$0xff]   ;;  %v6397_v44 = vld [vmem:[%s8338_s29 + $0x524] ss:$16 sps:$4 sm:$0xff]  }
  0x83   :  { %1722 = vmatprep.subr.bf16.mxu0 %v6305_v45  ;;  %1886 = vmatprep.subr.bf16.mxu1 %v6308_v46  ;;  %v6400_v45 = vld [vmem:[%s8338_s29 + $0x52c] ss:$16 sps:$4 sm:$0xff]   ;;  %v6395_v46 = vld [vmem:[%s8338_s29 + $0x520] ss:$16 sps:$4 sm:$0xff]  }
  0x86   :  { %1723 = vmatpush1.bf16.msra.mxu0 %v6303_v47  ;;  %1887 = vmatpush1.bf16.msra.mxu1 %v6306_v48  ;;  %v6398_v47 = vld [vmem:[%s8338_s29 + $0x528] ss:$16 sps:$4 sm:$0xff]   ;;  %v6403_v48 = vld [vmem:[%s8338_s29 + $0x544] ss:$16 sps:$4 sm:$0xff]  }
  0x87   :  { %1724 = vmatprep.subr.bf16.mxu0 %v6311_v49  ;;  %1888 = vmatprep.subr.bf16.mxu1 %v6314_v50  ;;  %v6406_v49 = vld [vmem:[%s8338_s29 + $0x54c] ss:$16 sps:$4 sm:$0xff]   ;;  %v6401_v50 = vld [vmem:[%s8338_s29 + $0x540] ss:$16 sps:$4 sm:$0xff]  }
  0x8a   :  { %1725 = vmatpush1.bf16.msra.mxu0 %v6309_v51  ;;  %1889 = vmatpush1.bf16.msra.mxu1 %v6312_v52  ;;  %v6404_v51 = vld [vmem:[%s8338_s29 + $0x548] ss:$16 sps:$4 sm:$0xff]   ;;  %v6409_v52 = vld [vmem:[%s8338_s29 + $0x564] ss:$16 sps:$4 sm:$0xff]  }
  0x8b   :  { %1726 = vmatprep.subr.bf16.mxu0 %v6317_v53  ;;  %1890 = vmatprep.subr.bf16.mxu1 %v6320_v54  ;;  %v6412_v53 = vld [vmem:[%s8338_s29 + $0x56c] ss:$16 sps:$4 sm:$0xff]   ;;  %v6407_v54 = vld [vmem:[%s8338_s29 + $0x560] ss:$16 sps:$4 sm:$0xff]  }
  0x8e   :  { %1727 = vmatpush1.bf16.msra.mxu0 %v6315_v55  ;;  %1891 = vmatpush1.bf16.msra.mxu1 %v6318_v56  ;;  %v6410_v55 = vld [vmem:[%s8338_s29 + $0x568] ss:$16 sps:$4 sm:$0xff]   ;;  %v6415_v56 = vld [vmem:[%s8338_s29 + $0x584] ss:$16 sps:$4 sm:$0xff]  }
  0x8f   :  { %1728 = vmatprep.subr.bf16.mxu0 %v6323_v57  ;;  %1892 = vmatprep.subr.bf16.mxu1 %v6326_v58  ;;  %v6418_v57 = vld [vmem:[%s8338_s29 + $0x58c] ss:$16 sps:$4 sm:$0xff]   ;;  %v6413_v58 = vld [vmem:[%s8338_s29 + $0x580] ss:$16 sps:$4 sm:$0xff]  }
  0x92   :  { %1729 = vmatpush1.bf16.msra.mxu0 %v6321_v59  ;;  %1893 = vmatpush1.bf16.msra.mxu1 %v6324_v60  ;;  %v6416_v59 = vld [vmem:[%s8338_s29 + $0x588] ss:$16 sps:$4 sm:$0xff]   ;;  %v6421_v60 = vld [vmem:[%s8338_s29 + $0x5a4] ss:$16 sps:$4 sm:$0xff]  }
  0x93   :  { %1730 = vmatprep.subr.bf16.mxu0 %v6329_v61  ;;  %1894 = vmatprep.subr.bf16.mxu1 %v6332_v62  ;;  %v6424_v61 = vld [vmem:[%s8338_s29 + $0x5ac] ss:$16 sps:$4 sm:$0xff]   ;;  %v6419_v62 = vld [vmem:[%s8338_s29 + $0x5a0] ss:$16 sps:$4 sm:$0xff]  }
  0x96   :  { %1731 = vmatpush1.bf16.msra.mxu0 %v6327_v63  ;;  %1895 = vmatpush1.bf16.msra.mxu1 %v6330_v0  ;;  %v6422_v63 = vld [vmem:[%s8338_s29 + $0x5a8] ss:$16 sps:$4 sm:$0xff]   ;;  %v6427_v0 = vld [vmem:[%s8338_s29 + $0x5c4] ss:$16 sps:$4 sm:$0xff]  }
  0x97   :  { %1732 = vmatprep.subr.bf16.mxu0 %v6335_v1  ;;  %1896 = vmatprep.subr.bf16.mxu1 %v6338_v2  ;;  %v6430_v1 = vld [vmem:[%s8338_s29 + $0x5cc] ss:$16 sps:$4 sm:$0xff]   ;;  %v6425_v2 = vld [vmem:[%s8338_s29 + $0x5c0] ss:$16 sps:$4 sm:$0xff]  }
  0x9a   :  { %1733 = vmatpush1.bf16.msra.mxu0 %v6333_v3  ;;  %1897 = vmatpush1.bf16.msra.mxu1 %v6336_v4  ;;  %v6428_v3 = vld [vmem:[%s8338_s29 + $0x5c8] ss:$16 sps:$4 sm:$0xff]   ;;  %v6433_v4 = vld [vmem:[%s8338_s29 + $0x5e4] ss:$16 sps:$4 sm:$0xff]  }
  0x9b   :  { %1743 = vmatprep.subr.bf16.mxu0 %v6343_v5  ;;  %1907 = vmatprep.subr.bf16.mxu1 %v6346_v6  ;;  %v6436_v5 = vld [vmem:[%s8338_s29 + $0x5ec] ss:$16 sps:$4 sm:$0xff]   ;;  %v6431_v6 = vld [vmem:[%s8338_s29 + $0x5e0] ss:$16 sps:$4 sm:$0xff]  }
  0x9d   :  { %1735 = vmatmul.mubr.bf16.vlgmr.msra.gmra.mrb[0].mxu0 %v5355_v7  ;;  %1899 = vmatmul.mubr.bf16.vlgmr.msra.gmra.mrb[0].mxu1 %v5355_v7  ;;  %v6434_v7 = vld [vmem:[%s8338_s29 + $0x5e8] ss:$16 sps:$4 sm:$0xff]  }
  0x9e   :  { %1744 = vmatpush1.bf16.msra.mxu0 %v6341_v8  ;;  %1908 = vmatpush1.bf16.msra.mxu1 %v6344_v9  ;;  %v6441_v8 = vld [vmem:[%s8338_s29 + $0x604] ss:$16 sps:$4 sm:$0xff]   ;;  %v6444_v9 = vld [vmem:[%s8338_s29 + $0x60c] ss:$16 sps:$4 sm:$0xff]  }
  0x9f   :  { %1745 = vmatprep.subr.bf16.mxu0 %v6349_v10  ;;  %1909 = vmatprep.subr.bf16.mxu1 %v6352_v12  ;;  %v6439_v10 = vld [vmem:[%s8338_s29 + $0x600] ss:$16 sps:$4 sm:$0xff]   ;;  %v6442_v12 = vld [vmem:[%s8338_s29 + $0x608] ss:$16 sps:$4 sm:$0xff]  }
  0xa0   :  { %1775 = vmatprep.mubr.bf16.mxu0 %v5358_v13  ;;  %1939 = vmatprep.mubr.bf16.mxu1 %v5358_v13  ;;  %v7510_v13 = vld [vmem:[%s8339_s19 + $0x18] sm:$0xff] }
  0xa2   :  { %1746 = vmatpush1.bf16.msra.mxu0 %v6347_v14  ;;  %1910 = vmatpush1.bf16.msra.mxu1 %v6350_v15  ;;  %v5357_v14 = vcombine.low %v7314_v11, %v7314_v11  ;;  %v6447_v15 = vld [vmem:[%s8338_s29 + $0x624] ss:$16 sps:$4 sm:$0xff]   ;;  %v6448_v11 = vld [vmem:[%s8338_s29 + $0x628] ss:$16 sps:$4 sm:$0xff]  }
  0xa3   :  { %1747 = vmatprep.subr.bf16.mxu0 %v6355_v16  ;;  %1911 = vmatprep.subr.bf16.mxu1 %v6358_v17  ;;  %v6450_v16 = vld [vmem:[%s8338_s29 + $0x62c] ss:$16 sps:$4 sm:$0xff]   ;;  %v6445_v17 = vld [vmem:[%s8338_s29 + $0x620] ss:$16 sps:$4 sm:$0xff]  }
  0xa6   :  { %1748 = vmatpush1.bf16.msra.mxu0 %v6353_v18  ;;  %1912 = vmatpush1.bf16.msra.mxu1 %v6356_v19  ;;  %v5360_v18 = vcombine.high %v7510_v13, %v7510_v13  ;;  %v6453_v19 = vld [vmem:[%s8338_s29 + $0x644] ss:$16 sps:$4 sm:$0xff]  }
  0xa7   :  { %1749 = vmatprep.subr.bf16.mxu0 %v6361_v20  ;;  %1913 = vmatprep.subr.bf16.mxu1 %v6364_v21  ;;  %v6456_v20 = vld [vmem:[%s8338_s29 + $0x64c] ss:$16 sps:$4 sm:$0xff]   ;;  %v6451_v21 = vld [vmem:[%s8338_s29 + $0x640] ss:$16 sps:$4 sm:$0xff]  }
  0xaa   :  { %1750 = vmatpush1.bf16.msra.mxu0 %v6359_v22  ;;  %1914 = vmatpush1.bf16.msra.mxu1 %v6362_v23  ;;  %v6454_v22 = vld [vmem:[%s8338_s29 + $0x648] ss:$16 sps:$4 sm:$0xff]   ;;  %v6459_v23 = vld [vmem:[%s8338_s29 + $0x664] ss:$16 sps:$4 sm:$0xff]  }
  0xab   :  { %1751 = vmatprep.subr.bf16.mxu0 %v6367_v24  ;;  %1915 = vmatprep.subr.bf16.mxu1 %v6370_v25  ;;  %v6462_v24 = vld [vmem:[%s8338_s29 + $0x66c] ss:$16 sps:$4 sm:$0xff]   ;;  %v6457_v25 = vld [vmem:[%s8338_s29 + $0x660] ss:$16 sps:$4 sm:$0xff]  }
  0xae   :  { %1752 = vmatpush1.bf16.msra.mxu0 %v6365_v26  ;;  %1916 = vmatpush1.bf16.msra.mxu1 %v6368_v27  ;;  %v6460_v26 = vld [vmem:[%s8338_s29 + $0x668] ss:$16 sps:$4 sm:$0xff]   ;;  %v6465_v27 = vld [vmem:[%s8338_s29 + $0x684] ss:$16 sps:$4 sm:$0xff]  }
  0xaf   :  { %1753 = vmatprep.subr.bf16.mxu0 %v6373_v28  ;;  %1917 = vmatprep.subr.bf16.mxu1 %v6376_v29  ;;  %v6468_v28 = vld [vmem:[%s8338_s29 + $0x68c] ss:$16 sps:$4 sm:$0xff]   ;;  %v6463_v29 = vld [vmem:[%s8338_s29 + $0x680] ss:$16 sps:$4 sm:$0xff]  }
  0xb2   :  { %1754 = vmatpush1.bf16.msra.mxu0 %v6371_v30  ;;  %1918 = vmatpush1.bf16.msra.mxu1 %v6374_v31  ;;  %v6466_v30 = vld [vmem:[%s8338_s29 + $0x688] ss:$16 sps:$4 sm:$0xff]   ;;  %v6471_v31 = vld [vmem:[%s8338_s29 + $0x6a4] ss:$16 sps:$4 sm:$0xff]  }
  0xb3   :  { %1755 = vmatprep.subr.bf16.mxu0 %v6379_v32  ;;  %1919 = vmatprep.subr.bf16.mxu1 %v6382_v33  ;;  %v6474_v32 = vld [vmem:[%s8338_s29 + $0x6ac] ss:$16 sps:$4 sm:$0xff]   ;;  %v6469_v33 = vld [vmem:[%s8338_s29 + $0x6a0] ss:$16 sps:$4 sm:$0xff]  }
  0xb6   :  { %1756 = vmatpush1.bf16.msra.mxu0 %v6377_v34  ;;  %1920 = vmatpush1.bf16.msra.mxu1 %v6380_v35  ;;  %v6472_v34 = vld [vmem:[%s8338_s29 + $0x6a8] ss:$16 sps:$4 sm:$0xff]   ;;  %v6477_v35 = vld [vmem:[%s8338_s29 + $0x6c4] ss:$16 sps:$4 sm:$0xff]  }
  0xb7   :  { %1757 = vmatprep.subr.bf16.mxu0 %v6385_v36  ;;  %1921 = vmatprep.subr.bf16.mxu1 %v6388_v37  ;;  %v6480_v36 = vld [vmem:[%s8338_s29 + $0x6cc] ss:$16 sps:$4 sm:$0xff]   ;;  %v6475_v37 = vld [vmem:[%s8338_s29 + $0x6c0] ss:$16 sps:$4 sm:$0xff]  }
  0xba   :  { %1758 = vmatpush1.bf16.msra.mxu0 %v6383_v38  ;;  %1922 = vmatpush1.bf16.msra.mxu1 %v6386_v39  ;;  %v6478_v38 = vld [vmem:[%s8338_s29 + $0x6c8] ss:$16 sps:$4 sm:$0xff]   ;;  %v6483_v39 = vld [vmem:[%s8338_s29 + $0x6e4] ss:$16 sps:$4 sm:$0xff]  }
  0xbb   :  { %1759 = vmatprep.subr.bf16.mxu0 %v6391_v40  ;;  %1923 = vmatprep.subr.bf16.mxu1 %v6394_v41  ;;  %v6486_v40 = vld [vmem:[%s8338_s29 + $0x6ec] ss:$16 sps:$4 sm:$0xff]   ;;  %v6481_v41 = vld [vmem:[%s8338_s29 + $0x6e0] ss:$16 sps:$4 sm:$0xff]  }
  0xbe   :  { %1760 = vmatpush1.bf16.msra.mxu0 %v6389_v42  ;;  %1924 = vmatpush1.bf16.msra.mxu1 %v6392_v43  ;;  %v6484_v42 = vld [vmem:[%s8338_s29 + $0x6e8] ss:$16 sps:$4 sm:$0xff]   ;;  %v6489_v43 = vld [vmem:[%s8338_s29 + $0x704] ss:$16 sps:$4 sm:$0xff]  }
  0xbf   :  { %1761 = vmatprep.subr.bf16.mxu0 %v6397_v44  ;;  %1925 = vmatprep.subr.bf16.mxu1 %v6400_v45  ;;  %v6492_v44 = vld [vmem:[%s8338_s29 + $0x70c] ss:$16 sps:$4 sm:$0xff]   ;;  %v6487_v45 = vld [vmem:[%s8338_s29 + $0x700] ss:$16 sps:$4 sm:$0xff]  }
  0xc2   :  { %1762 = vmatpush1.bf16.msra.mxu0 %v6395_v46  ;;  %1926 = vmatpush1.bf16.msra.mxu1 %v6398_v47  ;;  %v6490_v46 = vld [vmem:[%s8338_s29 + $0x708] ss:$16 sps:$4 sm:$0xff]   ;;  %v6495_v47 = vld [vmem:[%s8338_s29 + $0x724] ss:$16 sps:$4 sm:$0xff]  }
  0xc3   :  { %1763 = vmatprep.subr.bf16.mxu0 %v6403_v48  ;;  %1927 = vmatprep.subr.bf16.mxu1 %v6406_v49  ;;  %v6498_v48 = vld [vmem:[%s8338_s29 + $0x72c] ss:$16 sps:$4 sm:$0xff]   ;;  %v6493_v49 = vld [vmem:[%s8338_s29 + $0x720] ss:$16 sps:$4 sm:$0xff]  }
  0xc6   :  { %1764 = vmatpush1.bf16.msra.mxu0 %v6401_v50  ;;  %1928 = vmatpush1.bf16.msra.mxu1 %v6404_v51  ;;  %v6496_v50 = vld [vmem:[%s8338_s29 + $0x728] ss:$16 sps:$4 sm:$0xff]   ;;  %v6501_v51 = vld [vmem:[%s8338_s29 + $0x744] ss:$16 sps:$4 sm:$0xff]  }
  0xc7   :  { %1765 = vmatprep.subr.bf16.mxu0 %v6409_v52  ;;  %1929 = vmatprep.subr.bf16.mxu1 %v6412_v53  ;;  %v6504_v52 = vld [vmem:[%s8338_s29 + $0x74c] ss:$16 sps:$4 sm:$0xff]   ;;  %v6499_v53 = vld [vmem:[%s8338_s29 + $0x740] ss:$16 sps:$4 sm:$0xff]  }
  0xca   :  { %1766 = vmatpush1.bf16.msra.mxu0 %v6407_v54  ;;  %1930 = vmatpush1.bf16.msra.mxu1 %v6410_v55  ;;  %v6502_v54 = vld [vmem:[%s8338_s29 + $0x748] ss:$16 sps:$4 sm:$0xff]   ;;  %v6507_v55 = vld [vmem:[%s8338_s29 + $0x764] ss:$16 sps:$4 sm:$0xff]  }
  0xcb   :  { %1767 = vmatprep.subr.bf16.mxu0 %v6415_v56  ;;  %1931 = vmatprep.subr.bf16.mxu1 %v6418_v57  ;;  %v6510_v56 = vld [vmem:[%s8338_s29 + $0x76c] ss:$16 sps:$4 sm:$0xff]   ;;  %v6505_v57 = vld [vmem:[%s8338_s29 + $0x760] ss:$16 sps:$4 sm:$0xff]  }
  0xce   :  { %1768 = vmatpush1.bf16.msra.mxu0 %v6413_v58  ;;  %1932 = vmatpush1.bf16.msra.mxu1 %v6416_v59  ;;  %v6508_v58 = vld [vmem:[%s8338_s29 + $0x768] ss:$16 sps:$4 sm:$0xff]   ;;  %v6513_v59 = vld [vmem:[%s8338_s29 + $0x784] ss:$16 sps:$4 sm:$0xff]  }
  0xcf   :  { %1769 = vmatprep.subr.bf16.mxu0 %v6421_v60  ;;  %1933 = vmatprep.subr.bf16.mxu1 %v6424_v61  ;;  %v6516_v60 = vld [vmem:[%s8338_s29 + $0x78c] ss:$16 sps:$4 sm:$0xff]   ;;  %v6511_v61 = vld [vmem:[%s8338_s29 + $0x780] ss:$16 sps:$4 sm:$0xff]  }
  0xd2   :  { %1770 = vmatpush1.bf16.msra.mxu0 %v6419_v62  ;;  %1934 = vmatpush1.bf16.msra.mxu1 %v6422_v63  ;;  %v6514_v62 = vld [vmem:[%s8338_s29 + $0x788] ss:$16 sps:$4 sm:$0xff]   ;;  %v6519_v63 = vld [vmem:[%s8338_s29 + $0x7a4] ss:$16 sps:$4 sm:$0xff]  }
  0xd3   :  { %1771 = vmatprep.subr.bf16.mxu0 %v6427_v0  ;;  %1935 = vmatprep.subr.bf16.mxu1 %v6430_v1  ;;  %v6522_v0 = vld [vmem:[%s8338_s29 + $0x7ac] ss:$16 sps:$4 sm:$0xff]   ;;  %v6517_v1 = vld [vmem:[%s8338_s29 + $0x7a0] ss:$16 sps:$4 sm:$0xff]  }
  0xd6   :  { %1772 = vmatpush1.bf16.msra.mxu0 %v6425_v2  ;;  %1936 = vmatpush1.bf16.msra.mxu1 %v6428_v3  ;;  %v6520_v2 = vld [vmem:[%s8338_s29 + $0x7a8] ss:$16 sps:$4 sm:$0xff]   ;;  %v6525_v3 = vld [vmem:[%s8338_s29 + $0x7c4] ss:$16 sps:$4 sm:$0xff]  }
  0xd7   :  { %1773 = vmatprep.subr.bf16.mxu0 %v6433_v4  ;;  %1937 = vmatprep.subr.bf16.mxu1 %v6436_v5  ;;  %v6528_v4 = vld [vmem:[%s8338_s29 + $0x7cc] ss:$16 sps:$4 sm:$0xff]   ;;  %v6523_v5 = vld [vmem:[%s8338_s29 + $0x7c0] ss:$16 sps:$4 sm:$0xff]  }
  0xda   :  { %1774 = vmatpush1.bf16.msra.mxu0 %v6431_v6  ;;  %1938 = vmatpush1.bf16.msra.mxu1 %v6434_v7  ;;  %v6526_v6 = vld [vmem:[%s8338_s29 + $0x7c8] ss:$16 sps:$4 sm:$0xff]   ;;  %v6531_v7 = vld [vmem:[%s8338_s29 + $0x7e4] ss:$16 sps:$4 sm:$0xff]  }
  0xdb   :  { %1784 = vmatprep.subr.bf16.mxu0 %v6441_v8  ;;  %1948 = vmatprep.subr.bf16.mxu1 %v6444_v9  ;;  %v6534_v8 = vld [vmem:[%s8338_s29 + $0x7ec] ss:$16 sps:$4 sm:$0xff]   ;;  %v6529_v9 = vld [vmem:[%s8338_s29 + $0x7e0] ss:$16 sps:$4 sm:$0xff]  }
  0xdd   :  { %1776 = vmatmul.mubr.bf16.vlgmr.msra.gmra.mrb[0].mxu0 %v5357_v14  ;;  %1940 = vmatmul.mubr.bf16.vlgmr.msra.gmra.mrb[0].mxu1 %v5357_v14  ;;  %v5359_v14 = vcombine.low %v7510_v13, %v7510_v13  ;;  %v6545_v13 = vld [vmem:[%s8318_s4 + $0x24] ss:$8 sps:$4 sm:$0xff]  }
  0xde   :  { %1785 = vmatpush1.bf16.msra.mxu0 %v6439_v10  ;;  %1949 = vmatpush1.bf16.msra.mxu1 %v6442_v12  ;;  %v6532_v10 = vld [vmem:[%s8338_s29 + $0x7e8] ss:$16 sps:$4 sm:$0xff]   ;;  %v6539_v12 = vld [vmem:[%s8318_s4 + $0x4] ss:$8 sps:$4 sm:$0xff]  }
  0xdf   :  { %1786 = vmatprep.subr.bf16.mxu0 %v6447_v15  ;;  %1950 = vmatprep.subr.bf16.mxu1 %v6450_v16  ;;  %v6537_v15 = vld [vmem:[%s8318_s4] ss:$8 sps:$4 sm:$0xff]   ;;  %v6542_v16 = vld [vmem:[%s8318_s4 + $0x14] ss:$8 sps:$4 sm:$0xff]  }
  0xe0   :  { %1816 = vmatprep.mubr.bf16.mxu0 %v5360_v18  ;;  %1980 = vmatprep.mubr.bf16.mxu1 %v5360_v18  ;;  %v6548_v18 = vld [vmem:[%s8318_s4 + $0x34] ss:$8 sps:$4 sm:$0xff]  }
  0xe2   :  { %1787 = vmatpush1.bf16.msra.mxu0 %v6445_v17  ;;  %1951 = vmatpush1.bf16.msra.mxu1 %v6448_v11  ;;  %v6540_v17 = vld [vmem:[%s8318_s4 + $0x10] ss:$8 sps:$4 sm:$0xff]   ;;  %v6543_v11 = vld [vmem:[%s8318_s4 + $0x20] ss:$8 sps:$4 sm:$0xff]  }
  0xe3   :  { %1788 = vmatprep.subr.bf16.mxu0 %v6453_v19  ;;  %1952 = vmatprep.subr.bf16.mxu1 %v6456_v20  ;;  %v6546_v19 = vld [vmem:[%s8318_s4 + $0x30] ss:$8 sps:$4 sm:$0xff]   ;;  %v6551_v20 = vld [vmem:[%s8318_s4 + $0x44] ss:$8 sps:$4 sm:$0xff]  }
  0xe6   :  { %1789 = vmatpush1.bf16.msra.mxu0 %v6451_v21  ;;  %1953 = vmatpush1.bf16.msra.mxu1 %v6454_v22  ;;  %v6549_v21 = vld [vmem:[%s8318_s4 + $0x40] ss:$8 sps:$4 sm:$0xff]   ;;  %v6554_v22 = vld [vmem:[%s8318_s4 + $0x54] ss:$8 sps:$4 sm:$0xff]  }
  0xe7   :  { %1790 = vmatprep.subr.bf16.mxu0 %v6459_v23  ;;  %1954 = vmatprep.subr.bf16.mxu1 %v6462_v24  ;;  %v6552_v23 = vld [vmem:[%s8318_s4 + $0x50] ss:$8 sps:$4 sm:$0xff]   ;;  %v6557_v24 = vld [vmem:[%s8318_s4 + $0x64] ss:$8 sps:$4 sm:$0xff]  }
  0xea   :  { %1791 = vmatpush1.bf16.msra.mxu0 %v6457_v25  ;;  %1955 = vmatpush1.bf16.msra.mxu1 %v6460_v26  ;;  %v6555_v25 = vld [vmem:[%s8318_s4 + $0x60] ss:$8 sps:$4 sm:$0xff]   ;;  %v6560_v26 = vld [vmem:[%s8318_s4 + $0x74] ss:$8 sps:$4 sm:$0xff]  }
  0xeb   :  { %1792 = vmatprep.subr.bf16.mxu0 %v6465_v27  ;;  %1956 = vmatprep.subr.bf16.mxu1 %v6468_v28  ;;  %v6558_v27 = vld [vmem:[%s8318_s4 + $0x70] ss:$8 sps:$4 sm:$0xff]   ;;  %v6563_v28 = vld [vmem:[%s8318_s4 + $0x84] ss:$8 sps:$4 sm:$0xff]  }
  0xee   :  { %1793 = vmatpush1.bf16.msra.mxu0 %v6463_v29  ;;  %1957 = vmatpush1.bf16.msra.mxu1 %v6466_v30  ;;  %v6561_v29 = vld [vmem:[%s8318_s4 + $0x80] ss:$8 sps:$4 sm:$0xff]   ;;  %v6566_v30 = vld [vmem:[%s8318_s4 + $0x94] ss:$8 sps:$4 sm:$0xff]  }
  0xef   :  { %1794 = vmatprep.subr.bf16.mxu0 %v6471_v31  ;;  %1958 = vmatprep.subr.bf16.mxu1 %v6474_v32  ;;  %v6564_v31 = vld [vmem:[%s8318_s4 + $0x90] ss:$8 sps:$4 sm:$0xff]   ;;  %v6569_v32 = vld [vmem:[%s8318_s4 + $0xa4] ss:$8 sps:$4 sm:$0xff]  }
  0xf2   :  { %1795 = vmatpush1.bf16.msra.mxu0 %v6469_v33  ;;  %1959 = vmatpush1.bf16.msra.mxu1 %v6472_v34  ;;  %v6567_v33 = vld [vmem:[%s8318_s4 + $0xa0] ss:$8 sps:$4 sm:$0xff]   ;;  %v6572_v34 = vld [vmem:[%s8318_s4 + $0xb4] ss:$8 sps:$4 sm:$0xff]  }
  0xf3   :  { %1796 = vmatprep.subr.bf16.mxu0 %v6477_v35  ;;  %1960 = vmatprep.subr.bf16.mxu1 %v6480_v36  ;;  %v6570_v35 = vld [vmem:[%s8318_s4 + $0xb0] ss:$8 sps:$4 sm:$0xff]   ;;  %v6575_v36 = vld [vmem:[%s8318_s4 + $0xc4] ss:$8 sps:$4 sm:$0xff]  }
  0xf6   :  { %1797 = vmatpush1.bf16.msra.mxu0 %v6475_v37  ;;  %1961 = vmatpush1.bf16.msra.mxu1 %v6478_v38  ;;  %v6573_v37 = vld [vmem:[%s8318_s4 + $0xc0] ss:$8 sps:$4 sm:$0xff]   ;;  %v6578_v38 = vld [vmem:[%s8318_s4 + $0xd4] ss:$8 sps:$4 sm:$0xff]  }
  0xf7   :  { %1798 = vmatprep.subr.bf16.mxu0 %v6483_v39  ;;  %1962 = vmatprep.subr.bf16.mxu1 %v6486_v40  ;;  %v6576_v39 = vld [vmem:[%s8318_s4 + $0xd0] ss:$8 sps:$4 sm:$0xff]   ;;  %v6581_v40 = vld [vmem:[%s8318_s4 + $0xe4] ss:$8 sps:$4 sm:$0xff]  }
  0xfa   :  { %1799 = vmatpush1.bf16.msra.mxu0 %v6481_v41  ;;  %1963 = vmatpush1.bf16.msra.mxu1 %v6484_v42  ;;  %v6579_v41 = vld [vmem:[%s8318_s4 + $0xe0] ss:$8 sps:$4 sm:$0xff]   ;;  %v6584_v42 = vld [vmem:[%s8318_s4 + $0xf4] ss:$8 sps:$4 sm:$0xff]  }
  0xfb   :  { %1800 = vmatprep.subr.bf16.mxu0 %v6489_v43  ;;  %1964 = vmatprep.subr.bf16.mxu1 %v6492_v44  ;;  %v6582_v43 = vld [vmem:[%s8318_s4 + $0xf0] ss:$8 sps:$4 sm:$0xff]   ;;  %v6587_v44 = vld [vmem:[%s8318_s4 + $0x104] ss:$8 sps:$4 sm:$0xff]  }
  0xfe   :  { %1801 = vmatpush1.bf16.msra.mxu0 %v6487_v45  ;;  %1965 = vmatpush1.bf16.msra.mxu1 %v6490_v46  ;;  %v6633_v45 = vld [vmem:[%s8320_s6 + $0x40] sm:$0xff]  }
  0xff   :  { %1802 = vmatprep.subr.bf16.mxu0 %v6495_v47  ;;  %1966 = vmatprep.subr.bf16.mxu1 %v6498_v48  ;;  %v6634_v46 = vld [vmem:[%s8320_s6] sm:$0xff]   ;;  %v6635_v47 = vld [vmem:[%s8320_s6 + $0x48] sm:$0xff]  }
 0x100   :  { %v6636_v48 = vld [vmem:[%s8320_s6 + $0x8] sm:$0xff]  }
 0x102   :  { %1803 = vmatpush1.bf16.msra.mxu0 %v6493_v49  ;;  %1967 = vmatpush1.bf16.msra.mxu1 %v6496_v50  ;;  %v6637_v49 = vld [vmem:[%s8320_s6 + $0x50] sm:$0xff]  }
 0x103   :  { %1804 = vmatprep.subr.bf16.mxu0 %v6501_v51  ;;  %1968 = vmatprep.subr.bf16.mxu1 %v6504_v52  ;;  %v6638_v50 = vld [vmem:[%s8320_s6 + $0x10] sm:$0xff]   ;;  %v6639_v51 = vld [vmem:[%s8320_s6 + $0x58] sm:$0xff]  }
 0x104   :  { %v6640_v52 = vld [vmem:[%s8320_s6 + $0x18] sm:$0xff]  }
 0x106   :  { %1805 = vmatpush1.bf16.msra.mxu0 %v6499_v53  ;;  %1969 = vmatpush1.bf16.msra.mxu1 %v6502_v54  ;;  %v6641_v53 = vld [vmem:[%s8320_s6 + $0x60] sm:$0xff]  }
 0x107   :  { %1806 = vmatprep.subr.bf16.mxu0 %v6507_v55  ;;  %1970 = vmatprep.subr.bf16.mxu1 %v6510_v56  ;;  %v6642_v54 = vld [vmem:[%s8320_s6 + $0x20] sm:$0xff]   ;;  %v6643_v55 = vld [vmem:[%s8320_s6 + $0x68] sm:$0xff]  }
 0x108   :  { %v6644_v56 = vld [vmem:[%s8320_s6 + $0x28] sm:$0xff]  }
 0x10a   :  { %1807 = vmatpush1.bf16.msra.mxu0 %v6505_v57  ;;  %1971 = vmatpush1.bf16.msra.mxu1 %v6508_v58  ;;  %v6645_v57 = vld [vmem:[%s8320_s6 + $0x70] sm:$0xff]  }
 0x10b   :  { %1808 = vmatprep.subr.bf16.mxu0 %v6513_v59  ;;  %1972 = vmatprep.subr.bf16.mxu1 %v6516_v60  ;;  %v6646_v58 = vld [vmem:[%s8320_s6 + $0x30] sm:$0xff]   ;;  %v333_v59 = vlaneseq }
 0x10d   :  { %v7839_v60 = vshrl.u32 %v333_v59, 7 }
 0x10e   :  { %1809 = vmatpush1.bf16.msra.mxu0 %v6511_v61  ;;  %1973 = vmatpush1.bf16.msra.mxu1 %v6514_v62  ;;  %v7847_v62 = vld [vmem:[%s8317_s3] sm:$0xf] }
 0x10f   :  { %1810 = vmatprep.subr.bf16.mxu0 %v6519_v63  ;;  %1974 = vmatprep.subr.bf16.mxu1 %v6522_v0  ;;  %v7842_v61 = vsub.s32 0, %v7839_v60  ;;  %v7850_v63 = vsub.s32 1, %v7839_v60  ;;  %v7853_v0 = vsub.s32 3, %v7839_v60 }
 0x112   :  { %1811 = vmatpush1.bf16.msra.mxu0 %v6517_v1  ;;  %1975 = vmatpush1.bf16.msra.mxu1 %v6520_v2  ;;  %v336_v1 = vrot.slane %v7847_v62, %v7842_v61  ;;  %v340_v2 = vrot.slane %v7847_v62, %v7850_v63 }
 0x113   :  { %1812 = vmatprep.subr.bf16.mxu0 %v6525_v3  ;;  %1976 = vmatprep.subr.bf16.mxu1 %v6528_v4  ;;  %v348_v3 = vrot.slane %v7847_v62, %v7853_v0 }
 0x116   :  { %1813 = vmatpush1.bf16.msra.mxu0 %v6523_v5  ;;  %1977 = vmatpush1.bf16.msra.mxu1 %v6526_v6 }
 0x117   :  { %1814 = vmatprep.subr.bf16.mxu0 %v6531_v7  ;;  %1978 = vmatprep.subr.bf16.mxu1 %v6534_v8 }
 0x11a   :  { %1815 = vmatpush1.bf16.msra.mxu0 %v6529_v9  ;;  %1979 = vmatpush1.bf16.msra.mxu1 %v6532_v10 }
 0x11b   :  { %2401 = vmatprep.subr.bf16.mxu0 %v6539_v12  ;;  %6039 = vmatprep.subr.bf16.mxu1 %v6633_v45  ;;  %v6620_v45 = vld [vmem:[%s8318_s4 + $0x1b4] ss:$8 sps:$4 sm:$0xff]  }
 0x11d   :  { %1817 = vmatmul.mubr.bf16.vlgmr.msra.gmra.mrb[0].mxu0 %v5359_v14  ;;  %1981 = vmatmul.mubr.bf16.vlgmr.msra.gmra.mrb[0].mxu1 %v5359_v14 }
 0x11e   :  { %2402 = vmatpush1.bf16.msra.mxu0 %v6537_v15  ;;  %6040 = vmatpush3.bf16.msra.mxu1 %v6634_v46  ;;  %v6618_v46 = vld [vmem:[%s8318_s4 + $0x1b0] ss:$8 sps:$4 sm:$0xff]  }
 0x11f   :  { %2403 = vmatprep.subr.bf16.mxu0 %v6542_v16  ;;  %6041 = vmatprep.subr.bf16.mxu1 %v6635_v47  ;;  %v6623_v47 = vld [vmem:[%s8318_s4 + $0x1c4] ss:$8 sps:$4 sm:$0xff]  }
 0x122   :  { %2404 = vmatpush1.bf16.msra.mxu0 %v6540_v17  ;;  %6042 = vmatpush3.bf16.msra.mxu1 %v6636_v48  ;;  %v7936_v48 = vsub.s32 2, %v7839_v60 }
 0x123   :  { %2405 = vmatprep.subr.bf16.mxu0 %v6545_v13  ;;  %6043 = vmatprep.subr.bf16.mxu1 %v6637_v49  ;;  %v6621_v49 = vld [vmem:[%s8318_s4 + $0x1c0] ss:$8 sps:$4 sm:$0xff]  }
 0x126   :  { %2406 = vmatpush1.bf16.msra.mxu0 %v6543_v11  ;;  %6044 = vmatpush3.bf16.msra.mxu1 %v6638_v50  ;;  %v6626_v50 = vld [vmem:[%s8318_s4 + $0x1d4] ss:$8 sps:$4 sm:$0xff]  }
 0x127   :  { %2407 = vmatprep.subr.bf16.mxu0 %v6548_v18  ;;  %6045 = vmatprep.subr.bf16.mxu1 %v6639_v51  ;;  %v344_v51 = vrot.slane %v7847_v62, %v7936_v48 }
 0x12a   :  { %2408 = vmatpush1.bf16.msra.mxu0 %v6546_v19  ;;  %6046 = vmatpush3.bf16.msra.mxu1 %v6640_v52  ;;  %v6624_v52 = vld [vmem:[%s8318_s4 + $0x1d0] ss:$8 sps:$4 sm:$0xff]  }
 0x12b   :  { %2409 = vmatprep.subr.bf16.mxu0 %v6551_v20  ;;  %6047 = vmatprep.subr.bf16.mxu1 %v6641_v53  ;;  %v6629_v53 = vld [vmem:[%s8318_s4 + $0x1e4] ss:$8 sps:$4 sm:$0xff]  }
 0x12e   :  { %2410 = vmatpush1.bf16.msra.mxu0 %v6549_v21  ;;  %6048 = vmatpush3.bf16.msra.mxu1 %v6642_v54 }
 0x12f   :  { %2411 = vmatprep.subr.bf16.mxu0 %v6554_v22  ;;  %6049 = vmatprep.subr.bf16.mxu1 %v6643_v55  ;;  %v6585_v22 = vld [vmem:[%s8318_s4 + $0x100] ss:$8 sps:$4 sm:$0xff]  }
 0x130   :  { %v6627_v55 = vld [vmem:[%s8318_s4 + $0x1e0] ss:$8 sps:$4 sm:$0xff]  }
 0x132   :  { %2412 = vmatpush1.bf16.msra.mxu0 %v6552_v23  ;;  %6050 = vmatpush3.bf16.msra.mxu1 %v6644_v56  ;;  %v6632_v56 = vld [vmem:[%s8318_s4 + $0x1f4] ss:$8 sps:$4 sm:$0xff]  }
 0x133   :  { %2413 = vmatprep.subr.bf16.mxu0 %v6557_v24  ;;  %6051 = vmatprep.subr.bf16.mxu1 %v6645_v57  ;;  %v6590_v24 = vld [vmem:[%s8318_s4 + $0x114] ss:$8 sps:$4 sm:$0xff]  }
 0x136   :  { %2414 = vmatpush1.bf16.msra.mxu0 %v6555_v25  ;;  %6052 = vmatpush3.bf16.msra.mxu1 %v6646_v58  ;;  %v6630_v58 = vld [vmem:[%s8318_s4 + $0x1f0] ss:$8 sps:$4 sm:$0xff]  }
 0x137   :  { %2415 = vmatprep.subr.bf16.mxu0 %v6560_v26  ;;  %v6588_v26 = vld [vmem:[%s8318_s4 + $0x110] ss:$8 sps:$4 sm:$0xff]  }
 0x13a   :  { %2416 = vmatpush1.bf16.msra.mxu0 %v6558_v27  ;;  %v6593_v27 = vld [vmem:[%s8318_s4 + $0x124] ss:$8 sps:$4 sm:$0xff]  }
 0x13b   :  { %2417 = vmatprep.subr.bf16.mxu0 %v6563_v28  ;;  %v6591_v28 = vld [vmem:[%s8318_s4 + $0x120] ss:$8 sps:$4 sm:$0xff]  }
 0x13e   :  { %2418 = vmatpush1.bf16.msra.mxu0 %v6561_v29  ;;  %v6596_v29 = vld [vmem:[%s8318_s4 + $0x134] ss:$8 sps:$4 sm:$0xff]  }
 0x13f   :  { %2419 = vmatprep.subr.bf16.mxu0 %v6566_v30  ;;  %v6594_v30 = vld [vmem:[%s8318_s4 + $0x130] ss:$8 sps:$4 sm:$0xff]  }
 0x142   :  { %2420 = vmatpush1.bf16.msra.mxu0 %v6564_v31  ;;  %v6599_v31 = vld [vmem:[%s8318_s4 + $0x144] ss:$8 sps:$4 sm:$0xff]  }
 0x143   :  { %2421 = vmatprep.subr.bf16.mxu0 %v6569_v32  ;;  %v6597_v32 = vld [vmem:[%s8318_s4 + $0x140] ss:$8 sps:$4 sm:$0xff]  }
 0x146   :  { %2422 = vmatpush1.bf16.msra.mxu0 %v6567_v33  ;;  %v6602_v33 = vld [vmem:[%s8318_s4 + $0x154] ss:$8 sps:$4 sm:$0xff]  }
 0x147   :  { %2423 = vmatprep.subr.bf16.mxu0 %v6572_v34  ;;  %v6600_v34 = vld [vmem:[%s8318_s4 + $0x150] ss:$8 sps:$4 sm:$0xff]  }
 0x14a   :  { %2424 = vmatpush1.bf16.msra.mxu0 %v6570_v35  ;;  %v6605_v35 = vld [vmem:[%s8318_s4 + $0x164] ss:$8 sps:$4 sm:$0xff]  }
 0x14b   :  { %2425 = vmatprep.subr.bf16.mxu0 %v6575_v36  ;;  %v6603_v36 = vld [vmem:[%s8318_s4 + $0x160] ss:$8 sps:$4 sm:$0xff]  }
 0x14e   :  { %2426 = vmatpush1.bf16.msra.mxu0 %v6573_v37  ;;  %v6608_v37 = vld [vmem:[%s8318_s4 + $0x174] ss:$8 sps:$4 sm:$0xff]  }
 0x14f   :  { %2427 = vmatprep.subr.bf16.mxu0 %v6578_v38  ;;  %v6606_v38 = vld [vmem:[%s8318_s4 + $0x170] ss:$8 sps:$4 sm:$0xff]  }
 0x152   :  { %2428 = vmatpush1.bf16.msra.mxu0 %v6576_v39  ;;  %v6611_v39 = vld [vmem:[%s8318_s4 + $0x184] ss:$8 sps:$4 sm:$0xff]  }
 0x153   :  { %2429 = vmatprep.subr.bf16.mxu0 %v6581_v40  ;;  %v6609_v40 = vld [vmem:[%s8318_s4 + $0x180] ss:$8 sps:$4 sm:$0xff]  }
 0x156   :  { %2430 = vmatpush1.bf16.msra.mxu0 %v6579_v41  ;;  %v6614_v41 = vld [vmem:[%s8318_s4 + $0x194] ss:$8 sps:$4 sm:$0xff]  }
 0x157   :  { %2431 = vmatprep.subr.bf16.mxu0 %v6584_v42  ;;  %v6612_v42 = vld [vmem:[%s8318_s4 + $0x190] ss:$8 sps:$4 sm:$0xff]  }
 0x15a   :  { %2432 = vmatpush1.bf16.msra.mxu0 %v6582_v43  ;;  %v6617_v43 = vld [vmem:[%s8318_s4 + $0x1a4] ss:$8 sps:$4 sm:$0xff]  }
 0x15b   :  { %2442 = vmatprep.subr.bf16.mxu0 %v6587_v44  ;;  %v6615_v44 = vld [vmem:[%s8318_s4 + $0x1a0] ss:$8 sps:$4 sm:$0xff]  }
 0x1f0   :  { %v1818_v4 = vpop.f32.mrb[0].mxu0  ;;  %v7861_v5 = vpop.f32.mrb[0].mxu1 }
 0x1f1   :  { %v6083_v6 = vadd.f32 %v1818_v4, %v336_v1  ;;  %v1820_v7 = vpop.f32.mrb[1].mxu0  ;;  %v1984_v8 = vpop.f32.mrb[1].mxu1  ;;  %v6085_v54 = vadd.f32 %v7861_v5, %v344_v51  ;;  %v6647_v1 = vld [vmem:[%s8320_s6 + $0x78] sm:$0xff]   ;;  %v2069_v4 = vld [vmem:[%s8319_s5] sm:$0x3] }
 0x1f2   :  { %v6084_v9 = vadd.f32 %v1820_v7, %v340_v2  ;;  %v6086_v10 = vadd.f32 %v1984_v8, %v348_v3  ;;  %v1822_v12 = vpop.f32.mrb[2].mxu0  ;;  %v1986_v14 = vpop.f32.mrb[2].mxu1  ;;  %v6648_v2 = vld [vmem:[%s8320_s6 + $0x38] sm:$0xff]   ;;  %6053 = vmatprep.subr.bf16.mxu1 %v6647_v1  ;;  %v6649_v3 = vld [vmem:[%s8322_s8 + $0x40] sm:$0xff]   ;;  %v2074_v5 = vrot.slane %v2069_v4, %v7842_v61 }
 0x1f3   :  { %vm1989_vm0 = vcmp.gt.f32.partialorder %v6083_v6, 0.0  ;;  %v1993_v15 = vmul.f32 0.01, %v6083_v6  ;;  %v1823_v11 = vpop.f32.mrb[3].mxu0  ;;  %v1987_v18 = vpop.f32.mrb[3].mxu1  ;;  %vm1991_vm3 = vcmp.gt.f32.partialorder %v6085_v54, 0.0  ;;  %6054 = vmatpush3.bf16.msra.mxu1 %v6648_v2 }
 0x1f4   :  { %vm1990_vm1 = vcmp.gt.f32.partialorder %v6084_v9, 0.0  ;;  %v1994_v16 = vmul.f32 0.01, %v6084_v9  ;;  %vm1992_vm2 = vcmp.gt.f32.partialorder %v6086_v10, 0.0  ;;  %v1996_v17 = vmul.f32 0.01, %v6086_v10  ;;  %6061 = vmatprep.subr.bf16.mxu1 %v6649_v3 }
 0x1f5   :  { %v1997_v13 = vsel %vm1989_vm0, %v6083_v6, %v1993_v15  ;;  %v1995_v57 = vmul.f32 0.01, %v6085_v54  ;;  %v2078_v6 = vrot.slane %v2069_v4, %v7850_v63  ;;  %v6652_v11 = vld [vmem:[%s8322_s8 + $0x8] sm:$0xff]   ;;  %v6653_v18 = vld [vmem:[%s8322_s8 + $0x50] sm:$0xff]  }
 0x1f6   :  { %v1998_v19 = vsel %vm1990_vm1, %v6084_v9, %v1994_v16  ;;  %v2000_v20 = vsel %vm1992_vm2, %v6086_v10, %v1996_v17  ;;  %v2001_v23 = vpack.c.bf16 %v1997_v13, %v1997_v13  ;;  %v6650_v16 = vld [vmem:[%s8322_s8] sm:$0xff]   ;;  %v6651_v13 = vld [vmem:[%s8322_s8 + $0x48] sm:$0xff]  }
 0x1f7   :  { %v2002_v21 = vpack.c.bf16 %v1998_v19, %v1998_v19  ;;  %v2004_v25 = vpack.c.bf16 %v2000_v20, %v2000_v20  ;;  %v1999_v59 = vsel %vm1991_vm3, %v6085_v54, %v1995_v57  ;;  %v6654_v19 = vld [vmem:[%s8322_s8 + $0x10] sm:$0xff]   ;;  %v6655_v20 = vld [vmem:[%s8322_s8 + $0x58] sm:$0xff]  }
 0x1f8   :  { %v2003_v62 = vpack.c.bf16 %v1999_v59, %v1999_v59  ;;  %v6714_v51 = vld [vmem:[%s8326_s12 + $0xec] ss:$16 sps:$4 sm:$0xff]   ;;  %v6718_v54 = vld [vmem:[%s8326_s12 + $0x108] ss:$16 sps:$4 sm:$0xff]  }
 0x1f9   :  { %2433 = vmatprep.mubr.bf16.mxu0 %v2002_v21  ;;  %v6656_v21 = vld [vmem:[%s8322_s8 + $0x18] sm:$0xff]  }
 0x1fa   :  { %2434 = vmatmul.mubr.bf16.vlgmr.msra.gmra.mrb[4].mxu0 %v2001_v23  ;;  %v6658_v23 = vld [vmem:[%s8322_s8 + $0x20] sm:$0xff]   ;;  %v6732_v57 = vld [vmem:[%s8326_s12 + $0x14c] ss:$16 sps:$4 sm:$0xff]   ;;  %v6742_v2 = vld [vmem:[%s8326_s12 + $0x188] ss:$16 sps:$4 sm:$0xff]  }
 0x1fb   :  { %2443 = vmatpush1.bf16.msra.mxu0 %v6585_v22  ;;  %2474 = vmatprep.mubr.bf16.mxu0 %v2004_v25  ;;  %v6657_v22 = vld [vmem:[%s8322_s8 + $0x60] sm:$0xff]   ;;  %v6660_v25 = vld [vmem:[%s8322_s8 + $0x28] sm:$0xff]  }
 0x1fc   :  { %2444 = vmatprep.subr.bf16.mxu0 %v6590_v24  ;;  %v6659_v24 = vld [vmem:[%s8322_s8 + $0x68] sm:$0xff]  }
 0x1fd   :  { %v6738_v59 = vld [vmem:[%s8326_s12 + $0x16c] ss:$16 sps:$4 sm:$0xff]   ;;  %v6748_v4 = vld [vmem:[%s8326_s12 + $0x1a8] ss:$16 sps:$4 sm:$0xff]  }
 0x1fe   :  { %v6744_v1 = vld [vmem:[%s8326_s12 + $0x18c] ss:$16 sps:$4 sm:$0xff]  }
 0x1ff   :  { %2445 = vmatpush1.bf16.msra.mxu0 %v6588_v26  ;;  %v6661_v26 = vld [vmem:[%s8322_s8 + $0x70] sm:$0xff]   ;;  %v6750_v3 = vld [vmem:[%s8326_s12 + $0x1ac] ss:$16 sps:$4 sm:$0xff]  }
 0x200   :  { %2446 = vmatprep.subr.bf16.mxu0 %v6593_v27  ;;  %v6662_v27 = vld [vmem:[%s8322_s8 + $0x30] sm:$0xff]  }
 0x203   :  { %2447 = vmatpush1.bf16.msra.mxu0 %v6591_v28  ;;  %v6663_v28 = vld [vmem:[%s8322_s8 + $0x78] sm:$0xff]  }
 0x204   :  { %2448 = vmatprep.subr.bf16.mxu0 %v6596_v29  ;;  %v6664_v29 = vld [vmem:[%s8322_s8 + $0x38] sm:$0xff]  }
 0x207   :  { %2449 = vmatpush1.bf16.msra.mxu0 %v6594_v30  ;;  %v2842_v30 = vld [vmem:[%s8324_s10] sm:$0xff] }
 0x208   :  { %2450 = vmatprep.subr.bf16.mxu0 %v6599_v31  ;;  %v5716_v31 = vcombine.high %v2842_v30, %v2842_v30 }
 0x20b   :  { %2451 = vmatpush1.bf16.msra.mxu0 %v6597_v32  ;;  %v5715_v32 = vcombine.low %v2842_v30, %v2842_v30  ;;  %v6679_v30 = vld [vmem:[%s8326_s12 + $0x40] ss:$16 sps:$4 sm:$0xff]  }
 0x20c   :  { %2452 = vmatprep.subr.bf16.mxu0 %v6602_v33  ;;  %v6792_v33 = vmov 0  }
 0x20f   :  { %2453 = vmatpush1.bf16.msra.mxu0 %v6600_v34  ;;  %v2866_v34 = vsel %vm2864_vm4, %v5715_v32, 0  ;;  %v6685_v32 = vld [vmem:[%s8326_s12 + $0x60] ss:$16 sps:$4 sm:$0xff]  }
 0x210   :  { %2454 = vmatprep.subr.bf16.mxu0 %v6605_v35  ;;  %v6669_v35 = vld [vmem:[%s8326_s12 + $0x4] ss:$16 sps:$4 sm:$0xff]  }
 0x213   :  { %2455 = vmatpush1.bf16.msra.mxu0 %v6603_v36  ;;  %v6670_v36 = vld [vmem:[%s8326_s12 + $0x8] ss:$16 sps:$4 sm:$0xff]  }
 0x214   :  { %2456 = vmatprep.subr.bf16.mxu0 %v6608_v37  ;;  %v6672_v37 = vld [vmem:[%s8326_s12 + $0xc] ss:$16 sps:$4 sm:$0xff]  }
 0x217   :  { %2457 = vmatpush1.bf16.msra.mxu0 %v6606_v38  ;;  %v6678_v38 = vld [vmem:[%s8326_s12 + $0x2c] ss:$16 sps:$4 sm:$0xff]  }
 0x218   :  { %2458 = vmatprep.subr.bf16.mxu0 %v6611_v39  ;;  %v6676_v39 = vld [vmem:[%s8326_s12 + $0x28] ss:$16 sps:$4 sm:$0xff]  }
 0x21b   :  { %2459 = vmatpush1.bf16.msra.mxu0 %v6609_v40  ;;  %v6684_v40 = vld [vmem:[%s8326_s12 + $0x4c] ss:$16 sps:$4 sm:$0xff]  }
 0x21c   :  { %2460 = vmatprep.subr.bf16.mxu0 %v6614_v41  ;;  %v6682_v41 = vld [vmem:[%s8326_s12 + $0x48] ss:$16 sps:$4 sm:$0xff]  }
 0x21f   :  { %2461 = vmatpush1.bf16.msra.mxu0 %v6612_v42  ;;  %v6690_v42 = vld [vmem:[%s8326_s12 + $0x6c] ss:$16 sps:$4 sm:$0xff]  }
 0x220   :  { %2462 = vmatprep.subr.bf16.mxu0 %v6617_v43  ;;  %v6688_v43 = vld [vmem:[%s8326_s12 + $0x68] ss:$16 sps:$4 sm:$0xff]  }
 0x223   :  { %2463 = vmatpush1.bf16.msra.mxu0 %v6615_v44  ;;  %v6696_v44 = vld [vmem:[%s8326_s12 + $0x8c] ss:$16 sps:$4 sm:$0xff]  }
 0x224   :  { %2464 = vmatprep.subr.bf16.mxu0 %v6620_v45  ;;  %v6694_v45 = vld [vmem:[%s8326_s12 + $0x88] ss:$16 sps:$4 sm:$0xff]  }
 0x227   :  { %2465 = vmatpush1.bf16.msra.mxu0 %v6618_v46  ;;  %v6702_v46 = vld [vmem:[%s8326_s12 + $0xac] ss:$16 sps:$4 sm:$0xff]  }
 0x228   :  { %2466 = vmatprep.subr.bf16.mxu0 %v6623_v47  ;;  %v6700_v47 = vld [vmem:[%s8326_s12 + $0xa8] ss:$16 sps:$4 sm:$0xff]  }
 0x22b   :  { %2467 = vmatpush1.bf16.msra.mxu0 %v6621_v49  ;;  %v6708_v49 = vld [vmem:[%s8326_s12 + $0xcc] ss:$16 sps:$4 sm:$0xff]  }
 0x22c   :  { %2468 = vmatprep.subr.bf16.mxu0 %v6626_v50  ;;  %v6706_v50 = vld [vmem:[%s8326_s12 + $0xc8] ss:$16 sps:$4 sm:$0xff]  }
 0x22f   :  { %2469 = vmatpush1.bf16.msra.mxu0 %v6624_v52  ;;  %v6712_v52 = vld [vmem:[%s8326_s12 + $0xe8] ss:$16 sps:$4 sm:$0xff]  }
 0x230   :  { %2470 = vmatprep.subr.bf16.mxu0 %v6629_v53  ;;  %v6720_v53 = vld [vmem:[%s8326_s12 + $0x10c] ss:$16 sps:$4 sm:$0xff]  }
 0x233   :  { %2471 = vmatpush1.bf16.msra.mxu0 %v6627_v55  ;;  %v6726_v55 = vld [vmem:[%s8326_s12 + $0x12c] ss:$16 sps:$4 sm:$0xff]  }
 0x234   :  { %2472 = vmatprep.subr.bf16.mxu0 %v6632_v56  ;;  %v6724_v56 = vld [vmem:[%s8326_s12 + $0x128] ss:$16 sps:$4 sm:$0xff]  }
 0x237   :  { %2473 = vmatpush1.bf16.msra.mxu0 %v6630_v58  ;;  %v6730_v58 = vld [vmem:[%s8326_s12 + $0x148] ss:$16 sps:$4 sm:$0xff]  }
 0x238   :  { %3367 = vmatprep.subr.bf16.mxu0 %v6672_v37  ;;  %v6705_v37 = vld [vmem:[%s8326_s12 + $0xc4] ss:$16 sps:$4 sm:$0xff]  }
 0x23a   :  { %2475 = vmatmul.mubr.bf16.vlgmr.msra.gmra.mrb[4].mxu0 %v2003_v62  ;;  %v6736_v62 = vld [vmem:[%s8326_s12 + $0x168] ss:$16 sps:$4 sm:$0xff]  }
 0x23b   :  { %3368 = vmatpush1.bf16.msra.mxu0 %v6670_v36  ;;  %v6697_v36 = vld [vmem:[%s8326_s12 + $0xa0] ss:$16 sps:$4 sm:$0xff]  }
 0x23c   :  { %3369 = vmatprep.subr.bf16.mxu0 %v6678_v38  ;;  %v6703_v38 = vld [vmem:[%s8326_s12 + $0xc0] ss:$16 sps:$4 sm:$0xff]  }
 0x23f   :  { %3370 = vmatpush1.bf16.msra.mxu0 %v6676_v39  ;;  %v6711_v39 = vld [vmem:[%s8326_s12 + $0xe4] ss:$16 sps:$4 sm:$0xff]  }
 0x240   :  { %3371 = vmatprep.subr.bf16.mxu0 %v6684_v40  ;;  %v6709_v40 = vld [vmem:[%s8326_s12 + $0xe0] ss:$16 sps:$4 sm:$0xff]  }
 0x243   :  { %3372 = vmatpush1.bf16.msra.mxu0 %v6682_v41  ;;  %v6717_v41 = vld [vmem:[%s8326_s12 + $0x104] ss:$16 sps:$4 sm:$0xff]  }
 0x244   :  { %3373 = vmatprep.subr.bf16.mxu0 %v6690_v42  ;;  %v6715_v42 = vld [vmem:[%s8326_s12 + $0x100] ss:$16 sps:$4 sm:$0xff]  }
 0x247   :  { %3374 = vmatpush1.bf16.msra.mxu0 %v6688_v43  ;;  %v6723_v43 = vld [vmem:[%s8326_s12 + $0x124] ss:$16 sps:$4 sm:$0xff]  }
 0x248   :  { %3375 = vmatprep.subr.bf16.mxu0 %v6696_v44  ;;  %v6721_v44 = vld [vmem:[%s8326_s12 + $0x120] ss:$16 sps:$4 sm:$0xff]  }
 0x24b   :  { %3376 = vmatpush1.bf16.msra.mxu0 %v6694_v45  ;;  %v6729_v45 = vld [vmem:[%s8326_s12 + $0x144] ss:$16 sps:$4 sm:$0xff]  }
 0x24c   :  { %3377 = vmatprep.subr.bf16.mxu0 %v6702_v46  ;;  %v6727_v46 = vld [vmem:[%s8326_s12 + $0x140] ss:$16 sps:$4 sm:$0xff]  }
 0x24f   :  { %3378 = vmatpush1.bf16.msra.mxu0 %v6700_v47  ;;  %v6735_v47 = vld [vmem:[%s8326_s12 + $0x164] ss:$16 sps:$4 sm:$0xff]  }
 0x250   :  { %3379 = vmatprep.subr.bf16.mxu0 %v6708_v49  ;;  %v6733_v49 = vld [vmem:[%s8326_s12 + $0x160] ss:$16 sps:$4 sm:$0xff]  }
 0x253   :  { %3380 = vmatpush1.bf16.msra.mxu0 %v6706_v50  ;;  %v6741_v50 = vld [vmem:[%s8326_s12 + $0x184] ss:$16 sps:$4 sm:$0xff]  }
 0x254   :  { %3381 = vmatprep.subr.bf16.mxu0 %v6714_v51  ;;  %v6739_v51 = vld [vmem:[%s8326_s12 + $0x180] ss:$16 sps:$4 sm:$0xff]  }
 0x257   :  { %3382 = vmatpush1.bf16.msra.mxu0 %v6712_v52  ;;  %v6747_v52 = vld [vmem:[%s8326_s12 + $0x1a4] ss:$16 sps:$4 sm:$0xff]  }
 0x258   :  { %3383 = vmatprep.subr.bf16.mxu0 %v6720_v53  ;;  %v6745_v53 = vld [vmem:[%s8326_s12 + $0x1a0] ss:$16 sps:$4 sm:$0xff]  }
 0x25b   :  { %3384 = vmatpush1.bf16.msra.mxu0 %v6718_v54  ;;  %v6753_v54 = vld [vmem:[%s8326_s12 + $0x1c4] ss:$16 sps:$4 sm:$0xff]  }
 0x25c   :  { %3385 = vmatprep.subr.bf16.mxu0 %v6726_v55  ;;  %v6756_v55 = vld [vmem:[%s8326_s12 + $0x1cc] ss:$16 sps:$4 sm:$0xff]  }
 0x25f   :  { %3386 = vmatpush1.bf16.msra.mxu0 %v6724_v56  ;;  %v6751_v56 = vld [vmem:[%s8326_s12 + $0x1c0] ss:$16 sps:$4 sm:$0xff]  }
 0x260   :  { %3387 = vmatprep.subr.bf16.mxu0 %v6732_v57  ;;  %v6754_v57 = vld [vmem:[%s8326_s12 + $0x1c8] ss:$16 sps:$4 sm:$0xff]  }
 0x263   :  { %3388 = vmatpush1.bf16.msra.mxu0 %v6730_v58  ;;  %v6759_v58 = vld [vmem:[%s8326_s12 + $0x1e4] ss:$16 sps:$4 sm:$0xff]  }
 0x264   :  { %3389 = vmatprep.subr.bf16.mxu0 %v6738_v59  ;;  %v6762_v59 = vld [vmem:[%s8326_s12 + $0x1ec] ss:$16 sps:$4 sm:$0xff]  }
 0x267   :  { %3390 = vmatpush1.bf16.msra.mxu0 %v6736_v62  ;;  %v6757_v62 = vld [vmem:[%s8326_s12 + $0x1e0] ss:$16 sps:$4 sm:$0xff]  }
 0x268   :  { %3391 = vmatprep.subr.bf16.mxu0 %v6744_v1  ;;  %v6760_v1 = vld [vmem:[%s8326_s12 + $0x1e8] ss:$16 sps:$4 sm:$0xff]  }
 0x26b   :  { %3392 = vmatpush1.bf16.msra.mxu0 %v6742_v2  ;;  %v3424_v2 = vld [vmem:[#allocation2] sm:$0xff] }
 0x26c   :  { %3393 = vmatprep.subr.bf16.mxu0 %v6750_v3  ;;  %v3428_v3 = vld [vmem:[#allocation2 + $0x20] sm:$0xff] }
 0x26f   :  { %3394 = vmatpush1.bf16.msra.mxu0 %v6748_v4  ;;  %v3425_v4 = vld [vmem:[#allocation2 + $0x8] sm:$0xff] }
 0x270   :  { %3395 = vmatprep.subr.bf16.mxu0 %v6756_v55 }
 0x273   :  { %3396 = vmatpush1.bf16.msra.mxu0 %v6754_v57  ;;  %v3468_v57 = vld [vmem:[#allocation2 + $0x160] sm:$0xff] }
 0x274   :  { %3397 = vmatprep.subr.bf16.mxu0 %v6762_v59  ;;  %v3469_v59 = vld [vmem:[#allocation2 + $0x168] sm:$0xff] }
 0x277   :  { %3398 = vmatpush1.bf16.msra.mxu0 %v6760_v1 }
 0x30d   :  { %v2476_v7 = vpop.f32.mrb[4].mxu0 }
 0x30e   :  { %v6087_v8 = vadd.f32 %v2476_v7, %v2074_v5  ;;  %v2478_v9 = vpop.f32.mrb[5].mxu0 }
 0x30f   :  { %v6088_v10 = vadd.f32 %v2478_v9, %v2078_v6  ;;  %v2480_v12 = vpop.f32.mrb[6].mxu0  ;;  %v5681_v6 = vld [vmem:[%s8321_s7] ss:$0 sm:$0xff] }
 0x310   :  { %v2481_v14 = vpop.f32.mrb[7].mxu0  ;;  %v2483_v17 = vpack.c.bf16 %v6087_v8, %v6087_v8 }
 0x311   :  { %v2484_v15 = vpack.c.bf16 %v6088_v10, %v6088_v10 }
 0x313   :  { %2652 = vmatprep.mubr.bf16.mxu1 %v2484_v15 }
 0x314   :  { %2653 = vmatmul.mubr.bf16.vlgmr.msra.gmra.mrb[4].mxu1 %v2483_v17 }
 0x315   :  { %6062 = vmatpush3.bf16.msra.mxu1 %v6650_v16  ;;  %2827 = vmatprep.mubr.bf16.mxu1 %v2484_v15  ;;  %v5698_v15 = vld [vmem:[%s8323_s9] ss:$0 sm:$0xff] }
 0x316   :  { %6063 = vmatprep.subr.bf16.mxu1 %v6651_v13 }
 0x319   :  { %6064 = vmatpush3.bf16.msra.mxu1 %v6652_v11 }
 0x31a   :  { %6065 = vmatprep.subr.bf16.mxu1 %v6653_v18 }
 0x31d   :  { %6066 = vmatpush3.bf16.msra.mxu1 %v6654_v19 }
 0x31e   :  { %6067 = vmatprep.subr.bf16.mxu1 %v6655_v20 }
 0x321   :  { %6068 = vmatpush3.bf16.msra.mxu1 %v6656_v21  ;;  %v2835_v21 = vld [vmem:[%s8340_s2] sm:$0xff] }
 0x322   :  { %6069 = vmatprep.subr.bf16.mxu1 %v6657_v22 }
 0x325   :  { %6070 = vmatpush3.bf16.msra.mxu1 %v6658_v23 }
 0x326   :  { %6071 = vmatprep.subr.bf16.mxu1 %v6659_v24 }
 0x329   :  { %6072 = vmatpush3.bf16.msra.mxu1 %v6660_v25  ;;  %v6667_v25 = vld [vmem:[%s8326_s12] ss:$16 sps:$4 sm:$0xff]  }
 0x32a   :  { %6073 = vmatprep.subr.bf16.mxu1 %v6661_v26 }
 0x32d   :  { %6074 = vmatpush3.bf16.msra.mxu1 %v6662_v27  ;;  %v6675_v27 = vld [vmem:[%s8326_s12 + $0x24] ss:$16 sps:$4 sm:$0xff]  }
 0x32e   :  { %6075 = vmatprep.subr.bf16.mxu1 %v6663_v28  ;;  %v6673_v28 = vld [vmem:[%s8326_s12 + $0x20] ss:$16 sps:$4 sm:$0xff]  }
 0x331   :  { %6076 = vmatpush3.bf16.msra.mxu1 %v6664_v29  ;;  %v6681_v29 = vld [vmem:[%s8326_s12 + $0x44] ss:$16 sps:$4 sm:$0xff]  }
 0x332   :  { %5717 = vmatprep.subr.msk.bf16.mxu1 %vm2864_vm4, %v5716_v31  ;;  %v6687_v31 = vld [vmem:[%s8326_s12 + $0x64] ss:$16 sps:$4 sm:$0xff]  }
 0x334   :  { %2828 = vmatmul.mubr.bf16.vlgmr.msra.gmra.mrb[8].mxu1 %v2483_v17 }
 0x335   :  { %2903 = vmatprep.mubr.bf16.mxu1 %v6792_v33  ;;  %2872 = vmatpush1.bf16.msra.mxu1 %v2866_v34  ;;  %v6693_v33 = vld [vmem:[%s8326_s12 + $0x84] ss:$16 sps:$4 sm:$0xff]   ;;  %v6691_v34 = vld [vmem:[%s8326_s12 + $0x80] ss:$16 sps:$4 sm:$0xff]  }
 0x336   :  { %3326 = vmatprep.subr.bf16.mxu1 %v6669_v35  ;;  %v6699_v35 = vld [vmem:[%s8326_s12 + $0xa4] ss:$16 sps:$4 sm:$0xff]  }
 0x3e7   :  { %v6055_v5 = vpop.f32.mrb[4].mxu1 }
 0x3e8   :  { %v6056_v7 = vpop.f32.mrb[5].mxu1 }
 0x3e9   :  { %v6057_v8 = vadd.f32 %v6056_v7, %v6055_v5  ;;  %v6058_v9 = vpop.f32.mrb[6].mxu1  ;;  %v5783_v5 = vcombine.low %v3424_v2, %v3428_v3  ;;  %v3429_v7 = vld [vmem:[#allocation2 + $0x28] sm:$0xff] }
 0x3ea   :  { %v6059_v10 = vpop.f32.mrb[7].mxu1  ;;  %v5786_v9 = vcombine.high %v3425_v4, %v3429_v7 }
 0x3eb   :  { %v2655_v12 = vadd.f32 %v6057_v8, %v5681_v6  ;;  %v5784_v6 = vcombine.high %v3424_v2, %v3428_v3  ;;  %v5785_v8 = vcombine.low %v3425_v4, %v3429_v7  ;;  %v2843_v10 = vld [vmem:[%s8325_s11] sm:$0x3]  ;;  %v3477_v7 = vld [vmem:[#allocation2 + $0x1a8] sm:$0xff] }
 0x3ec   :  { %5084 = vmatprep.subr.bf16.mxu0 %v5786_v9  ;;  %v3472_v4 = vld [vmem:[#allocation2 + $0x180] sm:$0xff] }
 0x3ed   :  { %5338 = vst.msk [vmem:[%s8331_s17] sm:$0xff] %vm2860_vm5, %v2655_v12 }
 0x407   :  { %v6077_v14 = vpop.f32.mrb[8].mxu1 }
 0x408   :  { %v6078_v16 = vpop.f32.mrb[9].mxu1 }
 0x409   :  { %v6079_v17 = vadd.f32 %v6078_v16, %v6077_v14  ;;  %v6080_v13 = vpop.f32.mrb[10].mxu1  ;;  %v2852_v14 = vrot.slane %v2843_v10, %v7850_v63 }
 0x40a   :  { %v6081_v11 = vpop.f32.mrb[11].mxu1 }
 0x40b   :  { %v2830_v18 = vadd.f32 %v6079_v17, %v5698_v15 }
 0x40d   :  { %v2836_v19 = vmul.f32 0.5, %v2830_v18  ;;  %5339 = vst.msk [vmem:[%s8332_s18] sm:$0xff] %vm2860_vm5, %v2830_v18 }
 0x40f   :  { %v2837_v20 = vmul.f32 1.442695, %v2836_v19 }
 0x411   :  { %6763 = vpow2.f32 %v2837_v20 }
 0x41b   :  { %v6764_v22 = vpop.eup %6763 }
 0x41c   :  { %v2839_v23 = vmul.f32 %v6764_v22, %v2835_v21  ;;  %v3432_v21 = vld [vmem:[#allocation2 + $0x40] sm:$0xff] }
 0x41e   :  { %v2840_v24 = vadd.f32 %v2839_v23, %v2655_v12  ;;  %v2848_v12 = vrot.slane %v2843_v10, %v7842_v61  ;;  %v3436_v23 = vld [vmem:[#allocation2 + $0x60] sm:$0xff] }
 0x420   :  { %v2841_v26 = vpack.c.bf16 %v2840_v24, %v2840_v24  ;;  %v3433_v24 = vld [vmem:[#allocation2 + $0x48] sm:$0xff] }
 0x422   :  { %5718 = vmatmul.mubr.msk.bf16.vlgmr.msra.gmra.mrb[12].mxu1 %vm2860_vm5, %v2841_v26 }
 0x423   :  { %3327 = vmatpush1.bf16.msra.mxu1 %v6667_v25  ;;  %v3437_v25 = vld [vmem:[#allocation2 + $0x68] sm:$0xff] }
 0x424   :  { %3328 = vmatprep.subr.bf16.mxu1 %v6675_v27 }
 0x427   :  { %3329 = vmatpush1.bf16.msra.mxu1 %v6673_v28 }
 0x428   :  { %3330 = vmatprep.subr.bf16.mxu1 %v6681_v29  ;;  %v5792_v29 = vcombine.high %v3432_v21, %v3436_v23 }
 0x42b   :  { %3331 = vmatpush1.bf16.msra.mxu1 %v6679_v30  ;;  %v5794_v30 = vcombine.high %v3433_v24, %v3437_v25 }
 0x42c   :  { %3332 = vmatprep.subr.bf16.mxu1 %v6687_v31  ;;  %v3440_v31 = vld [vmem:[#allocation2 + $0x80] sm:$0xff] }
 0x42f   :  { %3333 = vmatpush1.bf16.msra.mxu1 %v6685_v32  ;;  %v3444_v32 = vld [vmem:[#allocation2 + $0xa0] sm:$0xff] }
 0x430   :  { %3334 = vmatprep.subr.bf16.mxu1 %v6693_v33  ;;  %v3441_v33 = vld [vmem:[#allocation2 + $0x88] sm:$0xff] }
 0x433   :  { %3335 = vmatpush1.bf16.msra.mxu1 %v6691_v34  ;;  %v3445_v34 = vld [vmem:[#allocation2 + $0xa8] sm:$0xff] }
 0x434   :  { %3336 = vmatprep.subr.bf16.mxu1 %v6699_v35  ;;  %v5791_v35 = vcombine.low %v3432_v21, %v3436_v23  ;;  %v3492_v21 = vld [vmem:[#allocation2 + $0x220] sm:$0xff]  ;;  %v3493_v23 = vld [vmem:[#allocation2 + $0x228] sm:$0xff] }
 0x437   :  { %3337 = vmatpush1.bf16.msra.mxu1 %v6697_v36  ;;  %v5793_v36 = vcombine.low %v3433_v24, %v3437_v25 }
 0x438   :  { %3338 = vmatprep.subr.bf16.mxu1 %v6705_v37  ;;  %v5800_v37 = vcombine.high %v3440_v31, %v3444_v32 }
 0x43b   :  { %3339 = vmatpush1.bf16.msra.mxu1 %v6703_v38  ;;  %v5802_v38 = vcombine.high %v3441_v33, %v3445_v34 }
 0x43c   :  { %3340 = vmatprep.subr.bf16.mxu1 %v6711_v39  ;;  %v3448_v39 = vld [vmem:[#allocation2 + $0xc0] sm:$0xff] }
 0x43f   :  { %3341 = vmatpush1.bf16.msra.mxu1 %v6709_v40  ;;  %v3452_v40 = vld [vmem:[#allocation2 + $0xe0] sm:$0xff] }
 0x440   :  { %3342 = vmatprep.subr.bf16.mxu1 %v6717_v41  ;;  %v3449_v41 = vld [vmem:[#allocation2 + $0xc8] sm:$0xff] }
 0x443   :  { %3343 = vmatpush1.bf16.msra.mxu1 %v6715_v42  ;;  %v3453_v42 = vld [vmem:[#allocation2 + $0xe8] sm:$0xff] }
 0x444   :  { %3344 = vmatprep.subr.bf16.mxu1 %v6723_v43  ;;  %v5799_v43 = vcombine.low %v3440_v31, %v3444_v32  ;;  %v3501_v31 = vld [vmem:[#allocation2 + $0x268] sm:$0xff] }
 0x447   :  { %3345 = vmatpush1.bf16.msra.mxu1 %v6721_v44  ;;  %v5801_v44 = vcombine.low %v3441_v33, %v3445_v34 }
 0x448   :  { %3346 = vmatprep.subr.bf16.mxu1 %v6729_v45  ;;  %v5808_v45 = vcombine.high %v3448_v39, %v3452_v40 }
 0x44b   :  { %3347 = vmatpush1.bf16.msra.mxu1 %v6727_v46  ;;  %v5810_v46 = vcombine.high %v3449_v41, %v3453_v42 }
 0x44c   :  { %3348 = vmatprep.subr.bf16.mxu1 %v6735_v47  ;;  %v3456_v47 = vld [vmem:[#allocation2 + $0x100] sm:$0xff] }
 0x44f   :  { %3349 = vmatpush1.bf16.msra.mxu1 %v6733_v49  ;;  %v3460_v49 = vld [vmem:[#allocation2 + $0x120] sm:$0xff] }
 0x450   :  { %3350 = vmatprep.subr.bf16.mxu1 %v6741_v50  ;;  %v3457_v50 = vld [vmem:[#allocation2 + $0x108] sm:$0xff] }
 0x453   :  { %3351 = vmatpush1.bf16.msra.mxu1 %v6739_v51  ;;  %v3461_v51 = vld [vmem:[#allocation2 + $0x128] sm:$0xff] }
 0x454   :  { %3352 = vmatprep.subr.bf16.mxu1 %v6747_v52  ;;  %v5807_v52 = vcombine.low %v3448_v39, %v3452_v40  ;;  %v5818_v55 = vcombine.high %v3457_v50, %v3461_v51  ;;  %v5817_v1 = vcombine.low %v3457_v50, %v3461_v51  ;;  %v3509_v39 = vld [vmem:[#allocation2 + $0x2a8] sm:$0xff] }
 0x457   :  { %3353 = vmatpush1.bf16.msra.mxu1 %v6745_v53  ;;  %v5809_v53 = vcombine.low %v3449_v41, %v3453_v42 }
 0x458   :  { %3354 = vmatprep.subr.bf16.mxu1 %v6753_v54  ;;  %v5816_v54 = vcombine.high %v3456_v47, %v3460_v49 }
 0x45b   :  { %3355 = vmatpush1.bf16.msra.mxu1 %v6751_v56  ;;  %v3464_v56 = vld [vmem:[#allocation2 + $0x140] sm:$0xff] }
 0x45c   :  { %3356 = vmatprep.subr.bf16.mxu1 %v6759_v58  ;;  %v3465_v58 = vld [vmem:[#allocation2 + $0x148] sm:$0xff]  ;;  %v5824_v2 = vcombine.high %v3464_v56, %v3468_v57 }
 0x45d   :  { %v5826_v3 = vcombine.high %v3465_v58, %v3469_v59  ;;  %v5825_v9 = vcombine.low %v3465_v58, %v3469_v59 }
 0x45f   :  { %3357 = vmatpush1.bf16.msra.mxu1 %v6757_v62  ;;  %v5815_v62 = vcombine.low %v3456_v47, %v3460_v49  ;;  %v3517_v47 = vld [vmem:[#allocation2 + $0x2e8] sm:$0xff] }
 0x460   :  { %5002 = vmatprep.subr.bf16.mxu1 %v5784_v6  ;;  %v3473_v6 = vld [vmem:[#allocation2 + $0x188] sm:$0xff] }
 0x4f5   :  { %v2905_v15 = vpop.f32.mrb[12].mxu1 }
 0x4f6   :  { %v2906_v16 = vadd.f32 %v2905_v15, %v2848_v12  ;;  %v2907_v17 = vpop.f32.mrb[13].mxu1  ;;  %v5834_v12 = vcombine.high %v3473_v6, %v3477_v7  ;;  %v3484_v15 = vld [vmem:[#allocation2 + $0x1e0] sm:$0xff] }
 0x4f7   :  { %v2908_v13 = vadd.f32 %v2907_v17, %v2852_v14  ;;  %v2909_v11 = vpop.f32.mrb[14].mxu1  ;;  %v3480_v14 = vld [vmem:[#allocation2 + $0x1c0] sm:$0xff]  ;;  %v3485_v17 = vld [vmem:[#allocation2 + $0x1e8] sm:$0xff] }
 0x4f8   :  { %vm2912_vm6 = vcmp.gt.f32.partialorder %v2906_v16, 0.0  ;;  %v2914_v18 = vmul.f32 0.01, %v2906_v16  ;;  %v2910_v19 = vpop.f32.mrb[15].mxu1  ;;  %v5833_v11 = vcombine.low %v3473_v6, %v3477_v7  ;;  %v5839_v24 = vcombine.low %v3480_v14, %v3484_v15 }
 0x4f9   :  { %vm2913_vm7 = vcmp.gt.f32.partialorder %v2908_v13, 0.0  ;;  %v2915_v20 = vmul.f32 0.01, %v2908_v13 }
 0x4fa   :  { %v2916_v22 = vsel %vm2912_vm6, %v2906_v16, %v2914_v18  ;;  %v3481_v16 = vld [vmem:[#allocation2 + $0x1c8] sm:$0xff]  ;;  %v5840_v18 = vcombine.high %v3480_v14, %v3484_v15  ;;  %v3540_v14 = vld [vmem:[#allocation2 + $0x3a0] sm:$0xff] }
 0x4fb   :  { %v2917_v26 = vsel %vm2913_vm7, %v2908_v13, %v2915_v20  ;;  %v2918_v28 = vpack.c.bf16 %v2916_v22, %v2916_v22  ;;  %v5842_v19 = vcombine.high %v3481_v16, %v3485_v17  ;;  %v3488_v20 = vld [vmem:[#allocation2 + $0x200] sm:$0xff]  ;;  %v3489_v22 = vld [vmem:[#allocation2 + $0x208] sm:$0xff]  ;;  %v5841_v25 = vcombine.low %v3481_v16, %v3485_v17 }
 0x4fc   :  { %v2919_v27 = vpack.c.bf16 %v2917_v26, %v2917_v26  ;;  %v5848_v26 = vcombine.high %v3488_v20, %v3492_v21  ;;  %v5847_v32 = vcombine.low %v3488_v20, %v3492_v21  ;;  %v5849_v33 = vcombine.low %v3489_v22, %v3493_v23  ;;  %v3537_v15 = vld [vmem:[#allocation2 + $0x388] sm:$0xff]  ;;  %v3548_v20 = vld [vmem:[#allocation2 + $0x3e0] sm:$0xff] }
 0x4fd   :  { %v3541_v17 = vld [vmem:[#allocation2 + $0x3a8] sm:$0xff] }
 0x4fe   :  { %3358 = vmatprep.mubr.bf16.mxu1 %v2919_v27  ;;  %3399 = vmatprep.mubr.bf16.mxu0 %v2919_v27  ;;  %v5850_v27 = vcombine.high %v3489_v22, %v3493_v23  ;;  %v3545_v21 = vld [vmem:[#allocation2 + $0x3c8] sm:$0xff] }
 0x4ff   :  { %3359 = vmatmul.mubr.bf16.vlgmr.msra.gmra.mrb[16].mxu1 %v2918_v28  ;;  %3400 = vmatmul.mubr.bf16.vlgmr.msra.gmra.mrb[8].mxu0 %v2918_v28  ;;  %v3496_v28 = vld [vmem:[#allocation2 + $0x240] sm:$0xff]  ;;  %v3549_v23 = vld [vmem:[#allocation2 + $0x3e8] sm:$0xff] }
 0x500   :  { %5003 = vmatpush1.bf16.msra.mxu1 %v5783_v5  ;;  %5085 = vmatpush1.bf16.msra.mxu0 %v5785_v8  ;;  %v3476_v5 = vld [vmem:[#allocation2 + $0x1a0] sm:$0xff]  ;;  %v5823_v8 = vcombine.low %v3464_v56, %v3468_v57  ;;  %v3525_v56 = vld [vmem:[#allocation2 + $0x328] sm:$0xff] }
 0x501   :  { %5004 = vmatprep.subr.bf16.mxu1 %v5792_v29  ;;  %5086 = vmatprep.subr.bf16.mxu0 %v5794_v30  ;;  %v5832_v10 = vcombine.high %v3472_v4, %v3476_v5  ;;  %v5831_v13 = vcombine.low %v3472_v4, %v3476_v5  ;;  %v3500_v29 = vld [vmem:[#allocation2 + $0x260] sm:$0xff]  ;;  %v3497_v30 = vld [vmem:[#allocation2 + $0x248] sm:$0xff] }
 0x502   :  { %v5856_v34 = vcombine.high %v3496_v28, %v3500_v29  ;;  %v5855_v40 = vcombine.low %v3496_v28, %v3500_v29  ;;  %v5857_v41 = vcombine.low %v3497_v30, %v3501_v31  ;;  %v3533_v4 = vld [vmem:[#allocation2 + $0x368] sm:$0xff]  ;;  %v3556_v28 = vld [vmem:[#allocation2 + $0x420] sm:$0xff] }
 0x503   :  { %v3553_v29 = vld [vmem:[#allocation2 + $0x408] sm:$0xff] }
 0x504   :  { %5005 = vmatpush1.bf16.msra.mxu1 %v5791_v35  ;;  %5087 = vmatpush1.bf16.msra.mxu0 %v5793_v36  ;;  %v5858_v35 = vcombine.high %v3497_v30, %v3501_v31  ;;  %v3504_v36 = vld [vmem:[#allocation2 + $0x280] sm:$0xff] }
 0x505   :  { %5006 = vmatprep.subr.bf16.mxu1 %v5800_v37  ;;  %5088 = vmatprep.subr.bf16.mxu0 %v5802_v38  ;;  %v3508_v37 = vld [vmem:[#allocation2 + $0x2a0] sm:$0xff]  ;;  %v3505_v38 = vld [vmem:[#allocation2 + $0x288] sm:$0xff] }
 0x506   :  { %v5864_v42 = vcombine.high %v3504_v36, %v3508_v37  ;;  %v5863_v49 = vcombine.low %v3504_v36, %v3508_v37  ;;  %v5865_v50 = vcombine.low %v3505_v38, %v3509_v39 }
 0x508   :  { %5007 = vmatpush1.bf16.msra.mxu1 %v5799_v43  ;;  %5089 = vmatpush1.bf16.msra.mxu0 %v5801_v44  ;;  %v5866_v43 = vcombine.high %v3505_v38, %v3509_v39  ;;  %v3512_v44 = vld [vmem:[#allocation2 + $0x2c0] sm:$0xff] }
 0x509   :  { %5008 = vmatprep.subr.bf16.mxu1 %v5808_v45  ;;  %5090 = vmatprep.subr.bf16.mxu0 %v5810_v46  ;;  %v3516_v45 = vld [vmem:[#allocation2 + $0x2e0] sm:$0xff]  ;;  %v3513_v46 = vld [vmem:[#allocation2 + $0x2c8] sm:$0xff] }
 0x50a   :  { %v5872_v51 = vcombine.high %v3512_v44, %v3516_v45  ;;  %v5871_v57 = vcombine.low %v3512_v44, %v3516_v45  ;;  %v5873_v58 = vcombine.low %v3513_v46, %v3517_v47 }
 0x50c   :  { %5009 = vmatpush1.bf16.msra.mxu1 %v5807_v52  ;;  %5091 = vmatpush1.bf16.msra.mxu0 %v5809_v53  ;;  %v5874_v52 = vcombine.high %v3513_v46, %v3517_v47  ;;  %v3520_v53 = vld [vmem:[#allocation2 + $0x300] sm:$0xff] }
 0x50d   :  { %5010 = vmatprep.subr.bf16.mxu1 %v5816_v54  ;;  %5092 = vmatprep.subr.bf16.mxu0 %v5818_v55  ;;  %v3524_v54 = vld [vmem:[#allocation2 + $0x320] sm:$0xff]  ;;  %v3521_v55 = vld [vmem:[#allocation2 + $0x308] sm:$0xff] }
 0x50e   :  { %v5880_v59 = vcombine.high %v3520_v53, %v3524_v54  ;;  %v5879_v5 = vcombine.low %v3520_v53, %v3524_v54  ;;  %v5881_v6 = vcombine.low %v3521_v55, %v3525_v56 }
 0x510   :  { %5011 = vmatpush1.bf16.msra.mxu1 %v5815_v62  ;;  %5093 = vmatpush1.bf16.msra.mxu0 %v5817_v1  ;;  %v5882_v62 = vcombine.high %v3521_v55, %v3525_v56  ;;  %v3528_v1 = vld [vmem:[#allocation2 + $0x340] sm:$0xff] }
 0x511   :  { %5012 = vmatprep.subr.bf16.mxu1 %v5824_v2  ;;  %5094 = vmatprep.subr.bf16.mxu0 %v5826_v3  ;;  %v3532_v2 = vld [vmem:[#allocation2 + $0x360] sm:$0xff]  ;;  %v3529_v3 = vld [vmem:[#allocation2 + $0x348] sm:$0xff] }
 0x512   :  { %v5888_v7 = vcombine.high %v3528_v1, %v3532_v2  ;;  %v3560_v55 = vld [vmem:[#allocation2 + $0x440] sm:$0xff] }
 0x514   :  { %5013 = vmatpush1.bf16.msra.mxu1 %v5823_v8  ;;  %5095 = vmatpush1.bf16.msra.mxu0 %v5825_v9  ;;  %v5890_v8 = vcombine.high %v3529_v3, %v3533_v4  ;;  %v5887_v9 = vcombine.low %v3528_v1, %v3532_v2 }
 0x515   :  { %5014 = vmatprep.subr.bf16.mxu1 %v5832_v10  ;;  %5096 = vmatprep.subr.bf16.mxu0 %v5834_v12  ;;  %v5889_v10 = vcombine.low %v3529_v3, %v3533_v4  ;;  %v3536_v12 = vld [vmem:[#allocation2 + $0x380] sm:$0xff] }
 0x516   :  { %v5896_v16 = vcombine.high %v3536_v12, %v3540_v14  ;;  %v3568_v3 = vld [vmem:[#allocation2 + $0x480] sm:$0xff] }
 0x518   :  { %5015 = vmatpush1.bf16.msra.mxu1 %v5831_v13  ;;  %5097 = vmatpush1.bf16.msra.mxu0 %v5833_v11  ;;  %v5895_v13 = vcombine.low %v3536_v12, %v3540_v14  ;;  %v5897_v11 = vcombine.low %v3537_v15, %v3541_v17 }
 0x519   :  { %5016 = vmatprep.subr.bf16.mxu1 %v5840_v18  ;;  %5098 = vmatprep.subr.bf16.mxu0 %v5842_v19  ;;  %v5898_v18 = vcombine.high %v3537_v15, %v3541_v17  ;;  %v3544_v19 = vld [vmem:[#allocation2 + $0x3c0] sm:$0xff] }
 0x51a   :  { %v5904_v22 = vcombine.high %v3544_v19, %v3548_v20  ;;  %v3580_v17 = vld [vmem:[#allocation2 + $0x4e0] sm:$0xff] }
 0x51c   :  { %5017 = vmatpush1.bf16.msra.mxu1 %v5839_v24  ;;  %5099 = vmatpush1.bf16.msra.mxu0 %v5841_v25  ;;  %v5903_v24 = vcombine.low %v3544_v19, %v3548_v20  ;;  %v5905_v25 = vcombine.low %v3545_v21, %v3549_v23 }
 0x51d   :  { %5018 = vmatprep.subr.bf16.mxu1 %v5848_v26  ;;  %5100 = vmatprep.subr.bf16.mxu0 %v5850_v27  ;;  %v5906_v26 = vcombine.high %v3545_v21, %v3549_v23  ;;  %v3552_v27 = vld [vmem:[#allocation2 + $0x400] sm:$0xff] }
 0x51e   :  { %v5911_v30 = vcombine.low %v3552_v27, %v3556_v28  ;;  %v5912_v31 = vcombine.high %v3552_v27, %v3556_v28  ;;  %v3588_v23 = vld [vmem:[#allocation2 + $0x520] sm:$0xff] }
 0x520   :  { %5019 = vmatpush1.bf16.msra.mxu1 %v5847_v32  ;;  %5101 = vmatpush1.bf16.msra.mxu0 %v5849_v33  ;;  %v3557_v32 = vld [vmem:[#allocation2 + $0x428] sm:$0xff] }
 0x521   :  { %5020 = vmatprep.subr.bf16.mxu1 %v5856_v34  ;;  %5102 = vmatprep.subr.bf16.mxu0 %v5858_v35  ;;  %v5913_v33 = vcombine.low %v3553_v29, %v3557_v32  ;;  %v5914_v34 = vcombine.high %v3553_v29, %v3557_v32  ;;  %v8242_v35 = vld [vmem:[%s8327_s13] sm:$0xf]  ;;  %v3593_v32 = vld [vmem:[#allocation2 + $0x548] sm:$0xff] }
 0x522   :  { %v2989_v36 = vrot.slane %v8242_v35, %v7842_v61  ;;  %v2993_v37 = vrot.slane %v8242_v35, %v7850_v63  ;;  %v3001_v38 = vrot.slane %v8242_v35, %v7853_v0 }
 0x524   :  { %5021 = vmatpush1.bf16.msra.mxu1 %v5855_v40  ;;  %5103 = vmatpush1.bf16.msra.mxu0 %v5857_v41 }
 0x525   :  { %5022 = vmatprep.subr.bf16.mxu1 %v5864_v42  ;;  %5104 = vmatprep.subr.bf16.mxu0 %v5866_v43 }
 0x528   :  { %5023 = vmatpush1.bf16.msra.mxu1 %v5863_v49  ;;  %5105 = vmatpush1.bf16.msra.mxu0 %v5865_v50 }
 0x529   :  { %5024 = vmatprep.subr.bf16.mxu1 %v5872_v51  ;;  %5106 = vmatprep.subr.bf16.mxu0 %v5874_v52 }
 0x52c   :  { %5025 = vmatpush1.bf16.msra.mxu1 %v5871_v57  ;;  %5107 = vmatpush1.bf16.msra.mxu0 %v5873_v58  ;;  %v3564_v57 = vld [vmem:[#allocation2 + $0x460] sm:$0xff]  ;;  %v3561_v58 = vld [vmem:[#allocation2 + $0x448] sm:$0xff] }
 0x52d   :  { %5026 = vmatprep.subr.bf16.mxu1 %v5880_v59  ;;  %5108 = vmatprep.subr.bf16.mxu0 %v5882_v62  ;;  %v3565_v59 = vld [vmem:[#allocation2 + $0x468] sm:$0xff]  ;;  %v5920_v4 = vcombine.high %v3560_v55, %v3564_v57 }
 0x52e   :  { %v5921_v12 = vcombine.low %v3561_v58, %v3565_v59 }
 0x530   :  { %5027 = vmatpush1.bf16.msra.mxu1 %v5879_v5  ;;  %5109 = vmatpush1.bf16.msra.mxu0 %v5881_v6  ;;  %v5922_v5 = vcombine.high %v3561_v58, %v3565_v59  ;;  %v3572_v6 = vld [vmem:[#allocation2 + $0x4a0] sm:$0xff]  ;;  %v3617_v59 = vld [vmem:[#allocation2 + $0x608] sm:$0xff] }
 0x531   :  { %5028 = vmatprep.subr.bf16.mxu1 %v5888_v7  ;;  %5110 = vmatprep.subr.bf16.mxu0 %v5890_v8  ;;  %v3569_v7 = vld [vmem:[#allocation2 + $0x488] sm:$0xff]  ;;  %v5928_v14 = vcombine.high %v3568_v3, %v3572_v6  ;;  %v3620_v58 = vld [vmem:[#allocation2 + $0x620] sm:$0xff] }
 0x532   :  { %v3573_v8 = vld [vmem:[#allocation2 + $0x4a8] sm:$0xff] }
 0x533   :  { %v5930_v15 = vcombine.high %v3569_v7, %v3573_v8  ;;  %v5929_v19 = vcombine.low %v3569_v7, %v3573_v8  ;;  %v3624_v7 = vld [vmem:[#allocation2 + $0x640] sm:$0xff] }
 0x534   :  { %5029 = vmatpush1.bf16.msra.mxu1 %v5887_v9  ;;  %5111 = vmatpush1.bf16.msra.mxu0 %v5889_v10  ;;  %v5919_v10 = vcombine.low %v3560_v55, %v3564_v57  ;;  %v3616_v57 = vld [vmem:[#allocation2 + $0x600] sm:$0xff] }
 0x535   :  { %5030 = vmatprep.subr.bf16.mxu1 %v5896_v16  ;;  %5112 = vmatprep.subr.bf16.mxu0 %v5898_v18  ;;  %v3576_v16 = vld [vmem:[#allocation2 + $0x4c0] sm:$0xff]  ;;  %v5927_v18 = vcombine.low %v3568_v3, %v3572_v6 }
 0x536   :  { %v5936_v20 = vcombine.high %v3576_v16, %v3580_v17  ;;  %v3628_v8 = vld [vmem:[#allocation2 + $0x660] sm:$0xff] }
 0x538   :  { %5031 = vmatpush1.bf16.msra.mxu1 %v5895_v13  ;;  %5113 = vmatpush1.bf16.msra.mxu0 %v5897_v11  ;;  %v3577_v13 = vld [vmem:[#allocation2 + $0x4c8] sm:$0xff] }
 0x539   :  { %5032 = vmatprep.subr.bf16.mxu1 %v5904_v22  ;;  %5114 = vmatprep.subr.bf16.mxu0 %v5906_v26  ;;  %v3581_v11 = vld [vmem:[#allocation2 + $0x4e8] sm:$0xff]  ;;  %v3584_v22 = vld [vmem:[#allocation2 + $0x500] sm:$0xff]  ;;  %v5935_v26 = vcombine.low %v3576_v16, %v3580_v17  ;;  %v5984_v16 = vcombine.high %v3624_v7, %v3628_v8 }
 0x53a   :  { %v5938_v21 = vcombine.high %v3577_v13, %v3581_v11  ;;  %v5937_v27 = vcombine.low %v3577_v13, %v3581_v11  ;;  %v5944_v28 = vcombine.high %v3584_v22, %v3588_v23  ;;  %v3632_v13 = vld [vmem:[#allocation2 + $0x680] sm:$0xff] }
 0x53b   :  { %v3636_v11 = vld [vmem:[#allocation2 + $0x6a0] sm:$0xff] }
 0x53c   :  { %5033 = vmatpush1.bf16.msra.mxu1 %v5903_v24  ;;  %5115 = vmatpush1.bf16.msra.mxu0 %v5905_v25  ;;  %v3585_v24 = vld [vmem:[#allocation2 + $0x508] sm:$0xff] }
 0x53d   :  { %5043 = vmatprep.subr.bf16.mxu1 %v5912_v31  ;;  %5125 = vmatprep.subr.bf16.mxu0 %v5914_v34  ;;  %v3589_v25 = vld [vmem:[#allocation2 + $0x528] sm:$0xff]  ;;  %v3596_v31 = vld [vmem:[#allocation2 + $0x560] sm:$0xff]  ;;  %v5943_v34 = vcombine.low %v3584_v22, %v3588_v23  ;;  %v5992_v22 = vcombine.high %v3632_v13, %v3636_v11 }
 0x53e   :  { %v5946_v29 = vcombine.high %v3585_v24, %v3589_v25 }
 0x5d2   :  { %v3360_v39 = vpop.f32.mrb[16].mxu1  ;;  %v8250_v40 = vpop.f32.mrb[8].mxu0 }
 0x5d3   :  { %v3361_v41 = vadd.f32 %v3360_v39, %v2989_v36  ;;  %v3362_v42 = vpop.f32.mrb[17].mxu1  ;;  %v3403_v43 = vpop.f32.mrb[9].mxu0  ;;  %v5945_v36 = vcombine.low %v3585_v24, %v3589_v25  ;;  %v3600_v39 = vld [vmem:[#allocation2 + $0x580] sm:$0xff] }
 0x5d4   :  { %v3363_v44 = vadd.f32 %v3362_v42, %v2993_v37  ;;  %v3404_v45 = vadd.f32 %v3403_v43, %v3001_v38  ;;  %v3364_v46 = vpop.f32.mrb[18].mxu1  ;;  %v3405_v47 = vpop.f32.mrb[10].mxu0  ;;  %v3601_v42 = vld [vmem:[#allocation2 + $0x588] sm:$0xff]  ;;  %v3640_v24 = vld [vmem:[#allocation2 + $0x6c0] sm:$0xff] }
 0x5d5   :  { %vm3408_vm8 = vcmp.gt.f32.partialorder %v3361_v41, 0.0  ;;  %v3412_v49 = vmul.f32 0.01, %v3361_v41  ;;  %v3365_v53 = vpop.f32.mrb[19].mxu1  ;;  %v3406_v54 = vpop.f32.mrb[11].mxu0  ;;  %v3605_v43 = vld [vmem:[#allocation2 + $0x5a8] sm:$0xff] }
 0x5d6   :  { %vm3409_vm9 = vcmp.gt.f32.partialorder %v3363_v44, 0.0  ;;  %v3413_v50 = vmul.f32 0.01, %v3363_v44  ;;  %vm3411_vm10 = vcmp.gt.f32.partialorder %v3404_v45, 0.0  ;;  %v3415_v51 = vmul.f32 0.01, %v3404_v45 }
 0x5d7   :  { %v3416_v52 = vsel %vm3408_vm8, %v3361_v41, %v3412_v49  ;;  %v3604_v41 = vld [vmem:[#allocation2 + $0x5a0] sm:$0xff]  ;;  %v5962_v47 = vcombine.high %v3601_v42, %v3605_v43  ;;  %v5961_v54 = vcombine.low %v3601_v42, %v3605_v43 }
 0x5d8   :  { %v3417_v56 = vsel %vm3409_vm9, %v3363_v44, %v3413_v50  ;;  %v3419_v1 = vsel %vm3411_vm10, %v3404_v45, %v3415_v51  ;;  %v8254_v2 = vpack.c.bf16 %v3416_v52, %v3416_v52  ;;  %v5960_v46 = vcombine.high %v3600_v39, %v3604_v41  ;;  %v3608_v49 = vld [vmem:[#allocation2 + $0x5c0] sm:$0xff]  ;;  %v3609_v51 = vld [vmem:[#allocation2 + $0x5c8] sm:$0xff] }
 0x5d9   :  { %v8252_v62 = vpack.c.bf16 %v3417_v56, %v3417_v56  ;;  %v8258_v9 = vpack.c.bf16 %v3419_v1, %v3419_v1  ;;  %v3612_v50 = vld [vmem:[#allocation2 + $0x5e0] sm:$0xff]  ;;  %v3613_v52 = vld [vmem:[#allocation2 + $0x5e8] sm:$0xff]  ;;  %v5959_v53 = vcombine.low %v3600_v39, %v3604_v41 }
 0x5da   :  { %v5968_v55 = vcombine.high %v3608_v49, %v3612_v50  ;;  %v5970_v56 = vcombine.high %v3609_v51, %v3613_v52  ;;  %v3621_v1 = vld [vmem:[#allocation2 + $0x628] sm:$0xff]  ;;  %v5967_v3 = vcombine.low %v3608_v49, %v3612_v50  ;;  %v3644_v25 = vld [vmem:[#allocation2 + $0x6e0] sm:$0xff] }
 0x5db   :  { %5034 = vmatprep.mubr.bf16.mxu1 %v8252_v62  ;;  %5116 = vmatprep.mubr.bf16.mxu0 %v8252_v62  ;;  %v5978_v6 = vcombine.high %v3617_v59, %v3621_v1  ;;  %v3656_v42 = vld [vmem:[#allocation2 + $0x740] sm:$0xff] }
 0x5dc   :  { %5035 = vmatmul.mubr.bf16.vlgmr.msra.gmra.mrb[20].mxu1 %v8254_v2  ;;  %5117 = vmatmul.mubr.bf16.vlgmr.msra.gmra.mrb[12].mxu0 %v8254_v2  ;;  %v3660_v43 = vld [vmem:[#allocation2 + $0x760] sm:$0xff] }
 0x5dd   :  { %5044 = vmatpush1.bf16.msra.mxu1 %v5911_v30  ;;  %5126 = vmatpush1.bf16.msra.mxu0 %v5913_v33  ;;  %v3592_v30 = vld [vmem:[#allocation2 + $0x540] sm:$0xff]  ;;  %v3597_v33 = vld [vmem:[#allocation2 + $0x568] sm:$0xff]  ;;  %v6016_v49 = vcombine.high %v3656_v42, %v3660_v43 }
 0x5de   :  { %5075 = vmatprep.mubr.bf16.mxu1 %v8258_v9  ;;  %5157 = vmatprep.mubr.bf16.mxu0 %v8258_v9  ;;  %v5952_v37 = vcombine.high %v3592_v30, %v3596_v31  ;;  %v5954_v38 = vcombine.high %v3593_v32, %v3597_v33  ;;  %v5951_v44 = vcombine.low %v3592_v30, %v3596_v31 }
 0x5df   :  { %5045 = vmatprep.subr.bf16.mxu1 %v5920_v4  ;;  %5127 = vmatprep.subr.bf16.mxu0 %v5922_v5  ;;  %v5953_v45 = vcombine.low %v3593_v32, %v3597_v33  ;;  %v5969_v4 = vcombine.low %v3609_v51, %v3613_v52  ;;  %v5976_v5 = vcombine.high %v3616_v57, %v3620_v58  ;;  %v3648_v32 = vld [vmem:[#allocation2 + $0x700] sm:$0xff] }
 0x5e0   :  { %v6000_v30 = vcombine.high %v3640_v24, %v3644_v25  ;;  %v3652_v33 = vld [vmem:[#allocation2 + $0x720] sm:$0xff]  ;;  %v2997_v52 = vrot.slane %v8242_v35, %v7936_v48 }
 0x5e1   :  { %5046 = vmatpush1.bf16.msra.mxu1 %v5919_v10  ;;  %5128 = vmatpush1.bf16.msra.mxu0 %v5921_v12  ;;  %v3625_v10 = vld [vmem:[#allocation2 + $0x648] sm:$0xff]  ;;  %v6008_v39 = vcombine.high %v3648_v32, %v3652_v33  ;;  %v3664_v51 = vld [vmem:[#allocation2 + $0x780] sm:$0xff] }
 0x5e2   :  { %5047 = vmatprep.subr.bf16.mxu1 %v5928_v14  ;;  %5129 = vmatprep.subr.bf16.mxu0 %v5930_v15  ;;  %v3629_v12 = vld [vmem:[#allocation2 + $0x668] sm:$0xff]  ;;  %v5975_v14 = vcombine.low %v3616_v57, %v3620_v58  ;;  %v5977_v15 = vcombine.low %v3617_v59, %v3621_v1  ;;  %v3672_v1 = vld [vmem:[#allocation2 + $0x7c0] sm:$0xff] }
 0x5e3   :  { %v5986_v17 = vcombine.high %v3625_v10, %v3629_v12 }
 0x5e5   :  { %5048 = vmatpush1.bf16.msra.mxu1 %v5927_v18  ;;  %5130 = vmatpush1.bf16.msra.mxu0 %v5929_v19  ;;  %v3633_v18 = vld [vmem:[#allocation2 + $0x688] sm:$0xff] }
 0x5e6   :  { %5049 = vmatprep.subr.bf16.mxu1 %v5936_v20  ;;  %5131 = vmatprep.subr.bf16.mxu0 %v5938_v21  ;;  %v3637_v19 = vld [vmem:[#allocation2 + $0x6a8] sm:$0xff]  ;;  %v5983_v20 = vcombine.low %v3624_v7, %v3628_v8  ;;  %v5985_v21 = vcombine.low %v3625_v10, %v3629_v12  ;;  %v3426_v12 = vld [vmem:[#allocation2 + $0x10] sm:$0xff] }
 0x5e7   :  { %v5994_v23 = vcombine.high %v3633_v18, %v3637_v19 }
 0x5e9   :  { %5050 = vmatpush1.bf16.msra.mxu1 %v5935_v26  ;;  %5132 = vmatpush1.bf16.msra.mxu0 %v5937_v27  ;;  %v3641_v26 = vld [vmem:[#allocation2 + $0x6c8] sm:$0xff] }
 0x5ea   :  { %5051 = vmatprep.subr.bf16.mxu1 %v5944_v28  ;;  %5133 = vmatprep.subr.bf16.mxu0 %v5946_v29  ;;  %v3645_v27 = vld [vmem:[#allocation2 + $0x6e8] sm:$0xff]  ;;  %v5991_v28 = vcombine.low %v3632_v13, %v3636_v11  ;;  %v5993_v29 = vcombine.low %v3633_v18, %v3637_v19 }
 0x5eb   :  { %v6002_v31 = vcombine.high %v3641_v26, %v3645_v27 }
 0x5ed   :  { %5052 = vmatpush1.bf16.msra.mxu1 %v5943_v34  ;;  %5134 = vmatpush1.bf16.msra.mxu0 %v5945_v36  ;;  %v3649_v34 = vld [vmem:[#allocation2 + $0x708] sm:$0xff] }
 0x5ee   :  { %5053 = vmatprep.subr.bf16.mxu1 %v5952_v37  ;;  %5135 = vmatprep.subr.bf16.mxu0 %v5954_v38  ;;  %v3653_v36 = vld [vmem:[#allocation2 + $0x728] sm:$0xff]  ;;  %v5999_v37 = vcombine.low %v3640_v24, %v3644_v25  ;;  %v6001_v38 = vcombine.low %v3641_v26, %v3645_v27 }
 0x5ef   :  { %v6010_v41 = vcombine.high %v3649_v34, %v3653_v36 }
 0x5f1   :  { %5054 = vmatpush1.bf16.msra.mxu1 %v5951_v44  ;;  %5136 = vmatpush1.bf16.msra.mxu0 %v5953_v45  ;;  %v3657_v44 = vld [vmem:[#allocation2 + $0x748] sm:$0xff] }
 0x5f2   :  { %5055 = vmatprep.subr.bf16.mxu1 %v5960_v46  ;;  %5137 = vmatprep.subr.bf16.mxu0 %v5962_v47  ;;  %v3661_v45 = vld [vmem:[#allocation2 + $0x768] sm:$0xff]  ;;  %v6007_v46 = vcombine.low %v3648_v32, %v3652_v33  ;;  %v6009_v47 = vcombine.low %v3649_v34, %v3653_v36  ;;  %v3447_v32 = vld [vmem:[#allocation2 + $0xb8] sm:$0xff] }
 0x5f3   :  { %v6018_v50 = vcombine.high %v3657_v44, %v3661_v45  ;;  %v6017_v57 = vcombine.low %v3657_v44, %v3661_v45 }
 0x5f5   :  { %5056 = vmatpush1.bf16.msra.mxu1 %v5959_v53  ;;  %5138 = vmatpush1.bf16.msra.mxu0 %v5961_v54  ;;  %v3668_v53 = vld [vmem:[#allocation2 + $0x7a0] sm:$0xff]  ;;  %v3665_v54 = vld [vmem:[#allocation2 + $0x788] sm:$0xff] }
 0x5f6   :  { %5057 = vmatprep.subr.bf16.mxu1 %v5968_v55  ;;  %5139 = vmatprep.subr.bf16.mxu0 %v5970_v56  ;;  %v3669_v55 = vld [vmem:[#allocation2 + $0x7a8] sm:$0xff]  ;;  %v6015_v56 = vcombine.low %v3656_v42, %v3660_v43  ;;  %v6024_v58 = vcombine.high %v3664_v51, %v3668_v53  ;;  %v6023_v35 = vcombine.low %v3664_v51, %v3668_v53  ;;  %v3455_v42 = vld [vmem:[#allocation2 + $0xf8] sm:$0xff] }
 0x5f7   :  { %v6026_v59 = vcombine.high %v3665_v54, %v3669_v55  ;;  %v6025_v7 = vcombine.low %v3665_v54, %v3669_v55  ;;  %v3466_v55 = vld [vmem:[#allocation2 + $0x150] sm:$0xff] }
 0x5f9   :  { %5058 = vmatpush1.bf16.msra.mxu1 %v5967_v3  ;;  %5140 = vmatpush1.bf16.msra.mxu0 %v5969_v4  ;;  %v3402_v3 = vadd.f32 %v8250_v40, %v2997_v52  ;;  %v3676_v4 = vld [vmem:[#allocation2 + $0x7e0] sm:$0xff] }
 0x5fa   :  { %5059 = vmatprep.subr.bf16.mxu1 %v5976_v5  ;;  %5141 = vmatprep.subr.bf16.mxu0 %v5978_v6  ;;  %v3673_v5 = vld [vmem:[#allocation2 + $0x7c8] sm:$0xff]  ;;  %v6032_v8 = vcombine.high %v3672_v1, %v3676_v4  ;;  %v6031_v40 = vcombine.low %v3672_v1, %v3676_v4 }
 0x5fb   :  { %v3677_v6 = vld [vmem:[#allocation2 + $0x7e8] sm:$0xff]  ;;  %vm3410_vm11 = vcmp.gt.f32.partialorder %v3402_v3, 0.0 }
 0x5fc   :  { %v6034_v10 = vcombine.high %v3673_v5, %v3677_v6  ;;  %v6033_v13 = vcombine.low %v3673_v5, %v3677_v6  ;;  %v3474_v5 = vld [vmem:[#allocation2 + $0x190] sm:$0xff] }
 0x5fd   :  { %5060 = vmatpush1.bf16.msra.mxu1 %v5975_v14  ;;  %5142 = vmatpush1.bf16.msra.mxu0 %v5977_v15  ;;  %v3414_v14 = vmul.f32 0.01, %v3402_v3  ;;  %v3430_v15 = vld [vmem:[#allocation2 + $0x30] sm:$0xff] }
 0x5fe   :  { %5061 = vmatprep.subr.bf16.mxu1 %v5984_v16  ;;  %5143 = vmatprep.subr.bf16.mxu0 %v5986_v17  ;;  %v3427_v16 = vld [vmem:[#allocation2 + $0x18] sm:$0xff]  ;;  %v5788_v11 = vcombine.high %v3426_v12, %v3430_v15  ;;  %v5787_v24 = vcombine.low %v3426_v12, %v3430_v15  ;;  %v3478_v6 = vld [vmem:[#allocation2 + $0x1b0] sm:$0xff] }
 0x5ff   :  { %v3431_v17 = vld [vmem:[#allocation2 + $0x38] sm:$0xff]  ;;  %v3418_v19 = vsel %vm3410_vm11, %v3402_v3, %v3414_v14  ;;  %v5836_v12 = vcombine.high %v3474_v5, %v3478_v6  ;;  %v3482_v15 = vld [vmem:[#allocation2 + $0x1d0] sm:$0xff] }
 0x600   :  { %v5790_v18 = vcombine.high %v3427_v16, %v3431_v17  ;;  %v8267_v25 = vpack.c.bf16 %v3418_v19, %v3418_v19  ;;  %v5789_v26 = vcombine.low %v3427_v16, %v3431_v17  ;;  %v3486_v16 = vld [vmem:[#allocation2 + $0x1f0] sm:$0xff]  ;;  %v3483_v17 = vld [vmem:[#allocation2 + $0x1d8] sm:$0xff] }
 0x601   :  { %5062 = vmatpush1.bf16.msra.mxu1 %v5983_v20  ;;  %5144 = vmatpush1.bf16.msra.mxu0 %v5985_v21  ;;  %v3434_v20 = vld [vmem:[#allocation2 + $0x50] sm:$0xff] }
 0x602   :  { %5063 = vmatprep.subr.bf16.mxu1 %v5992_v22  ;;  %5145 = vmatprep.subr.bf16.mxu0 %v5994_v23  ;;  %v3438_v21 = vld [vmem:[#allocation2 + $0x70] sm:$0xff]  ;;  %v3435_v22 = vld [vmem:[#allocation2 + $0x58] sm:$0xff] }
 0x603   :  { %v3439_v23 = vld [vmem:[#allocation2 + $0x78] sm:$0xff]  ;;  %v5796_v27 = vcombine.high %v3434_v20, %v3438_v21  ;;  %v5795_v33 = vcombine.low %v3434_v20, %v3438_v21  ;;  %v3490_v20 = vld [vmem:[#allocation2 + $0x210] sm:$0xff] }
 0x604   :  { %v5797_v34 = vcombine.low %v3435_v22, %v3439_v23  ;;  %v3494_v21 = vld [vmem:[#allocation2 + $0x230] sm:$0xff] }
 0x605   :  { %5064 = vmatpush1.bf16.msra.mxu1 %v5991_v28  ;;  %5146 = vmatpush1.bf16.msra.mxu0 %v5993_v29  ;;  %v5798_v28 = vcombine.high %v3435_v22, %v3439_v23  ;;  %v3442_v29 = vld [vmem:[#allocation2 + $0x90] sm:$0xff]  ;;  %v3491_v22 = vld [vmem:[#allocation2 + $0x218] sm:$0xff] }
 0x606   :  { %5065 = vmatprep.subr.bf16.mxu1 %v6000_v30  ;;  %5147 = vmatprep.subr.bf16.mxu0 %v6002_v31  ;;  %v3446_v30 = vld [vmem:[#allocation2 + $0xb0] sm:$0xff]  ;;  %v3443_v31 = vld [vmem:[#allocation2 + $0x98] sm:$0xff] }
 0x607   :  { %v5804_v36 = vcombine.high %v3442_v29, %v3446_v30  ;;  %v5803_v43 = vcombine.low %v3442_v29, %v3446_v30  ;;  %v5805_v44 = vcombine.low %v3443_v31, %v3447_v32  ;;  %v3495_v23 = vld [vmem:[#allocation2 + $0x238] sm:$0xff]  ;;  %v3498_v29 = vld [vmem:[#allocation2 + $0x250] sm:$0xff] }
 0x608   :  { %v3502_v30 = vld [vmem:[#allocation2 + $0x270] sm:$0xff] }
 0x609   :  { %5066 = vmatpush1.bf16.msra.mxu1 %v5999_v37  ;;  %5148 = vmatpush1.bf16.msra.mxu0 %v6001_v38  ;;  %v5806_v37 = vcombine.high %v3443_v31, %v3447_v32  ;;  %v3450_v38 = vld [vmem:[#allocation2 + $0xd0] sm:$0xff]  ;;  %v3499_v31 = vld [vmem:[#allocation2 + $0x258] sm:$0xff] }
 0x60a   :  { %5067 = vmatprep.subr.bf16.mxu1 %v6008_v39  ;;  %5149 = vmatprep.subr.bf16.mxu0 %v6010_v41  ;;  %v3454_v39 = vld [vmem:[#allocation2 + $0xf0] sm:$0xff]  ;;  %v3451_v41 = vld [vmem:[#allocation2 + $0xd8] sm:$0xff] }
 0x60b   :  { %v5812_v45 = vcombine.high %v3450_v38, %v3454_v39  ;;  %v5811_v51 = vcombine.low %v3450_v38, %v3454_v39  ;;  %v5813_v52 = vcombine.low %v3451_v41, %v3455_v42  ;;  %v3503_v32 = vld [vmem:[#allocation2 + $0x278] sm:$0xff]  ;;  %v3506_v38 = vld [vmem:[#allocation2 + $0x290] sm:$0xff] }
 0x60c   :  { %v3510_v39 = vld [vmem:[#allocation2 + $0x2b0] sm:$0xff] }
 0x60d   :  { %5068 = vmatpush1.bf16.msra.mxu1 %v6007_v46  ;;  %5150 = vmatpush1.bf16.msra.mxu0 %v6009_v47  ;;  %v5814_v46 = vcombine.high %v3451_v41, %v3455_v42  ;;  %v3458_v47 = vld [vmem:[#allocation2 + $0x110] sm:$0xff]  ;;  %v3507_v41 = vld [vmem:[#allocation2 + $0x298] sm:$0xff] }
 0x60e   :  { %5069 = vmatprep.subr.bf16.mxu1 %v6016_v49  ;;  %5151 = vmatprep.subr.bf16.mxu0 %v6018_v50  ;;  %v3462_v49 = vld [vmem:[#allocation2 + $0x130] sm:$0xff]  ;;  %v3463_v50 = vld [vmem:[#allocation2 + $0x138] sm:$0xff] }
 0x60f   :  { %v5820_v53 = vcombine.high %v3458_v47, %v3462_v49  ;;  %v3511_v42 = vld [vmem:[#allocation2 + $0x2b8] sm:$0xff] }
 0x611   :  { %5070 = vmatpush1.bf16.msra.mxu1 %v6015_v56  ;;  %5152 = vmatpush1.bf16.msra.mxu0 %v6017_v57  ;;  %v3470_v56 = vld [vmem:[#allocation2 + $0x170] sm:$0xff]  ;;  %v3467_v57 = vld [vmem:[#allocation2 + $0x158] sm:$0xff] }
 0x612   :  { %5071 = vmatprep.subr.bf16.mxu1 %v6024_v58  ;;  %5153 = vmatprep.subr.bf16.mxu0 %v6026_v59  ;;  %v3471_v58 = vld [vmem:[#allocation2 + $0x178] sm:$0xff]  ;;  %v5819_v59 = vcombine.low %v3458_v47, %v3462_v49  ;;  %v5828_v3 = vcombine.high %v3466_v55, %v3470_v56  ;;  %v3514_v47 = vld [vmem:[#allocation2 + $0x2d0] sm:$0xff] }
 0x613   :  { %v5830_v4 = vcombine.high %v3467_v57, %v3471_v58  ;;  %v3518_v49 = vld [vmem:[#allocation2 + $0x2f0] sm:$0xff] }
 0x615   :  { %5072 = vmatpush1.bf16.msra.mxu1 %v6023_v35  ;;  %5154 = vmatpush1.bf16.msra.mxu0 %v6025_v7  ;;  %v3475_v35 = vld [vmem:[#allocation2 + $0x198] sm:$0xff] }
 0x616   :  { %5073 = vmatprep.subr.bf16.mxu1 %v6032_v8  ;;  %5155 = vmatprep.subr.bf16.mxu0 %v6034_v10  ;;  %v3479_v7 = vld [vmem:[#allocation2 + $0x1b8] sm:$0xff]  ;;  %v5827_v8 = vcombine.low %v3466_v55, %v3470_v56  ;;  %v5829_v10 = vcombine.low %v3467_v57, %v3471_v58  ;;  %v3522_v55 = vld [vmem:[#allocation2 + $0x310] sm:$0xff] }
 0x617   :  { %v5838_v14 = vcombine.high %v3475_v35, %v3479_v7  ;;  %v3526_v56 = vld [vmem:[#allocation2 + $0x330] sm:$0xff]  ;;  %v3523_v57 = vld [vmem:[#allocation2 + $0x318] sm:$0xff] }
 0x618   :  { %v3527_v58 = vld [vmem:[#allocation2 + $0x338] sm:$0xff] }
 0x619   :  { %5074 = vmatpush1.bf16.msra.mxu1 %v6031_v40  ;;  %5156 = vmatpush1.bf16.msra.mxu0 %v6033_v13  ;;  %v3487_v40 = vld [vmem:[#allocation2 + $0x1f8] sm:$0xff]  ;;  %v5835_v13 = vcombine.low %v3474_v5, %v3478_v6  ;;  %v3530_v5 = vld [vmem:[#allocation2 + $0x350] sm:$0xff] }
 0x61a   :  { %5166 = vmatprep.subr.bf16.mxu1 %v5788_v11  ;;  %5248 = vmatprep.subr.bf16.mxu0 %v5790_v18  ;;  %v5837_v11 = vcombine.low %v3475_v35, %v3479_v7  ;;  %v5844_v18 = vcombine.high %v3482_v15, %v3486_v16  ;;  %v5846_v19 = vcombine.high %v3483_v17, %v3487_v40  ;;  %v3534_v6 = vld [vmem:[#allocation2 + $0x370] sm:$0xff]  ;;  %v3531_v35 = vld [vmem:[#allocation2 + $0x358] sm:$0xff] }
 0x61b   :  { %v3535_v7 = vld [vmem:[#allocation2 + $0x378] sm:$0xff] }
 0x61c   :  { %5076 = vmatmul.mubr.bf16.vlgmr.msra.gmra.mrb[20].mxu1 %v8267_v25  ;;  %5158 = vmatmul.mubr.bf16.vlgmr.msra.gmra.mrb[12].mxu0 %v8267_v25 }
 0x61d   :  { %5167 = vmatpush1.bf16.msra.mxu1 %v5787_v24  ;;  %5198 = vmatprep.mubr.bf16.mxu1 %v8252_v62  ;;  %v5843_v24 = vcombine.low %v3482_v15, %v3486_v16  ;;  %v3538_v15 = vld [vmem:[#allocation2 + $0x390] sm:$0xff] }
 0x61e   :  { %5249 = vmatpush1.bf16.msra.mxu0 %v5789_v26  ;;  %5280 = vmatprep.mubr.bf16.mxu0 %v8252_v62  ;;  %v3459_v62 = vld [vmem:[#allocation2 + $0x118] sm:$0xff]  ;;  %v5845_v26 = vcombine.low %v3483_v17, %v3487_v40  ;;  %v3542_v16 = vld [vmem:[#allocation2 + $0x3b0] sm:$0xff] }
 0x61f   :  { %5168 = vmatprep.subr.bf16.mxu1 %v5796_v27  ;;  %5250 = vmatprep.subr.bf16.mxu0 %v5798_v28  ;;  %v5822_v54 = vcombine.high %v3459_v62, %v3463_v50  ;;  %v5821_v1 = vcombine.low %v3459_v62, %v3463_v50  ;;  %v5852_v27 = vcombine.high %v3490_v20, %v3494_v21  ;;  %v3515_v62 = vld [vmem:[#allocation2 + $0x2d8] sm:$0xff] }
 0x620   :  { %v5854_v28 = vcombine.high %v3491_v22, %v3495_v23  ;;  %v3519_v50 = vld [vmem:[#allocation2 + $0x2f8] sm:$0xff] }
 0x621   :  { %5169 = vmatpush1.bf16.msra.mxu1 %v5795_v33  ;;  %v5851_v33 = vcombine.low %v3490_v20, %v3494_v21  ;;  %v3539_v17 = vld [vmem:[#allocation2 + $0x398] sm:$0xff]  ;;  %v3546_v20 = vld [vmem:[#allocation2 + $0x3d0] sm:$0xff] }
 0x622   :  { %5251 = vmatpush1.bf16.msra.mxu0 %v5797_v34  ;;  %5170 = vmatprep.subr.bf16.mxu1 %v5804_v36  ;;  %v5853_v34 = vcombine.low %v3491_v22, %v3495_v23  ;;  %v5860_v36 = vcombine.high %v3498_v29, %v3502_v30  ;;  %v3543_v40 = vld [vmem:[#allocation2 + $0x3b8] sm:$0xff]  ;;  %v3550_v21 = vld [vmem:[#allocation2 + $0x3f0] sm:$0xff] }
 0x623   :  { %5252 = vmatprep.subr.bf16.mxu0 %v5806_v37  ;;  %v5862_v37 = vcombine.high %v3499_v31, %v3503_v32  ;;  %v3547_v22 = vld [vmem:[#allocation2 + $0x3d8] sm:$0xff] }
 0x624   :  { %v3551_v23 = vld [vmem:[#allocation2 + $0x3f8] sm:$0xff] }
 0x625   :  { %5171 = vmatpush1.bf16.msra.mxu1 %v5803_v43  ;;  %v5859_v43 = vcombine.low %v3498_v29, %v3502_v30  ;;  %v3554_v29 = vld [vmem:[#allocation2 + $0x410] sm:$0xff] }
 0x626   :  { %5253 = vmatpush1.bf16.msra.mxu0 %v5805_v44  ;;  %5172 = vmatprep.subr.bf16.mxu1 %v5812_v45  ;;  %v5861_v44 = vcombine.low %v3499_v31, %v3503_v32  ;;  %v5868_v45 = vcombine.high %v3506_v38, %v3510_v39  ;;  %v3558_v30 = vld [vmem:[#allocation2 + $0x430] sm:$0xff]  ;;  %v3555_v31 = vld [vmem:[#allocation2 + $0x418] sm:$0xff] }
 0x627   :  { %5254 = vmatprep.subr.bf16.mxu0 %v5814_v46  ;;  %v5870_v46 = vcombine.high %v3507_v41, %v3511_v42  ;;  %v3559_v32 = vld [vmem:[#allocation2 + $0x438] sm:$0xff] }
 0x629   :  { %5173 = vmatpush1.bf16.msra.mxu1 %v5811_v51  ;;  %v5867_v51 = vcombine.low %v3506_v38, %v3510_v39  ;;  %v3562_v38 = vld [vmem:[#allocation2 + $0x450] sm:$0xff] }
 0x62a   :  { %5255 = vmatpush1.bf16.msra.mxu0 %v5813_v52  ;;  %5174 = vmatprep.subr.bf16.mxu1 %v5820_v53  ;;  %v5869_v52 = vcombine.low %v3507_v41, %v3511_v42  ;;  %v5876_v53 = vcombine.high %v3514_v47, %v3518_v49  ;;  %v3566_v39 = vld [vmem:[#allocation2 + $0x470] sm:$0xff]  ;;  %v5915_v41 = vcombine.low %v3554_v29, %v3558_v30  ;;  %v3563_v42 = vld [vmem:[#allocation2 + $0x458] sm:$0xff] }
 0x62b   :  { %5256 = vmatprep.subr.bf16.mxu0 %v5822_v54  ;;  %v5878_v54 = vcombine.high %v3515_v62, %v3519_v50 }
 0x62d   :  { %5175 = vmatpush1.bf16.msra.mxu1 %v5819_v59  ;;  %v5875_v59 = vcombine.low %v3514_v47, %v3518_v49  ;;  %v3574_v47 = vld [vmem:[#allocation2 + $0x4b0] sm:$0xff] }
 0x62e   :  { %5257 = vmatpush1.bf16.msra.mxu0 %v5821_v1  ;;  %5176 = vmatprep.subr.bf16.mxu1 %v5828_v3  ;;  %v5877_v1 = vcombine.low %v3515_v62, %v3519_v50  ;;  %v5884_v3 = vcombine.high %v3522_v55, %v3526_v56  ;;  %v3571_v62 = vld [vmem:[#allocation2 + $0x498] sm:$0xff] }
 0x62f   :  { %5258 = vmatprep.subr.bf16.mxu0 %v5830_v4  ;;  %v5886_v4 = vcombine.high %v3523_v57, %v3527_v58  ;;  %v3575_v50 = vld [vmem:[#allocation2 + $0x4b8] sm:$0xff] }
 0x631   :  { %5177 = vmatpush1.bf16.msra.mxu1 %v5827_v8  ;;  %v5883_v8 = vcombine.low %v3522_v55, %v3526_v56  ;;  %v3578_v55 = vld [vmem:[#allocation2 + $0x4d0] sm:$0xff] }
 0x632   :  { %5259 = vmatpush1.bf16.msra.mxu0 %v5829_v10  ;;  %5178 = vmatprep.subr.bf16.mxu1 %v5836_v12  ;;  %v5885_v10 = vcombine.low %v3523_v57, %v3527_v58  ;;  %v5892_v12 = vcombine.high %v3530_v5, %v3534_v6  ;;  %v3582_v56 = vld [vmem:[#allocation2 + $0x4f0] sm:$0xff]  ;;  %v3579_v57 = vld [vmem:[#allocation2 + $0x4d8] sm:$0xff] }
 0x633   :  { %5260 = vmatprep.subr.bf16.mxu0 %v5838_v14  ;;  %v5894_v14 = vcombine.high %v3531_v35, %v3535_v7  ;;  %v3583_v58 = vld [vmem:[#allocation2 + $0x4f8] sm:$0xff] }
 0x635   :  { %5179 = vmatpush1.bf16.msra.mxu1 %v5835_v13  ;;  %v5891_v13 = vcombine.low %v3530_v5, %v3534_v6  ;;  %v3590_v5 = vld [vmem:[#allocation2 + $0x530] sm:$0xff]  ;;  %v3587_v6 = vld [vmem:[#allocation2 + $0x518] sm:$0xff] }
 0x636   :  { %5261 = vmatpush1.bf16.msra.mxu0 %v5837_v11  ;;  %5180 = vmatprep.subr.bf16.mxu1 %v5844_v18  ;;  %v5893_v11 = vcombine.low %v3531_v35, %v3535_v7  ;;  %v5900_v18 = vcombine.high %v3538_v15, %v3542_v16  ;;  %v3591_v35 = vld [vmem:[#allocation2 + $0x538] sm:$0xff]  ;;  %v5941_v7 = vcombine.low %v3579_v57, %v3583_v58 }
 0x637   :  { %5262 = vmatprep.subr.bf16.mxu0 %v5846_v19  ;;  %v5902_v19 = vcombine.high %v3539_v17, %v3543_v40 }
 0x639   :  { %5181 = vmatpush1.bf16.msra.mxu1 %v5843_v24  ;;  %v5899_v24 = vcombine.low %v3538_v15, %v3542_v16  ;;  %v3595_v15 = vld [vmem:[#allocation2 + $0x558] sm:$0xff] }
 0x63a   :  { %5263 = vmatpush1.bf16.msra.mxu0 %v5845_v26  ;;  %5182 = vmatprep.subr.bf16.mxu1 %v5852_v27  ;;  %v5901_v26 = vcombine.low %v3539_v17, %v3543_v40  ;;  %v5908_v27 = vcombine.high %v3546_v20, %v3550_v21  ;;  %v3599_v16 = vld [vmem:[#allocation2 + $0x578] sm:$0xff]  ;;  %v5949_v40 = vcombine.low %v3587_v6, %v3591_v35 }
 0x63b   :  { %5264 = vmatprep.subr.bf16.mxu0 %v5854_v28  ;;  %v5910_v28 = vcombine.high %v3547_v22, %v3551_v23 }
 0x63d   :  { %5183 = vmatpush1.bf16.msra.mxu1 %v5851_v33  ;;  %v5907_v33 = vcombine.low %v3546_v20, %v3550_v21  ;;  %v3603_v20 = vld [vmem:[#allocation2 + $0x598] sm:$0xff] }
 0x63e   :  { %5265 = vmatpush1.bf16.msra.mxu0 %v5853_v34  ;;  %5184 = vmatprep.subr.bf16.mxu1 %v5860_v36  ;;  %v5909_v34 = vcombine.low %v3547_v22, %v3551_v23  ;;  %v5916_v36 = vcombine.high %v3554_v29, %v3558_v30  ;;  %v3607_v21 = vld [vmem:[#allocation2 + $0x5b8] sm:$0xff]  ;;  %v5957_v23 = vcombine.low %v3595_v15, %v3599_v16 }
 0x63f   :  { %5266 = vmatprep.subr.bf16.mxu0 %v5862_v37  ;;  %v5918_v37 = vcombine.high %v3555_v31, %v3559_v32  ;;  %v3611_v29 = vld [vmem:[#allocation2 + $0x5d8] sm:$0xff] }
 0x640   :  { %v3615_v30 = vld [vmem:[#allocation2 + $0x5f8] sm:$0xff] }
 0x641   :  { %5185 = vmatpush1.bf16.msra.mxu1 %v5859_v43  ;;  %v3567_v43 = vld [vmem:[#allocation2 + $0x478] sm:$0xff] }
 0x642   :  { %5267 = vmatpush1.bf16.msra.mxu0 %v5861_v44  ;;  %5186 = vmatprep.subr.bf16.mxu1 %v5868_v45  ;;  %v5917_v44 = vcombine.low %v3555_v31, %v3559_v32  ;;  %v5924_v45 = vcombine.high %v3562_v38, %v3566_v39  ;;  %v5926_v49 = vcombine.high %v3563_v42, %v3567_v43 }
 0x643   :  { %5268 = vmatprep.subr.bf16.mxu0 %v5870_v46  ;;  %v3570_v46 = vld [vmem:[#allocation2 + $0x490] sm:$0xff]  ;;  %v5965_v32 = vcombine.low %v3603_v20, %v3607_v21 }
 0x645   :  { %5187 = vmatpush1.bf16.msra.mxu1 %v5867_v51  ;;  %v5923_v51 = vcombine.low %v3562_v38, %v3566_v39  ;;  %v3619_v38 = vld [vmem:[#allocation2 + $0x618] sm:$0xff] }
 0x646   :  { %5269 = vmatpush1.bf16.msra.mxu0 %v5869_v52  ;;  %5188 = vmatprep.subr.bf16.mxu1 %v5876_v53  ;;  %v5925_v52 = vcombine.low %v3563_v42, %v3567_v43  ;;  %v5932_v53 = vcombine.high %v3570_v46, %v3574_v47  ;;  %v3623_v39 = vld [vmem:[#allocation2 + $0x638] sm:$0xff]  ;;  %v5973_v42 = vcombine.low %v3611_v29, %v3615_v30 }
 0x647   :  { %5270 = vmatprep.subr.bf16.mxu0 %v5878_v54  ;;  %v5934_v54 = vcombine.high %v3571_v62, %v3575_v50 }
 0x649   :  { %5189 = vmatpush1.bf16.msra.mxu1 %v5875_v59  ;;  %v5931_v59 = vcombine.low %v3570_v46, %v3574_v47  ;;  %v3630_v46 = vld [vmem:[#allocation2 + $0x670] sm:$0xff]  ;;  %v3627_v47 = vld [vmem:[#allocation2 + $0x658] sm:$0xff] }
 0x64a   :  { %5271 = vmatpush1.bf16.msra.mxu0 %v5877_v1  ;;  %5190 = vmatprep.subr.bf16.mxu1 %v5884_v3  ;;  %v5940_v1 = vcombine.high %v3578_v55, %v3582_v56  ;;  %v5942_v3 = vcombine.high %v3579_v57, %v3583_v58 }
 0x64b   :  { %5272 = vmatprep.subr.bf16.mxu0 %v5886_v4  ;;  %v3586_v4 = vld [vmem:[#allocation2 + $0x510] sm:$0xff] }
 0x64c   :  { %v5947_v17 = vcombine.low %v3586_v4, %v3590_v5 }
 0x64d   :  { %5191 = vmatpush1.bf16.msra.mxu1 %v5883_v8  ;;  %v5948_v8 = vcombine.high %v3586_v4, %v3590_v5  ;;  %v3643_v4 = vld [vmem:[#allocation2 + $0x6d8] sm:$0xff] }
 0x64e   :  { %5273 = vmatpush1.bf16.msra.mxu0 %v5885_v10  ;;  %5192 = vmatprep.subr.bf16.mxu1 %v5892_v12  ;;  %v5950_v10 = vcombine.high %v3587_v6, %v3591_v35  ;;  %v3594_v12 = vld [vmem:[#allocation2 + $0x550] sm:$0xff]  ;;  %v3647_v5 = vld [vmem:[#allocation2 + $0x6f8] sm:$0xff] }
 0x64f   :  { %5274 = vmatprep.subr.bf16.mxu0 %v5894_v14  ;;  %v3598_v14 = vld [vmem:[#allocation2 + $0x570] sm:$0xff] }
 0x650   :  { %v5955_v22 = vcombine.low %v3594_v12, %v3598_v14 }
 0x651   :  { %5193 = vmatpush1.bf16.msra.mxu1 %v5891_v13  ;;  %v5956_v13 = vcombine.high %v3594_v12, %v3598_v14  ;;  %v3651_v12 = vld [vmem:[#allocation2 + $0x718] sm:$0xff] }
 0x652   :  { %5275 = vmatpush1.bf16.msra.mxu0 %v5893_v11  ;;  %5194 = vmatprep.subr.bf16.mxu1 %v5900_v18  ;;  %v5958_v11 = vcombine.high %v3595_v15, %v3599_v16  ;;  %v3602_v18 = vld [vmem:[#allocation2 + $0x590] sm:$0xff]  ;;  %v3655_v14 = vld [vmem:[#allocation2 + $0x738] sm:$0xff]  ;;  %v6005_v16 = vcombine.low %v3643_v4, %v3647_v5 }
 0x653   :  { %5276 = vmatprep.subr.bf16.mxu0 %v5902_v19  ;;  %v3606_v19 = vld [vmem:[#allocation2 + $0x5b0] sm:$0xff] }
 0x654   :  { %v5963_v31 = vcombine.low %v3602_v18, %v3606_v19 }
 0x655   :  { %5195 = vmatpush1.bf16.msra.mxu1 %v5899_v24  ;;  %v5964_v24 = vcombine.high %v3602_v18, %v3606_v19  ;;  %v3659_v18 = vld [vmem:[#allocation2 + $0x758] sm:$0xff] }
 0x656   :  { %5277 = vmatpush1.bf16.msra.mxu0 %v5901_v26  ;;  %5196 = vmatprep.subr.bf16.mxu1 %v5908_v27  ;;  %v5966_v26 = vcombine.high %v3603_v20, %v3607_v21  ;;  %v3610_v27 = vld [vmem:[#allocation2 + $0x5d0] sm:$0xff]  ;;  %v3663_v19 = vld [vmem:[#allocation2 + $0x778] sm:$0xff]  ;;  %v6013_v21 = vcombine.low %v3651_v12, %v3655_v14 }
 0x657   :  { %5278 = vmatprep.subr.bf16.mxu0 %v5910_v28  ;;  %v3614_v28 = vld [vmem:[#allocation2 + $0x5f0] sm:$0xff] }
 0x659   :  { %5197 = vmatpush1.bf16.msra.mxu1 %v5907_v33  ;;  %v5972_v33 = vcombine.high %v3610_v27, %v3614_v28 }
 0x65a   :  { %5279 = vmatpush1.bf16.msra.mxu0 %v5909_v34  ;;  %5207 = vmatprep.subr.bf16.mxu1 %v5916_v36  ;;  %v5974_v34 = vcombine.high %v3611_v29, %v3615_v30  ;;  %v3618_v36 = vld [vmem:[#allocation2 + $0x610] sm:$0xff]  ;;  %v6021_v30 = vcombine.low %v3659_v18, %v3663_v19 }
 0x65b   :  { %5289 = vmatprep.subr.bf16.mxu0 %v5918_v37  ;;  %v3622_v37 = vld [vmem:[#allocation2 + $0x630] sm:$0xff] }
 0x65c   :  { %5199 = vmatmul.mubr.bf16.vlgmr.msra.gmra.mrb[24].mxu1 %v8254_v2  ;;  %v5980_v43 = vcombine.high %v3618_v36, %v3622_v37 }
 0x65d   :  { %5281 = vmatmul.mubr.bf16.vlgmr.msra.gmra.mrb[16].mxu0 %v8254_v2  ;;  %5208 = vmatpush1.bf16.msra.mxu1 %v5915_v41  ;;  %v5933_v2 = vcombine.low %v3571_v62, %v3575_v50  ;;  %v5971_v41 = vcombine.low %v3610_v27, %v3614_v28  ;;  %v5979_v62 = vcombine.low %v3618_v36, %v3622_v37  ;;  %v3667_v27 = vld [vmem:[#allocation2 + $0x798] sm:$0xff] }
 0x65e   :  { %5239 = vmatprep.mubr.bf16.mxu1 %v8258_v9  ;;  %5290 = vmatpush1.bf16.msra.mxu0 %v5917_v44  ;;  %v5982_v44 = vcombine.high %v3619_v38, %v3623_v39  ;;  %v5981_v50 = vcombine.low %v3619_v38, %v3623_v39  ;;  %v3671_v28 = vld [vmem:[#allocation2 + $0x7b8] sm:$0xff] }
 0x65f   :  { %5321 = vmatprep.mubr.bf16.mxu0 %v8258_v9  ;;  %5209 = vmatprep.subr.bf16.mxu1 %v5924_v45  ;;  %v5939_v9 = vcombine.low %v3578_v55, %v3582_v56  ;;  %v3626_v45 = vld [vmem:[#allocation2 + $0x650] sm:$0xff]  ;;  %v3635_v55 = vld [vmem:[#allocation2 + $0x698] sm:$0xff]  ;;  %v6029_v39 = vcombine.low %v3667_v27, %v3671_v28 }
 0x660   :  { %5291 = vmatprep.subr.bf16.mxu0 %v5926_v49  ;;  %v3631_v49 = vld [vmem:[#allocation2 + $0x678] sm:$0xff]  ;;  %v5987_v57 = vcombine.low %v3626_v45, %v3630_v46 }
 0x661   :  { %5210 = vmatpush1.bf16.msra.mxu1 %v5923_v51  ;;  %v5988_v51 = vcombine.high %v3626_v45, %v3630_v46  ;;  %v3639_v56 = vld [vmem:[#allocation2 + $0x6b8] sm:$0xff]  ;;  %v5989_v58 = vcombine.low %v3627_v47, %v3631_v49  ;;  %v3680_v45 = vld [vmem:[%s8329_s15] sm:$0xff] }
 0x662   :  { %5292 = vmatpush1.bf16.msra.mxu0 %v5925_v52  ;;  %5211 = vmatprep.subr.bf16.mxu1 %v5932_v53  ;;  %v5990_v52 = vcombine.high %v3627_v47, %v3631_v49  ;;  %v3634_v53 = vld [vmem:[#allocation2 + $0x690] sm:$0xff]  ;;  %v5997_v35 = vcombine.low %v3635_v55, %v3639_v56  ;;  %v3675_v36 = vld [vmem:[#allocation2 + $0x7d8] sm:$0xff]  ;;  %v3685_v46 = vrot.slane %v3680_v45, %v7842_v61 }
 0x663   :  { %5293 = vmatprep.subr.bf16.mxu0 %v5934_v54  ;;  %v3638_v54 = vld [vmem:[#allocation2 + $0x6b0] sm:$0xff]  ;;  %v3679_v37 = vld [vmem:[#allocation2 + $0x7f8] sm:$0xff]  ;;  %v3693_v47 = vrot.slane %v3680_v45, %v7936_v48  ;;  %v3689_v49 = vrot.slane %v3680_v45, %v7850_v63  ;;  %v3708_v48 = vsub.s32 6, %v7839_v60 }
 0x664   :  { %v5995_v6 = vcombine.low %v3634_v53, %v3638_v54 }
 0x665   :  { %5212 = vmatpush1.bf16.msra.mxu1 %v5931_v59  ;;  %v5996_v59 = vcombine.high %v3634_v53, %v3638_v54 }
 0x666   :  { %5294 = vmatpush1.bf16.msra.mxu0 %v5933_v2  ;;  %5213 = vmatprep.subr.bf16.mxu1 %v5940_v1  ;;  %v5998_v2 = vcombine.high %v3635_v55, %v3639_v56  ;;  %v3642_v1 = vld [vmem:[#allocation2 + $0x6d0] sm:$0xff] }
 0x667   :  { %5295 = vmatprep.subr.bf16.mxu0 %v5942_v3  ;;  %v3646_v3 = vld [vmem:[#allocation2 + $0x6f0] sm:$0xff] }
 0x668   :  { %v6003_v15 = vcombine.low %v3642_v1, %v3646_v3 }
 0x669   :  { %5214 = vmatpush1.bf16.msra.mxu1 %v5939_v9  ;;  %v6004_v9 = vcombine.high %v3642_v1, %v3646_v3  ;;  %v3709_v3 = vrot.slane %v3680_v45, %v3708_v48 }
 0x66a   :  { %5296 = vmatpush1.bf16.msra.mxu0 %v5941_v7  ;;  %5215 = vmatprep.subr.bf16.mxu1 %v5948_v8  ;;  %v6006_v7 = vcombine.high %v3643_v4, %v3647_v5  ;;  %v3650_v8 = vld [vmem:[#allocation2 + $0x710] sm:$0xff] }
 0x66b   :  { %5297 = vmatprep.subr.bf16.mxu0 %v5950_v10  ;;  %v3654_v10 = vld [vmem:[#allocation2 + $0x730] sm:$0xff] }
 0x66c   :  { %v6011_v20 = vcombine.low %v3650_v8, %v3654_v10 }
 0x66d   :  { %5216 = vmatpush1.bf16.msra.mxu1 %v5947_v17  ;;  %v6012_v17 = vcombine.high %v3650_v8, %v3654_v10 }
 0x66e   :  { %5298 = vmatpush1.bf16.msra.mxu0 %v5949_v40  ;;  %5217 = vmatprep.subr.bf16.mxu1 %v5956_v13  ;;  %v6014_v40 = vcombine.high %v3651_v12, %v3655_v14  ;;  %v3658_v13 = vld [vmem:[#allocation2 + $0x750] sm:$0xff] }
 0x66f   :  { %5299 = vmatprep.subr.bf16.mxu0 %v5958_v11  ;;  %v3662_v11 = vld [vmem:[#allocation2 + $0x770] sm:$0xff] }
 0x670   :  { %v6019_v29 = vcombine.low %v3658_v13, %v3662_v11 }
 0x671   :  { %5218 = vmatpush1.bf16.msra.mxu1 %v5955_v22  ;;  %v6020_v22 = vcombine.high %v3658_v13, %v3662_v11 }
 0x672   :  { %5300 = vmatpush1.bf16.msra.mxu0 %v5957_v23  ;;  %5219 = vmatprep.subr.bf16.mxu1 %v5964_v24  ;;  %v6022_v23 = vcombine.high %v3659_v18, %v3663_v19  ;;  %v3666_v24 = vld [vmem:[#allocation2 + $0x790] sm:$0xff] }
 0x673   :  { %5301 = vmatprep.subr.bf16.mxu0 %v5966_v26  ;;  %v3670_v26 = vld [vmem:[#allocation2 + $0x7b0] sm:$0xff] }
 0x674   :  { %v6027_v38 = vcombine.low %v3666_v24, %v3670_v26 }
 0x675   :  { %5220 = vmatpush1.bf16.msra.mxu1 %v5963_v31  ;;  %v6028_v31 = vcombine.high %v3666_v24, %v3670_v26 }
 0x676   :  { %5302 = vmatpush1.bf16.msra.mxu0 %v5965_v32  ;;  %5221 = vmatprep.subr.bf16.mxu1 %v5972_v33  ;;  %v6030_v32 = vcombine.high %v3667_v27, %v3671_v28  ;;  %v3674_v33 = vld [vmem:[#allocation2 + $0x7d0] sm:$0xff] }
 0x677   :  { %5303 = vmatprep.subr.bf16.mxu0 %v5974_v34  ;;  %v3678_v34 = vld [vmem:[#allocation2 + $0x7f0] sm:$0xff] }
 0x679   :  { %5222 = vmatpush1.bf16.msra.mxu1 %v5971_v41  ;;  %v6036_v41 = vcombine.high %v3674_v33, %v3678_v34 }
 0x67a   :  { %5304 = vmatpush1.bf16.msra.mxu0 %v5973_v42  ;;  %5223 = vmatprep.subr.bf16.mxu1 %v5980_v43  ;;  %v6038_v42 = vcombine.high %v3675_v36, %v3679_v37  ;;  %v6035_v43 = vcombine.low %v3674_v33, %v3678_v34 }
 0x67b   :  { %5305 = vmatprep.subr.bf16.mxu0 %v5982_v44  ;;  %v6037_v44 = vcombine.low %v3675_v36, %v3679_v37 }
 0x67d   :  { %5224 = vmatpush1.bf16.msra.mxu1 %v5979_v62  ;;  %v3697_v62 = vrot.slane %v3680_v45, %v7853_v0  ;;  %v3700_v0 = vsub.s32 4, %v7839_v60 }
 0x67e   :  { %5306 = vmatpush1.bf16.msra.mxu0 %v5981_v50  ;;  %5225 = vmatprep.subr.bf16.mxu1 %v5988_v51 }
 0x67f   :  { %5307 = vmatprep.subr.bf16.mxu0 %v5990_v52  ;;  %v3701_v1 = vrot.slane %v3680_v45, %v3700_v0 }
 0x681   :  { %5226 = vmatpush1.bf16.msra.mxu1 %v5987_v57 }
 0x682   :  { %5308 = vmatpush1.bf16.msra.mxu0 %v5989_v58  ;;  %5227 = vmatprep.subr.bf16.mxu1 %v5996_v59  ;;  %v3704_v59 = vsub.s32 5, %v7839_v60 }
 0x683   :  { %5309 = vmatprep.subr.bf16.mxu0 %v5998_v2  ;;  %v3712_v2 = vsub.s32 7, %v7839_v60 }
 0x684   :  { %v3705_v4 = vrot.slane %v3680_v45, %v3704_v59 }
 0x685   :  { %5228 = vmatpush1.bf16.msra.mxu1 %v5995_v6  ;;  %v3713_v5 = vrot.slane %v3680_v45, %v3712_v2 }
 0x686   :  { %5310 = vmatpush1.bf16.msra.mxu0 %v5997_v35  ;;  %5229 = vmatprep.subr.bf16.mxu1 %v6004_v9 }
 0x687   :  { %5311 = vmatprep.subr.bf16.mxu0 %v6006_v7 }
 0x689   :  { %5230 = vmatpush1.bf16.msra.mxu1 %v6003_v15 }
 0x68a   :  { %5312 = vmatpush1.bf16.msra.mxu0 %v6005_v16  ;;  %5231 = vmatprep.subr.bf16.mxu1 %v6012_v17 }
 0x68b   :  { %5313 = vmatprep.subr.bf16.mxu0 %v6014_v40 }
 0x68d   :  { %5232 = vmatpush1.bf16.msra.mxu1 %v6011_v20 }
 0x68e   :  { %5314 = vmatpush1.bf16.msra.mxu0 %v6013_v21  ;;  %5233 = vmatprep.subr.bf16.mxu1 %v6020_v22 }
 0x68f   :  { %5315 = vmatprep.subr.bf16.mxu0 %v6022_v23 }
 0x691   :  { %5234 = vmatpush1.bf16.msra.mxu1 %v6019_v29 }
 0x692   :  { %5316 = vmatpush1.bf16.msra.mxu0 %v6021_v30  ;;  %5235 = vmatprep.subr.bf16.mxu1 %v6028_v31 }
 0x693   :  { %5317 = vmatprep.subr.bf16.mxu0 %v6030_v32 }
 0x695   :  { %5236 = vmatpush1.bf16.msra.mxu1 %v6027_v38 }
 0x696   :  { %5318 = vmatpush1.bf16.msra.mxu0 %v6029_v39  ;;  %5237 = vmatprep.subr.bf16.mxu1 %v6036_v41 }
 0x697   :  { %5319 = vmatprep.subr.bf16.mxu0 %v6038_v42 }
 0x699   :  { %5238 = vmatpush1.bf16.msra.mxu1 %v6035_v43 }
 0x69a   :  { %5320 = vmatpush1.bf16.msra.mxu0 %v6037_v44 }
 0x69c   :  { %5240 = vmatmul.mubr.bf16.vlgmr.msra.gmra.mrb[24].mxu1 %v8267_v25 }
 0x69d   :  { %5322 = vmatmul.mubr.bf16.vlgmr.msra.gmra.mrb[16].mxu0 %v8267_v25 }
 0x6ef   :  { %v5077_v50 = vpop.f32.mrb[20].mxu1  ;;  %v5159_v51 = vpop.f32.mrb[12].mxu0 }
 0x6f0   :  { %v6089_v52 = vadd.f32 %v5077_v50, %v3685_v46  ;;  %v6091_v53 = vadd.f32 %v5159_v51, %v3693_v47  ;;  %v5079_v54 = vpop.f32.mrb[21].mxu1  ;;  %v5161_v55 = vpop.f32.mrb[13].mxu0 }
 0x6f1   :  { %v6090_v56 = vadd.f32 %v5079_v54, %v3689_v49  ;;  %v6092_v25 = vadd.f32 %v5161_v55, %v3697_v62  ;;  %v5081_v57 = vpop.f32.mrb[22].mxu1  ;;  %v5163_v58 = vpop.f32.mrb[14].mxu0 }
 0x6f2   :  { %5330 = vst [vmem:[%s8330_s16] sm:$0xff] %v6089_v52  ;;  %5332 = vst [vmem:[%s8330_s16 + $0x10] sm:$0xff] %v6091_v53  ;;  %v5082_v61 = vpop.f32.mrb[23].mxu1  ;;  %v5164_v63 = vpop.f32.mrb[15].mxu0 }
 0x6f3   :  { %5331 = vst [vmem:[%s8330_s16 + $0x8] sm:$0xff] %v6090_v56  ;;  %5333 = vst [vmem:[%s8330_s16 + $0x18] sm:$0xff] %v6092_v25 }
 0x76f   :  { %v5241_v6 = vpop.f32.mrb[24].mxu1 }
 0x770   :  { %v6093_v35 = vadd.f32 %v5241_v6, %v3701_v1  ;;  %v5323_v9 = vpop.f32.mrb[16].mxu0  ;;  %v5243_v7 = vpop.f32.mrb[25].mxu1 }
 0x771   :  { %v6095_v8 = vadd.f32 %v5323_v9, %v3709_v3  ;;  %v6094_v10 = vadd.f32 %v5243_v7, %v3705_v4  ;;  %v5325_v12 = vpop.f32.mrb[17].mxu0  ;;  %v5245_v14 = vpop.f32.mrb[26].mxu1 }
 0x772   :  { %5334 = vst [vmem:[%s8330_s16 + $0x20] sm:$0xff] %v6093_v35  ;;  %v6096_v15 = vadd.f32 %v5325_v12, %v3713_v5  ;;  %v5327_v16 = vpop.f32.mrb[18].mxu0  ;;  %v5246_v17 = vpop.f32.mrb[27].mxu1 }
 0x773   :  { %5336 = vst [vmem:[%s8330_s16 + $0x30] sm:$0xff] %v6095_v8  ;;  %5335 = vst [vmem:[%s8330_s16 + $0x28] sm:$0xff] %v6094_v10  ;;  %v5328_v60 = vpop.f32.mrb[19].mxu0 }
 0x774   :  { %5337 = vst [vmem:[%s8330_s16 + $0x38] sm:$0xff] %v6096_v15 }
 0x775   :  { %5352 = vsyncpa [#allocation3], 1 }

</bundles_post_ra>
